<compile_context>
chip_gen: v7x
topology: tpu7x:2x2x1
jax: 0.10.0
libtpu: 0.0.40
codegen_flags: <defaults>
</compile_context>

<pallas_src>
import jax
import jax.numpy as jnp
from jax import lax
from jax.experimental import pallas as pl
from jax.experimental.pallas import tpu as pltpu


def _round_up(n, m):
    return ((n + m - 1) // m) * m


def _cdiv(a, b):
    return -(-a // b)


def _make_mlp_kernel(num_linear, mxu_final):
    """Fused MLP kernel.

    Ref order: x_ref, w0, b0, w1, b1, ..., w_{L-1}, b_{L-1}, out_ref.
      x_ref:          (tile_b, n_inputs)  batch-major tile (natural HBM layout)
      hidden layer i: w (out_i, in_i), b (out_i, 1)
      final layer:    mxu_final -> w (1, H_last) ; else w (H_last, 1); b (1, 1)
      out_ref:        (1, tile_b) lane-dense
    """

    def kernel(*refs):
        x_ref = refs[0]
        out_ref = refs[-1]
        wref = lambda i: refs[1 + 2 * i]
        bref = lambda i: refs[2 + 2 * i]

        # Upcast once in VMEM (supports bf16-streamed x; no-op for f32).
        x = x_ref[...].astype(jnp.float32)                 # (tile_b, n_inputs)

        if num_linear == 1:
            # Single Linear(n_inputs, 1): contract feature dims directly so the
            # result is already batch-on-lanes: (1, tile_b).
            w = wref(0)[...].astype(jnp.float32)           # (1, n_inputs)
            z = lax.dot_general(w, x, (((1,), (1,)), ((), ())),
                                preferred_element_type=jnp.float32)
            z = z + bref(0)[...]
        else:
            # First hidden layer: contract w0 dim-1 with x dim-1 so activations
            # come out feature-major (out0, tile_b) — batch on the lane axis —
            # without any wrapper-side transpose / extra HBM pass.
            w0 = wref(0)[...].astype(jnp.float32)          # (out0, n_inputs)
            h = lax.dot_general(w0, x, (((1,), (1,)), ((), ())),
                                preferred_element_type=jnp.float32)
            h = jnp.maximum(h + bref(0)[...], 0.0)         # bias + ReLU (VPU)

            for i in range(1, num_linear - 1):
                w = wref(i)[...].astype(jnp.float32)       # (out_i, in_i)
                h = jnp.dot(w, h, preferred_element_type=jnp.float32)
                h = jnp.maximum(h + bref(i)[...], 0.0)

            li = num_linear - 1
            b_last = bref(li)[...]                         # (1, 1)
            w_last = wref(li)[...].astype(jnp.float32)
            if mxu_final:
                # Wide head: keep it on the (otherwise ~idle) MXU.
                z = jnp.dot(w_last, h, preferred_element_type=jnp.float32)
                z = z + b_last
            else:
                # Narrow head: VPU multiply + XLU sublane reduce.
                z = jnp.sum(h * w_last, axis=0, keepdims=True) + b_last

        out_ref[...] = jax.nn.sigmoid(z).astype(out_ref.dtype)     # EUP

    return kernel


def classifier_forward_ref(x, params):
    """Plain-JAX reference (identical to PyTorch nn.Sequential semantics)."""
    h = x.astype(jnp.float32)
    for w, b in params[:-1]:
        h = jnp.maximum(h @ w.T + b, 0.0)
    w, b = params[-1]
    return jax.nn.sigmoid(h @ w.T + b)


def classifier_forward(x, params, *, max_tile_b=8192, stream_dtype=None,
                       small_batch_fallback=1024):
    """Fused MLP forward.

    x:      (batch, n_inputs) float32
    params: list of (W, b) in PyTorch layout — W: (out, in), b: (out,)
    returns (batch, 1) float32 (matches Classifier.forward).
    """
    batch, n_inputs = x.shape
    num_linear = len(params)

    # Tiny batches: pallas_call launch + DMA setup dominates — let XLA fuse it.
    if batch <= small_batch_fallback:
        return classifier_forward_ref(x, params)

    h_last = params[-1][0].shape[1]             # fan-in of the final Linear
    mxu_final = (num_linear == 1) or (h_last >= 128)

    # Kernel-facing parameter layout (always f32; a few KiB, VMEM-resident).
    flat = []
    for i, (w, b) in enumerate(params):
        w = w.astype(jnp.float32)
        b = b.astype(jnp.float32)
        if i == num_linear - 1:
            flat.extend([w if mxu_final else w.T, b.reshape(1, 1)])
        else:
            flat.extend([w, b.reshape(-1, 1)])

    # Batch tiling: one big lane-aligned tile (grid of 1) for batches up to
    # max_tile_b; otherwise a few equal-sized steps (balanced for megacore).
    padded128 = _round_up(batch, 128)
    tile_b = min(max_tile_b, padded128)
    num_steps = _cdiv(padded128, tile_b)
    tile_b = _round_up(_cdiv(padded128, num_steps), 128)   # multiple of 128
    padded = num_steps * tile_b
    grid = (num_steps,)

    # Optional bf16 streaming of x (halves the dominant HBM traffic); the
    # kernel upcasts to f32 right after the DMA, so all VPU/EUP math is f32.
    if stream_dtype is not None:
        x = x.astype(stream_dtype)

    kernel = _make_mlp_kernel(num_linear, mxu_final)

    # x streams over the batch in its natural batch-major layout; weights and
    # biases use constant index_maps so they stay resident in VMEM.
    in_specs = [pl.BlockSpec((tile_b, n_inputs), lambda i: (i, 0))]
    for p in flat:
        in_specs.append(pl.BlockSpec(p.shape, lambda i: (0, 0)))

    out = pl.pallas_call(
        kernel,
        grid=grid,
        out_shape=jax.ShapeDtypeStruct((1, padded), jnp.float32),
        in_specs=in_specs,
        out_specs=pl.BlockSpec((1, tile_b), lambda i: (0, i)),
        compiler_params=pltpu.CompilerParams(
            dimension_semantics=("parallel",),   # megacore split on v7x
            vmem_limit_bytes=32 * 1024 * 1024,   # headroom for lane-padded x
        ),
    )(x, *flat)

    return out[0, :batch].reshape(batch, 1)


def init_classifier_params(key, layers, n_inputs):
    """PyTorch nn.Linear-style init: U(-1/sqrt(fan_in), 1/sqrt(fan_in)).
    Weights in PyTorch layout (out, in); biases (out,)."""
    params = []
    dims = [n_inputs] + list(layers) + [1]
    for i in range(len(dims) - 1):
        fan_in, fan_out = dims[i], dims[i + 1]
        key, kw, kb = jax.random.split(key, 3)
        bound = 1.0 / (fan_in ** 0.5)
        w = jax.random.uniform(kw, (fan_out, fan_in), jnp.float32, -bound, bound)
        b = jax.random.uniform(kb, (fan_out,), jnp.float32, -bound, bound)
        params.append((w, b))
    return params


if __name__ == "__main__":
    key = jax.random.PRNGKey(0)
    key, kx = jax.random.split(key)

    layers = [32, 16]    # hidden layer widths (the `layers` ctor arg)
    n_inputs = 5         # default n_inputs from the PyTorch module
    batch = 3000         # non-multiple of 128: exercises the ragged edge

    x = jax.random.normal(kx, (batch, n_inputs), jnp.float32)
    params = init_classifier_params(key, layers, n_inputs)
    ref = classifier_forward_ref(x, params)

    # 1) f32 path, single grid step.
    out = jax.block_until_ready(classifier_forward(x, params))
    assert out.shape == (batch, 1), out.shape
    err = float(jnp.max(jnp.abs(out - ref)))
    assert jnp.allclose(out, ref, atol=3e-5, rtol=3e-5), err

    # 2) Multi-step balanced grid + ragged last tile.
    out_multi = jax.block_until_ready(
        classifier_forward(x, params, max_tile_b=1024))
    assert jnp.allclose(out_multi, ref, atol=3e-5, rtol=3e-5)

    # 3) bf16-streamed x (v6e/v7x HBM saving); tolerance covers input rounding.
    out_bf16 = jax.block_until_ready(
        classifier_forward(x, params, stream_dtype=jnp.bfloat16))
    assert jnp.allclose(out_bf16, ref, atol=2e-2, rtol=2e-2)

    # 4) Tiny-batch fallback path (XLA-fused, no pallas_call).
    out_small = jax.block_until_ready(classifier_forward(x[:8], params))
    assert jnp.allclose(out_small, ref[:8], atol=3e-5, rtol=3e-5)

    print("KERNEL_OK")
</pallas_src>

<mosaic_0001>
module attributes {stable_mosaic.version = 11 : i64} {
  func.func @kernel(%arg0: i32, %arg1: memref<3072x5xf32, #tpu.memory_space<vmem>>, %arg2: memref<32x5xf32, #tpu.memory_space<vmem>>, %arg3: memref<32x1xf32, #tpu.memory_space<vmem>>, %arg4: memref<16x32xf32, #tpu.memory_space<vmem>>, %arg5: memref<16x1xf32, #tpu.memory_space<vmem>>, %arg6: memref<16x1xf32, #tpu.memory_space<vmem>>, %arg7: memref<1x1xf32, #tpu.memory_space<vmem>>, %arg8: memref<1x3072xf32, #tpu.memory_space<vmem>>) attributes {dimension_semantics = [#tpu.dimension_semantics<parallel>], iteration_bounds = array<i64: 1>, scalar_prefetch = 0 : i64, scratch_operands = 0 : i64, tpu.core_type = #tpu.core_type<tc>, window_params = [{transform_indices = @transform_0, window_bounds = array<i64: 3072, 5>}, {pipeline_mode = #tpu.pipeline_mode<synchronous>, transform_indices = @transform_1, window_bounds = array<i64: 32, 5>}, {pipeline_mode = #tpu.pipeline_mode<synchronous>, transform_indices = @transform_2, window_bounds = array<i64: 32, 1>}, {pipeline_mode = #tpu.pipeline_mode<synchronous>, transform_indices = @transform_3, window_bounds = array<i64: 16, 32>}, {pipeline_mode = #tpu.pipeline_mode<synchronous>, transform_indices = @transform_4, window_bounds = array<i64: 16, 1>}, {pipeline_mode = #tpu.pipeline_mode<synchronous>, transform_indices = @transform_5, window_bounds = array<i64: 16, 1>}, {pipeline_mode = #tpu.pipeline_mode<synchronous>, transform_indices = @transform_6, window_bounds = array<i64: 1, 1>}, {transform_indices = @transform_7, window_bounds = array<i64: 1, 3072>}]} {
    %c0 = arith.constant 0 : index
    %c0_0 = arith.constant 0 : index
    %0 = vector.load %arg1[%c0, %c0_0] : memref<3072x5xf32, #tpu.memory_space<vmem>>, vector<3072x5xf32>
    %c0_1 = arith.constant 0 : index
    %c0_2 = arith.constant 0 : index
    %1 = vector.load %arg2[%c0_1, %c0_2] : memref<32x5xf32, #tpu.memory_space<vmem>>, vector<32x5xf32>
    %cst = arith.constant dense<0.000000e+00> : vector<32x3072xf32>
    %2 = tpu.matmul %1, %0, %cst {dimension_numbers = #tpu.dot_dimension_numbers<[1], [1], [0], [0], [0, 0, 1, 0], [], []>} : vector<32x5xf32>, vector<3072x5xf32>, vector<32x3072xf32> -> vector<32x3072xf32>
    %c0_3 = arith.constant 0 : index
    %c0_4 = arith.constant 0 : index
    %3 = vector.load %arg3[%c0_3, %c0_4] : memref<32x1xf32, #tpu.memory_space<vmem>>, vector<32x1xf32>
    %4 = vector.broadcast %3 : vector<32x1xf32> to vector<32x3072xf32>
    %5 = arith.addf %2, %4 : vector<32x3072xf32>
    %cst_5 = arith.constant 0.000000e+00 : f32
    %6 = vector.broadcast %cst_5 : f32 to vector<32x3072xf32>
    %7 = arith.maximumf %5, %6 : vector<32x3072xf32>
    %c0_6 = arith.constant 0 : index
    %c0_7 = arith.constant 0 : index
    %8 = vector.load %arg4[%c0_6, %c0_7] : memref<16x32xf32, #tpu.memory_space<vmem>>, vector<16x32xf32>
    %cst_8 = arith.constant dense<0.000000e+00> : vector<16x3072xf32>
    %9 = tpu.matmul %8, %7, %cst_8 {dimension_numbers = #tpu.dot_dimension_numbers<[1], [0], [0], [1], [0, 0, 1, 1], [], []>} : vector<16x32xf32>, vector<32x3072xf32>, vector<16x3072xf32> -> vector<16x3072xf32>
    %c0_9 = arith.constant 0 : index
    %c0_10 = arith.constant 0 : index
    %10 = vector.load %arg5[%c0_9, %c0_10] : memref<16x1xf32, #tpu.memory_space<vmem>>, vector<16x1xf32>
    %11 = vector.broadcast %10 : vector<16x1xf32> to vector<16x3072xf32>
    %12 = arith.addf %9, %11 : vector<16x3072xf32>
    %cst_11 = arith.constant 0.000000e+00 : f32
    %13 = vector.broadcast %cst_11 : f32 to vector<16x3072xf32>
    %14 = arith.maximumf %12, %13 : vector<16x3072xf32>
    %c0_12 = arith.constant 0 : index
    %c0_13 = arith.constant 0 : index
    %15 = vector.load %arg7[%c0_12, %c0_13] : memref<1x1xf32, #tpu.memory_space<vmem>>, vector<1x1xf32>
    %c0_14 = arith.constant 0 : index
    %c0_15 = arith.constant 0 : index
    %16 = vector.load %arg6[%c0_14, %c0_15] : memref<16x1xf32, #tpu.memory_space<vmem>>, vector<16x1xf32>
    %17 = vector.broadcast %16 : vector<16x1xf32> to vector<16x3072xf32>
    %18 = arith.mulf %14, %17 : vector<16x3072xf32>
    %cst_16 = arith.constant dense<0.000000e+00> : vector<3072xf32>
    %19 = vector.multi_reduction <add>, %18, %cst_16 [0] : vector<16x3072xf32> to vector<3072xf32>
    %20 = vector.shape_cast %19 : vector<3072xf32> to vector<1x3072xf32>
    %21 = vector.broadcast %15 : vector<1x1xf32> to vector<1x3072xf32>
    %22 = arith.addf %20, %21 : vector<1x3072xf32>
    %23 = arith.negf %22 : vector<1x3072xf32>
    %24 = math.exp %23 : vector<1x3072xf32>
    %cst_17 = arith.constant 1.000000e+00 : f32
    %25 = vector.broadcast %cst_17 : f32 to vector<1x3072xf32>
    %26 = arith.addf %25, %24 : vector<1x3072xf32>
    %27 = arith.divf %25, %26 : vector<1x3072xf32>
    %c0_18 = arith.constant 0 : index
    %c0_19 = arith.constant 0 : index
    %28 = vector.load %arg8[%c0_18, %c0_19] : memref<1x3072xf32, #tpu.memory_space<vmem>>, vector<1x3072xf32>
    tpu.vector_store %arg8[%c0_18, %c0_19], %27 {strides = array<i32>} : memref<1x3072xf32, #tpu.memory_space<vmem>>, vector<1x3072xf32>,
    return
  }
  func.func @transform_0(%arg0: i32) -> (i32, i32) {
    %c0_i32 = arith.constant 0 : i32
    %c0_i32_0 = arith.constant 0 : i32
    return %arg0, %c0_i32 : i32, i32
  }
  func.func @transform_1(%arg0: i32) -> (i32, i32) {
    %c0_i32 = arith.constant 0 : i32
    %c0_i32_0 = arith.constant 0 : i32
    %c0_i32_1 = arith.constant 0 : i32
    return %c0_i32, %c0_i32_0 : i32, i32
  }
  func.func @transform_2(%arg0: i32) -> (i32, i32) {
    %c0_i32 = arith.constant 0 : i32
    %c0_i32_0 = arith.constant 0 : i32
    %c0_i32_1 = arith.constant 0 : i32
    return %c0_i32, %c0_i32_0 : i32, i32
  }
  func.func @transform_3(%arg0: i32) -> (i32, i32) {
    %c0_i32 = arith.constant 0 : i32
    %c0_i32_0 = arith.constant 0 : i32
    %c0_i32_1 = arith.constant 0 : i32
    return %c0_i32, %c0_i32_0 : i32, i32
  }
  func.func @transform_4(%arg0: i32) -> (i32, i32) {
    %c0_i32 = arith.constant 0 : i32
    %c0_i32_0 = arith.constant 0 : i32
    %c0_i32_1 = arith.constant 0 : i32
    return %c0_i32, %c0_i32_0 : i32, i32
  }
  func.func @transform_5(%arg0: i32) -> (i32, i32) {
    %c0_i32 = arith.constant 0 : i32
    %c0_i32_0 = arith.constant 0 : i32
    %c0_i32_1 = arith.constant 0 : i32
    return %c0_i32, %c0_i32_0 : i32, i32
  }
  func.func @transform_6(%arg0: i32) -> (i32, i32) {
    %c0_i32 = arith.constant 0 : i32
    %c0_i32_0 = arith.constant 0 : i32
    %c0_i32_1 = arith.constant 0 : i32
    return %c0_i32, %c0_i32_0 : i32, i32
  }
  func.func @transform_7(%arg0: i32) -> (i32, i32) {
    %c0_i32 = arith.constant 0 : i32
    %c0_i32_0 = arith.constant 0 : i32
    return %c0_i32, %arg0 : i32, i32
  }
}

</mosaic_0001>

<bundles_post_ra>
// kernel: tpu_custom_call.1
= control target key start
LH: loop header
LB: loop body
LE: loop exit
PB: predicated region body
PF: predicated region fallthrough
CT: control target
= control target key end

     0   :  { %s8385_s0 = inlined_call_operand.vmem [shape: f32[3000,5], index: 0, kind: input, shape index: {}]   ;;  %s8386_s1 = inlined_call_operand.vmem [shape: f32[32,5], index: 1, kind: input, shape index: {}]   ;;  %s8387_s2 = inlined_call_operand.vmem [shape: f32[32,1], index: 2, kind: input, shape index: {}]   ;;  %s8388_s3 = inlined_call_operand.vmem [shape: f32[16,32], index: 3, kind: input, shape index: {}]   ;;  %s8389_s4 = inlined_call_operand.vmem [shape: f32[16,1], index: 4, kind: input, shape index: {}]   ;;  %s8390_s5 = inlined_call_operand.vmem [shape: f32[16,1], index: 5, kind: input, shape index: {}]   ;;  %s8391_s6 = inlined_call_operand.<no memory space> [shape: f32[1,1], index: 6, kind: input, shape index: {}]   ;;  %s8392_s7 = inlined_call_operand.hbm [shape: f32[1,3072], index: 7, kind: output, shape index: {}]  }
   0x1   :  { %v12_v0 = vstv %s8391_s6 }
   0x2   :  { %13 = vst [vmem:[#allocation2] sm:$0x1] %v12_v0 }
   0x3   :  { %v45_v1 = vld [vmem:[%s8385_s0 + $0x80] sm:$0xff]  ;;  %v46_v2 = vld [vmem:[%s8385_s0 + $0x88] sm:$0xff]  ;;  %vm441_vm0 = vcmask 39936   ;;  %v47_v14 = vld [vmem:[%s8385_s0 + $0x90] sm:$0xff]  ;;  %v6122_v53 = vmov 0  }
   0x4   :  { %v77_v3 = vld [vmem:[%s8385_s0 + $0x180] sm:$0xff]  ;;  %v5320_v4 = vpack.c.bf16 %v46_v2, %v45_v1  ;;  %vm6180_vm1 = vmpackc.low %vm441_vm0, %vm441_vm0  ;;  %v78_v6 = vld [vmem:[%s8385_s0 + $0x188] sm:$0xff]  ;;  %5996 = vset.pattern.permute.xlu0 %v6122_v53  ;;  %5997 = vset.pattern.permute.xlu1 %v6122_v53 }
   0x5   :  { %v29_v7 = vld [vmem:[%s8385_s0] sm:$0xff]  ;;  %v5368_v8 = vpack.c.bf16 %v78_v6, %v77_v3  ;;  %v30_v9 = vld [vmem:[%s8385_s0 + $0x8] sm:$0xff]  ;;  %v48_v15 = vld [vmem:[%s8385_s0 + $0x98] sm:$0xff] }
   0x6   :  { %v61_v10 = vld [vmem:[%s8385_s0 + $0x100] sm:$0xff]  ;;  %v62_v11 = vld [vmem:[%s8385_s0 + $0x108] sm:$0xff]  ;;  %5322 = vmatprep.subr.msk.bf16.mxu0 %vm6180_vm1, %v5320_v4  ;;  %v5323_v12 = vpack.c.bf16 %v30_v9, %v29_v7  ;;  %v79_v16 = vld [vmem:[%s8385_s0 + $0x190] sm:$0xff]  ;;  %v5326_v17 = vpack.c.bf16 %v48_v15, %v47_v14 }
   0x7   :  { %v5371_v13 = vpack.c.bf16 %v62_v11, %v61_v10  ;;  %5370 = vmatprep.subr.msk.bf16.mxu1 %vm6180_vm1, %v5368_v8  ;;  %v80_v18 = vld [vmem:[%s8385_s0 + $0x198] sm:$0xff]  ;;  %v31_v20 = vld [vmem:[%s8385_s0 + $0x10] sm:$0xff]  ;;  %v49_v24 = vld [vmem:[%s8385_s0 + $0xa0] sm:$0xff] }
   0x8   :  { %5325 = vmatpush3.bf16.xpose.msk.msra.mxu0 %vm6180_vm1, %v5323_v12  ;;  %v5374_v19 = vpack.c.bf16 %v80_v18, %v79_v16  ;;  %v32_v21 = vld [vmem:[%s8385_s0 + $0x18] sm:$0xff]  ;;  %v63_v22 = vld [vmem:[%s8385_s0 + $0x110] sm:$0xff]  ;;  %v50_v25 = vld [vmem:[%s8385_s0 + $0xa8] sm:$0xff] }
   0x9   :  { %5373 = vmatpush3.bf16.xpose.msk.msra.mxu1 %vm6180_vm1, %v5371_v13  ;;  %5328 = vmatprep.subr.msk.bf16.mxu0 %vm6180_vm1, %v5326_v17  ;;  %v64_v23 = vld [vmem:[%s8385_s0 + $0x118] sm:$0xff]  ;;  %v81_v26 = vld [vmem:[%s8385_s0 + $0x1a0] sm:$0xff]  ;;  %v82_v27 = vld [vmem:[%s8385_s0 + $0x1a8] sm:$0xff]  ;;  %v5329_v28 = vpack.c.bf16 %v32_v21, %v31_v20  ;;  %v5332_v30 = vpack.c.bf16 %v50_v25, %v49_v24 }
   0xa   :  { %5376 = vmatprep.subr.msk.bf16.mxu1 %vm6180_vm1, %v5374_v19  ;;  %v5377_v29 = vpack.c.bf16 %v64_v23, %v63_v22  ;;  %v5380_v31 = vpack.c.bf16 %v82_v27, %v81_v26  ;;  %v33_v32 = vld [vmem:[%s8385_s0 + $0x20] sm:$0xff]  ;;  %v34_v33 = vld [vmem:[%s8385_s0 + $0x28] sm:$0xff]  ;;  %v51_v36 = vld [vmem:[%s8385_s0 + $0xb0] sm:$0xff] }
   0xb   :  { %v65_v34 = vld [vmem:[%s8385_s0 + $0x120] sm:$0xff]  ;;  %v66_v35 = vld [vmem:[%s8385_s0 + $0x128] sm:$0xff]  ;;  %v52_v37 = vld [vmem:[%s8385_s0 + $0xb8] sm:$0xff]  ;;  %v5335_v40 = vpack.c.bf16 %v34_v33, %v33_v32 }
   0xc   :  { %v83_v38 = vld [vmem:[%s8385_s0 + $0x1b0] sm:$0xff]  ;;  %v84_v39 = vld [vmem:[%s8385_s0 + $0x1b8] sm:$0xff]  ;;  %v5383_v41 = vpack.c.bf16 %v66_v35, %v65_v34  ;;  %v5338_v42 = vpack.c.bf16 %v52_v37, %v51_v36  ;;  %v6292_v46 = vld [vmem:[%s8386_s1] sm:$0xff] }
   0xd   :  { %v5386_v43 = vpack.c.bf16 %v84_v39, %v83_v38  ;;  %v35_v44 = vld [vmem:[%s8385_s0 + $0x30] sm:$0xff]  ;;  %v36_v45 = vld [vmem:[%s8385_s0 + $0x38] sm:$0xff]  ;;  %v53_v49 = vld [vmem:[%s8385_s0 + $0xc0] sm:$0xff]  ;;  %4872 = vmatprep.mubr.msk.f32.mxu0 %vm441_vm0, %v6292_v46  ;;  %4912 = vmatprep.mubr.msk.f32.mxu1 %vm441_vm0, %v6292_v46 }
   0xe   :  { %v67_v47 = vld [vmem:[%s8385_s0 + $0x130] sm:$0xff]  ;;  %v68_v48 = vld [vmem:[%s8385_s0 + $0x138] sm:$0xff]  ;;  %v54_v50 = vld [vmem:[%s8385_s0 + $0xc8] sm:$0xff]  ;;  %v5341_v54 = vpack.c.bf16 %v36_v45, %v35_v44 }
   0xf   :  { %v85_v51 = vld [vmem:[%s8385_s0 + $0x1c0] sm:$0xff]  ;;  %v86_v52 = vld [vmem:[%s8385_s0 + $0x1c8] sm:$0xff]  ;;  %v5389_v55 = vpack.c.bf16 %v68_v48, %v67_v47  ;;  %v5344_v56 = vpack.c.bf16 %v54_v50, %v53_v49  ;;  %v55_v62 = vld [vmem:[%s8385_s0 + $0xd0] sm:$0xff] }
  0x10   :  { %5331 = vmatpush3.bf16.xpose.msk.msra.mxu0 %vm6180_vm1, %v5329_v28  ;;  %v5392_v57 = vpack.c.bf16 %v86_v52, %v85_v51  ;;  %v37_v58 = vld [vmem:[%s8385_s0 + $0x40] sm:$0xff]  ;;  %v38_v59 = vld [vmem:[%s8385_s0 + $0x48] sm:$0xff]  ;;  %v56_v63 = vld [vmem:[%s8385_s0 + $0xd8] sm:$0xff] }
  0x11   :  { %5379 = vmatpush3.bf16.xpose.msk.msra.mxu1 %vm6180_vm1, %v5377_v29  ;;  %5334 = vmatprep.subr.msk.bf16.mxu0 %vm6180_vm1, %v5332_v30  ;;  %v69_v60 = vld [vmem:[%s8385_s0 + $0x140] sm:$0xff]  ;;  %v70_v61 = vld [vmem:[%s8385_s0 + $0x148] sm:$0xff]  ;;  %v87_v0 = vld [vmem:[%s8385_s0 + $0x1d0] sm:$0xff]  ;;  %v5347_v2 = vpack.c.bf16 %v38_v59, %v37_v58  ;;  %v5350_v4 = vpack.c.bf16 %v56_v63, %v55_v62 }
  0x12   :  { %5382 = vmatprep.subr.msk.bf16.mxu1 %vm6180_vm1, %v5380_v31  ;;  %v88_v1 = vld [vmem:[%s8385_s0 + $0x1d8] sm:$0xff]  ;;  %v5395_v3 = vpack.c.bf16 %v70_v61, %v69_v60  ;;  %v39_v7 = vld [vmem:[%s8385_s0 + $0x50] sm:$0xff]  ;;  %v57_v11 = vld [vmem:[%s8385_s0 + $0xe0] sm:$0xff] }
  0x13   :  { %v5398_v6 = vpack.c.bf16 %v88_v1, %v87_v0  ;;  %v40_v8 = vld [vmem:[%s8385_s0 + $0x58] sm:$0xff]  ;;  %v71_v9 = vld [vmem:[%s8385_s0 + $0x150] sm:$0xff]  ;;  %v58_v12 = vld [vmem:[%s8385_s0 + $0xe8] sm:$0xff] }
  0x14   :  { %v72_v10 = vld [vmem:[%s8385_s0 + $0x158] sm:$0xff]  ;;  %v89_v13 = vld [vmem:[%s8385_s0 + $0x1e0] sm:$0xff]  ;;  %v90_v14 = vld [vmem:[%s8385_s0 + $0x1e8] sm:$0xff]  ;;  %v5353_v15 = vpack.c.bf16 %v40_v8, %v39_v7  ;;  %v5356_v17 = vpack.c.bf16 %v58_v12, %v57_v11 }
  0x15   :  { %v5401_v16 = vpack.c.bf16 %v72_v10, %v71_v9  ;;  %v5404_v18 = vpack.c.bf16 %v90_v14, %v89_v13  ;;  %v41_v19 = vld [vmem:[%s8385_s0 + $0x60] sm:$0xff]  ;;  %v42_v20 = vld [vmem:[%s8385_s0 + $0x68] sm:$0xff]  ;;  %v59_v23 = vld [vmem:[%s8385_s0 + $0xf0] sm:$0xff] }
  0x16   :  { %v73_v21 = vld [vmem:[%s8385_s0 + $0x160] sm:$0xff]  ;;  %v74_v22 = vld [vmem:[%s8385_s0 + $0x168] sm:$0xff]  ;;  %v60_v24 = vld [vmem:[%s8385_s0 + $0xf8] sm:$0xff]  ;;  %v5359_v27 = vpack.c.bf16 %v42_v20, %v41_v19 }
  0x17   :  { %v91_v25 = vld [vmem:[%s8385_s0 + $0x1f0] sm:$0xff]  ;;  %v92_v26 = vld [vmem:[%s8385_s0 + $0x1f8] sm:$0xff]  ;;  %v5407_v28 = vpack.c.bf16 %v74_v22, %v73_v21  ;;  %v5362_v29 = vpack.c.bf16 %v60_v24, %v59_v23  ;;  %v417_v31 = vld [vmem:[%s8387_s2] sm:$0xff] }
  0x18   :  { %5337 = vmatpush3.bf16.xpose.msk.msra.mxu0 %vm6180_vm1, %v5335_v40  ;;  %v5410_v30 = vpack.c.bf16 %v92_v26, %v91_v25  ;;  %v43_v32 = vld [vmem:[%s8385_s0 + $0x70] sm:$0xff]  ;;  %v44_v33 = vld [vmem:[%s8385_s0 + $0x78] sm:$0xff]  ;;  %v109_v36 = vld [vmem:[%s8385_s0 + $0x280] sm:$0xff]  ;;  %423 = vperm.xlu0 %5996, %v417_v31  }
  0x19   :  { %5385 = vmatpush3.bf16.xpose.msk.msra.mxu1 %vm6180_vm1, %v5383_v41  ;;  %5340 = vmatprep.subr.msk.bf16.mxu0 %vm6180_vm1, %v5338_v42  ;;  %v75_v34 = vld [vmem:[%s8385_s0 + $0x170] sm:$0xff]  ;;  %v76_v35 = vld [vmem:[%s8385_s0 + $0x178] sm:$0xff]  ;;  %v110_v37 = vld [vmem:[%s8385_s0 + $0x288] sm:$0xff]  ;;  %v5365_v41 = vpack.c.bf16 %v44_v33, %v43_v32 }
  0x1a   :  { %5388 = vmatprep.subr.msk.bf16.mxu1 %vm6180_vm1, %v5386_v43  ;;  %v141_v38 = vld [vmem:[%s8385_s0 + $0x380] sm:$0xff]  ;;  %v142_v39 = vld [vmem:[%s8385_s0 + $0x388] sm:$0xff]  ;;  %v5413_v42 = vpack.c.bf16 %v76_v35, %v75_v34  ;;  %v5416_v43 = vpack.c.bf16 %v110_v37, %v109_v36  ;;  %v111_v50 = vld [vmem:[%s8385_s0 + $0x290] sm:$0xff] }
  0x1b   :  { %v418_v40 = vld [vmem:[%s8387_s2 + $0x8] sm:$0xff]  ;;  %v5464_v44 = vpack.c.bf16 %v142_v39, %v141_v38  ;;  %v93_v45 = vld [vmem:[%s8385_s0 + $0x200] sm:$0xff]  ;;  %v112_v51 = vld [vmem:[%s8385_s0 + $0x298] sm:$0xff] }
  0x1c   :  { %428 = vperm.xlu0 %5996, %v418_v40   ;;  %v94_v47 = vld [vmem:[%s8385_s0 + $0x208] sm:$0xff]  ;;  %v125_v48 = vld [vmem:[%s8385_s0 + $0x300] sm:$0xff]  ;;  %v143_v52 = vld [vmem:[%s8385_s0 + $0x390] sm:$0xff] }
  0x1d   :  { %v126_v49 = vld [vmem:[%s8385_s0 + $0x308] sm:$0xff]  ;;  %v144_v53 = vld [vmem:[%s8385_s0 + $0x398] sm:$0xff]  ;;  %v95_v59 = vld [vmem:[%s8385_s0 + $0x210] sm:$0xff] }
  0x1e   :  { %v5470_v58 = vpack.c.bf16 %v144_v53, %v143_v52  ;;  %v96_v60 = vld [vmem:[%s8385_s0 + $0x218] sm:$0xff]  ;;  %v127_v61 = vld [vmem:[%s8385_s0 + $0x310] sm:$0xff] }
  0x20   :  { %5343 = vmatpush3.bf16.xpose.msk.msra.mxu0 %vm6180_vm1, %v5341_v54  ;;  %v5419_v54 = vpack.c.bf16 %v94_v47, %v93_v45 }
  0x21   :  { %5391 = vmatpush3.bf16.xpose.msk.msra.mxu1 %vm6180_vm1, %v5389_v55  ;;  %5346 = vmatprep.subr.msk.bf16.mxu0 %vm6180_vm1, %v5344_v56  ;;  %v5467_v55 = vpack.c.bf16 %v126_v49, %v125_v48  ;;  %v6489_v56 = vld [vmem:[%s8386_s1 + $0x8] sm:$0xff] }
  0x22   :  { %5394 = vmatprep.subr.msk.bf16.mxu1 %vm6180_vm1, %v5392_v57  ;;  %v5422_v57 = vpack.c.bf16 %v112_v51, %v111_v50 }
  0x28   :  { %5349 = vmatpush3.bf16.xpose.msk.msra.mxu0 %vm6180_vm1, %v5347_v2 }
  0x29   :  { %5397 = vmatpush3.bf16.xpose.msk.msra.mxu1 %vm6180_vm1, %v5395_v3  ;;  %5352 = vmatprep.subr.msk.bf16.mxu0 %vm6180_vm1, %v5350_v4 }
  0x2a   :  { %5400 = vmatprep.subr.msk.bf16.mxu1 %vm6180_vm1, %v5398_v6 }
  0x30   :  { %5355 = vmatpush3.bf16.xpose.msk.msra.mxu0 %vm6180_vm1, %v5353_v15 }
  0x31   :  { %5403 = vmatpush3.bf16.xpose.msk.msra.mxu1 %vm6180_vm1, %v5401_v16  ;;  %5358 = vmatprep.subr.msk.bf16.mxu0 %vm6180_vm1, %v5356_v17 }
  0x32   :  { %5406 = vmatprep.subr.msk.bf16.mxu1 %vm6180_vm1, %v5404_v18 }
  0x38   :  { %5361 = vmatpush3.bf16.xpose.msk.msra.mxu0 %vm6180_vm1, %v5359_v27 }
  0x39   :  { %5409 = vmatpush3.bf16.xpose.msk.msra.mxu1 %vm6180_vm1, %v5407_v28  ;;  %5364 = vmatprep.subr.msk.bf16.mxu0 %vm6180_vm1, %v5362_v29 }
  0x3a   :  { %5412 = vmatprep.subr.msk.bf16.mxu1 %vm6180_vm1, %v5410_v30 }
  0x40   :  { %5367 = vmatpush3.bf16.xpose.msk.msra.mxu0 %vm6180_vm1, %v5365_v41 }
  0x41   :  { %5415 = vmatpush3.bf16.xpose.msk.msra.mxu1 %vm6180_vm1, %v5413_v42  ;;  %5418 = vmatprep.subr.msk.bf16.mxu0 %vm6180_vm1, %v5416_v43 }
  0x42   :  { %5466 = vmatprep.subr.msk.bf16.mxu1 %vm6180_vm1, %v5464_v44 }
  0x47   :  { %4873 = vmatmul.mubr.msk.f32.vlgmr.msra.gmra.mrb[0].mxu0 %vm441_vm0, %v6292_v46 }
  0x48   :  { %4913 = vmatmul.mubr.msk.f32.vlgmr.msra.gmra.mrb[0].mxu1 %vm441_vm0, %v6292_v46  ;;  %5421 = vmatpush3.bf16.xpose.msk.msra.mxu0 %vm6180_vm1, %v5419_v54 }
  0x49   :  { %5469 = vmatpush3.bf16.xpose.msk.msra.mxu1 %vm6180_vm1, %v5467_v55 }
  0x4a   :  { %14 = vsyncpa [#allocation4], 0  ;;  %4874 = vmatprep.mubr.msk.f32.mxu0 %vm441_vm0, %v6489_v56  ;;  %4914 = vmatprep.mubr.msk.f32.mxu1 %vm441_vm0, %v6489_v56  ;;  %v128_v62 = vld [vmem:[%s8385_s0 + $0x318] sm:$0xff]  ;;  %v113_v63 = vld [vmem:[%s8385_s0 + $0x2a0] sm:$0xff]  ;;  %v5425_v4 = vpack.c.bf16 %v96_v60, %v95_v59  ;;  %v6123_v5 = vmov 0.0   ;;  %vm2784_vm2 = vcmask 261120  }
  0x4b   :  { %v6521_v0 = vld [vmem:[%s8386_s1 + $0x10] sm:$0xff]  ;;  %5424 = vmatprep.subr.msk.bf16.mxu0 %vm6180_vm1, %v5422_v57  ;;  %5472 = vmatprep.subr.msk.bf16.mxu1 %vm6180_vm1, %v5470_v58  ;;  %v114_v1 = vld [vmem:[%s8385_s0 + $0x2a8] sm:$0xff]  ;;  %v145_v2 = vld [vmem:[%s8385_s0 + $0x3a0] sm:$0xff]  ;;  %v5473_v6 = vpack.c.bf16 %v128_v62, %v127_v61 }
  0x4c   :  { %v146_v3 = vld [vmem:[%s8385_s0 + $0x3a8] sm:$0xff]  ;;  %4875 = vmatmul.mubr.msk.f32.gmra.mrb[2].mxu0 %vm441_vm0, %v6489_v56  ;;  %4915 = vmatmul.mubr.msk.f32.gmra.mrb[2].mxu1 %vm441_vm0, %v6489_v56  ;;  %v5428_v7 = vpack.c.bf16 %v114_v1, %v113_v63  ;;  %v6551_v9 = vld [vmem:[%s8386_s1 + $0x18] sm:$0xff]  ;;  %v97_v10 = vld [vmem:[%s8385_s0 + $0x220] sm:$0xff] }
  0x4d   :  { %4876 = vmatprep.mubr.msk.f32.mxu0 %vm441_vm0, %v6521_v0  ;;  %4916 = vmatprep.mubr.msk.f32.mxu1 %vm441_vm0, %v6521_v0  ;;  %v5476_v8 = vpack.c.bf16 %v146_v3, %v145_v2  ;;  %v98_v11 = vld [vmem:[%s8385_s0 + $0x228] sm:$0xff]  ;;  %v129_v12 = vld [vmem:[%s8385_s0 + $0x320] sm:$0xff]  ;;  %v115_v14 = vld [vmem:[%s8385_s0 + $0x2b0] sm:$0xff] }
  0x4e   :  { %v130_v13 = vld [vmem:[%s8385_s0 + $0x328] sm:$0xff]  ;;  %v116_v15 = vld [vmem:[%s8385_s0 + $0x2b8] sm:$0xff]  ;;  %v147_v16 = vld [vmem:[%s8385_s0 + $0x3b0] sm:$0xff]  ;;  %v5431_v19 = vpack.c.bf16 %v98_v11, %v97_v10 }
  0x4f   :  { %v148_v17 = vld [vmem:[%s8385_s0 + $0x3b8] sm:$0xff]  ;;  %v419_v18 = vld [vmem:[%s8387_s2 + $0x10] sm:$0xff]  ;;  %v5479_v20 = vpack.c.bf16 %v130_v13, %v129_v12  ;;  %v5434_v21 = vpack.c.bf16 %v116_v15, %v115_v14  ;;  %v117_v28 = vld [vmem:[%s8385_s0 + $0x2c0] sm:$0xff] }
  0x50   :  { %4877 = vmatmul.mubr.msk.f32.gmra.mrb[4].mxu0 %vm441_vm0, %v6521_v0  ;;  %4917 = vmatmul.mubr.msk.f32.gmra.mrb[4].mxu1 %vm441_vm0, %v6521_v0  ;;  %v5482_v22 = vpack.c.bf16 %v148_v17, %v147_v16  ;;  %v420_v23 = vld [vmem:[%s8387_s2 + $0x18] sm:$0xff]  ;;  %v99_v24 = vld [vmem:[%s8385_s0 + $0x230] sm:$0xff]  ;;  %v118_v29 = vld [vmem:[%s8385_s0 + $0x2c8] sm:$0xff] }
  0x51   :  { %5427 = vmatpush3.bf16.xpose.msk.msra.mxu0 %vm6180_vm1, %v5425_v4  ;;  %5475 = vmatpush3.bf16.xpose.msk.msra.mxu1 %vm6180_vm1, %v5473_v6  ;;  %v100_v25 = vld [vmem:[%s8385_s0 + $0x238] sm:$0xff]  ;;  %v131_v26 = vld [vmem:[%s8385_s0 + $0x330] sm:$0xff]  ;;  %v149_v30 = vld [vmem:[%s8385_s0 + $0x3c0] sm:$0xff]  ;;  %v5440_v34 = vpack.c.bf16 %v118_v29, %v117_v28 }
  0x52   :  { %5430 = vmatprep.subr.msk.bf16.mxu0 %vm6180_vm1, %v5428_v7  ;;  %5478 = vmatprep.subr.msk.bf16.mxu1 %vm6180_vm1, %v5476_v8  ;;  %v132_v27 = vld [vmem:[%s8385_s0 + $0x338] sm:$0xff]  ;;  %v150_v31 = vld [vmem:[%s8385_s0 + $0x3c8] sm:$0xff]  ;;  %v5437_v32 = vpack.c.bf16 %v100_v25, %v99_v24  ;;  %v101_v36 = vld [vmem:[%s8385_s0 + $0x240] sm:$0xff] }
  0x53   :  { %4878 = vmatprep.mubr.msk.f32.mxu0 %vm441_vm0, %v6551_v9  ;;  %4918 = vmatprep.mubr.msk.f32.mxu1 %vm441_vm0, %v6551_v9  ;;  %v5485_v33 = vpack.c.bf16 %v132_v27, %v131_v26  ;;  %v5488_v35 = vpack.c.bf16 %v150_v31, %v149_v30  ;;  %v102_v37 = vld [vmem:[%s8385_s0 + $0x248] sm:$0xff]  ;;  %v133_v38 = vld [vmem:[%s8385_s0 + $0x340] sm:$0xff]  ;;  %v119_v40 = vld [vmem:[%s8385_s0 + $0x2d0] sm:$0xff] }
  0x54   :  { %4879 = vmatmul.mubr.msk.f32.gmra.mrb[6].mxu0 %vm441_vm0, %v6551_v9  ;;  %4919 = vmatmul.mubr.msk.f32.gmra.mrb[6].mxu1 %vm441_vm0, %v6551_v9  ;;  %v134_v39 = vld [vmem:[%s8385_s0 + $0x348] sm:$0xff]  ;;  %v120_v41 = vld [vmem:[%s8385_s0 + $0x2d8] sm:$0xff]  ;;  %v151_v42 = vld [vmem:[%s8385_s0 + $0x3d0] sm:$0xff]  ;;  %v5443_v44 = vpack.c.bf16 %v102_v37, %v101_v36 }
  0x55   :  { %4952 = vmatprep.mubr.msk.f32.mxu0 %vm441_vm0, %v6292_v46  ;;  %4992 = vmatprep.mubr.msk.f32.mxu1 %vm441_vm0, %v6292_v46  ;;  %v152_v43 = vld [vmem:[%s8385_s0 + $0x3d8] sm:$0xff]  ;;  %v5491_v45 = vpack.c.bf16 %v134_v39, %v133_v38  ;;  %v5446_v47 = vpack.c.bf16 %v120_v41, %v119_v40  ;;  %v103_v49 = vld [vmem:[%s8385_s0 + $0x250] sm:$0xff]  ;;  %v121_v53 = vld [vmem:[%s8385_s0 + $0x2e0] sm:$0xff] }
  0x56   :  { %433 = vperm.xlu1 %5997, %v419_v18   ;;  %v5494_v48 = vpack.c.bf16 %v152_v43, %v151_v42  ;;  %v104_v50 = vld [vmem:[%s8385_s0 + $0x258] sm:$0xff]  ;;  %v135_v51 = vld [vmem:[%s8385_s0 + $0x350] sm:$0xff]  ;;  %v122_v54 = vld [vmem:[%s8385_s0 + $0x2e8] sm:$0xff] }
  0x57   :  { %v136_v52 = vld [vmem:[%s8385_s0 + $0x358] sm:$0xff]  ;;  %v153_v55 = vld [vmem:[%s8385_s0 + $0x3e0] sm:$0xff]  ;;  %v154_v57 = vld [vmem:[%s8385_s0 + $0x3e8] sm:$0xff]  ;;  %v5449_v58 = vpack.c.bf16 %v104_v50, %v103_v49  ;;  %v5452_v60 = vpack.c.bf16 %v122_v54, %v121_v53 }
  0x58   :  { %v5497_v59 = vpack.c.bf16 %v136_v52, %v135_v51  ;;  %v5500_v61 = vpack.c.bf16 %v154_v57, %v153_v55  ;;  %v105_v62 = vld [vmem:[%s8385_s0 + $0x260] sm:$0xff]  ;;  %v106_v63 = vld [vmem:[%s8385_s0 + $0x268] sm:$0xff]  ;;  %v123_v3 = vld [vmem:[%s8385_s0 + $0x2f0] sm:$0xff] }
  0x59   :  { %5433 = vmatpush3.bf16.xpose.msk.msra.mxu0 %vm6180_vm1, %v5431_v19  ;;  %5481 = vmatpush3.bf16.xpose.msk.msra.mxu1 %vm6180_vm1, %v5479_v20  ;;  %v137_v1 = vld [vmem:[%s8385_s0 + $0x360] sm:$0xff]  ;;  %v138_v2 = vld [vmem:[%s8385_s0 + $0x368] sm:$0xff]  ;;  %v124_v4 = vld [vmem:[%s8385_s0 + $0x2f8] sm:$0xff]  ;;  %v5455_v8 = vpack.c.bf16 %v106_v63, %v105_v62 }
  0x5a   :  { %5436 = vmatprep.subr.msk.bf16.mxu0 %vm6180_vm1, %v5434_v21  ;;  %5484 = vmatprep.subr.msk.bf16.mxu1 %vm6180_vm1, %v5482_v22  ;;  %v155_v6 = vld [vmem:[%s8385_s0 + $0x3f0] sm:$0xff]  ;;  %v156_v7 = vld [vmem:[%s8385_s0 + $0x3f8] sm:$0xff]  ;;  %v5503_v10 = vpack.c.bf16 %v138_v2, %v137_v1  ;;  %v5458_v11 = vpack.c.bf16 %v124_v4, %v123_v3  ;;  %v173_v17 = vld [vmem:[%s8385_s0 + $0x480] sm:$0xff] }
  0x5b   :  { %438 = vperm.xlu1 %5997, %v420_v23   ;;  %v5506_v12 = vpack.c.bf16 %v156_v7, %v155_v6  ;;  %v107_v13 = vld [vmem:[%s8385_s0 + $0x270] sm:$0xff]  ;;  %v108_v14 = vld [vmem:[%s8385_s0 + $0x278] sm:$0xff]  ;;  %v174_v18 = vld [vmem:[%s8385_s0 + $0x488] sm:$0xff] }
  0x5c   :  { %v139_v15 = vld [vmem:[%s8385_s0 + $0x370] sm:$0xff]  ;;  %v140_v16 = vld [vmem:[%s8385_s0 + $0x378] sm:$0xff]  ;;  %v205_v19 = vld [vmem:[%s8385_s0 + $0x580] sm:$0xff]  ;;  %v5461_v21 = vpack.c.bf16 %v108_v14, %v107_v13  ;;  %v5512_v23 = vpack.c.bf16 %v174_v18, %v173_v17 }
  0x5d   :  { %v206_v20 = vld [vmem:[%s8385_s0 + $0x588] sm:$0xff]  ;;  %v5509_v22 = vpack.c.bf16 %v140_v16, %v139_v15  ;;  %v157_v25 = vld [vmem:[%s8385_s0 + $0x400] sm:$0xff]  ;;  %v175_v29 = vld [vmem:[%s8385_s0 + $0x490] sm:$0xff] }
  0x5e   :  { %v5560_v24 = vpack.c.bf16 %v206_v20, %v205_v19  ;;  %v158_v26 = vld [vmem:[%s8385_s0 + $0x408] sm:$0xff]  ;;  %v189_v27 = vld [vmem:[%s8385_s0 + $0x500] sm:$0xff]  ;;  %v176_v30 = vld [vmem:[%s8385_s0 + $0x498] sm:$0xff] }
  0x5f   :  { %v190_v28 = vld [vmem:[%s8385_s0 + $0x508] sm:$0xff]  ;;  %v207_v31 = vld [vmem:[%s8385_s0 + $0x590] sm:$0xff]  ;;  %v160_v38 = vld [vmem:[%s8385_s0 + $0x418] sm:$0xff] }
  0x60   :  { %v159_v37 = vld [vmem:[%s8385_s0 + $0x410] sm:$0xff]  ;;  %v192_v40 = vld [vmem:[%s8385_s0 + $0x518] sm:$0xff]  ;;  %v177_v41 = vld [vmem:[%s8385_s0 + $0x4a0] sm:$0xff] }
  0x61   :  { %5439 = vmatpush3.bf16.xpose.msk.msra.mxu0 %vm6180_vm1, %v5437_v32  ;;  %5487 = vmatpush3.bf16.xpose.msk.msra.mxu1 %vm6180_vm1, %v5485_v33  ;;  %v208_v32 = vld [vmem:[%s8385_s0 + $0x598] sm:$0xff]  ;;  %v5515_v33 = vpack.c.bf16 %v158_v26, %v157_v25  ;;  %v191_v39 = vld [vmem:[%s8385_s0 + $0x510] sm:$0xff]  ;;  %v178_v42 = vld [vmem:[%s8385_s0 + $0x4a8] sm:$0xff] }
  0x62   :  { %5442 = vmatprep.subr.msk.bf16.mxu0 %vm6180_vm1, %v5440_v34  ;;  %5490 = vmatprep.subr.msk.bf16.mxu1 %vm6180_vm1, %v5488_v35  ;;  %v5563_v34 = vpack.c.bf16 %v190_v28, %v189_v27  ;;  %v5518_v35 = vpack.c.bf16 %v176_v30, %v175_v29  ;;  %v5566_v36 = vpack.c.bf16 %v208_v32, %v207_v31  ;;  %v209_v43 = vld [vmem:[%s8385_s0 + $0x5a0] sm:$0xff]  ;;  %v162_v51 = vld [vmem:[%s8385_s0 + $0x428] sm:$0xff]  ;;  %v179_v54 = vld [vmem:[%s8385_s0 + $0x4b0] sm:$0xff] }
  0x63   :  { %v161_v50 = vld [vmem:[%s8385_s0 + $0x420] sm:$0xff]  ;;  %v194_v53 = vld [vmem:[%s8385_s0 + $0x528] sm:$0xff]  ;;  %v180_v55 = vld [vmem:[%s8385_s0 + $0x4b8] sm:$0xff] }
  0x64   :  { %v193_v52 = vld [vmem:[%s8385_s0 + $0x520] sm:$0xff]  ;;  %v211_v57 = vld [vmem:[%s8385_s0 + $0x5b0] sm:$0xff]  ;;  %v164_v1 = vld [vmem:[%s8385_s0 + $0x438] sm:$0xff] }
  0x65   :  { %v163_v63 = vld [vmem:[%s8385_s0 + $0x430] sm:$0xff]  ;;  %v196_v3 = vld [vmem:[%s8385_s0 + $0x538] sm:$0xff]  ;;  %v181_v4 = vld [vmem:[%s8385_s0 + $0x4c0] sm:$0xff] }
  0x66   :  { %v195_v2 = vld [vmem:[%s8385_s0 + $0x530] sm:$0xff]  ;;  %v182_v6 = vld [vmem:[%s8385_s0 + $0x4c8] sm:$0xff]  ;;  %v213_v7 = vld [vmem:[%s8385_s0 + $0x5c0] sm:$0xff] }
  0x67   :  { %v165_v14 = vld [vmem:[%s8385_s0 + $0x440] sm:$0xff]  ;;  %v166_v15 = vld [vmem:[%s8385_s0 + $0x448] sm:$0xff]  ;;  %v183_v18 = vld [vmem:[%s8385_s0 + $0x4d0] sm:$0xff] }
  0x68   :  { %v197_v16 = vld [vmem:[%s8385_s0 + $0x540] sm:$0xff]  ;;  %v198_v17 = vld [vmem:[%s8385_s0 + $0x548] sm:$0xff]  ;;  %v184_v19 = vld [vmem:[%s8385_s0 + $0x4d8] sm:$0xff] }
  0x69   :  { %5445 = vmatpush3.bf16.xpose.msk.msra.mxu0 %vm6180_vm1, %v5443_v44  ;;  %5493 = vmatpush3.bf16.xpose.msk.msra.mxu1 %vm6180_vm1, %v5491_v45  ;;  %v210_v44 = vld [vmem:[%s8385_s0 + $0x5a8] sm:$0xff]  ;;  %v5521_v45 = vpack.c.bf16 %v160_v38, %v159_v37  ;;  %v215_v20 = vld [vmem:[%s8385_s0 + $0x5d0] sm:$0xff]  ;;  %v168_v27 = vld [vmem:[%s8385_s0 + $0x458] sm:$0xff] }
  0x6a   :  { %5448 = vmatprep.subr.msk.bf16.mxu0 %vm6180_vm1, %v5446_v47  ;;  %5496 = vmatprep.subr.msk.bf16.mxu1 %vm6180_vm1, %v5494_v48  ;;  %v5569_v47 = vpack.c.bf16 %v192_v40, %v191_v39  ;;  %v5524_v48 = vpack.c.bf16 %v178_v42, %v177_v41  ;;  %v5572_v49 = vpack.c.bf16 %v210_v44, %v209_v43  ;;  %v167_v26 = vld [vmem:[%s8385_s0 + $0x450] sm:$0xff]  ;;  %v200_v29 = vld [vmem:[%s8385_s0 + $0x558] sm:$0xff]  ;;  %v185_v30 = vld [vmem:[%s8385_s0 + $0x4e0] sm:$0xff] }
  0x6b   :  { %v199_v28 = vld [vmem:[%s8385_s0 + $0x550] sm:$0xff]  ;;  %v186_v31 = vld [vmem:[%s8385_s0 + $0x4e8] sm:$0xff]  ;;  %v217_v32 = vld [vmem:[%s8385_s0 + $0x5e0] sm:$0xff] }
  0x6c   :  { %v169_v38 = vld [vmem:[%s8385_s0 + $0x460] sm:$0xff]  ;;  %v170_v39 = vld [vmem:[%s8385_s0 + $0x468] sm:$0xff]  ;;  %v187_v42 = vld [vmem:[%s8385_s0 + $0x4f0] sm:$0xff] }
  0x6d   :  { %v201_v40 = vld [vmem:[%s8385_s0 + $0x560] sm:$0xff]  ;;  %v202_v41 = vld [vmem:[%s8385_s0 + $0x568] sm:$0xff]  ;;  %v188_v43 = vld [vmem:[%s8385_s0 + $0x4f8] sm:$0xff] }
  0x6e   :  { %v219_v44 = vld [vmem:[%s8385_s0 + $0x5f0] sm:$0xff] }
  0x71   :  { %5451 = vmatpush3.bf16.xpose.msk.msra.mxu0 %vm6180_vm1, %v5449_v58  ;;  %5499 = vmatpush3.bf16.xpose.msk.msra.mxu1 %vm6180_vm1, %v5497_v59  ;;  %v212_v58 = vld [vmem:[%s8385_s0 + $0x5b8] sm:$0xff]  ;;  %v5527_v59 = vpack.c.bf16 %v162_v51, %v161_v50  ;;  %v171_v51 = vld [vmem:[%s8385_s0 + $0x470] sm:$0xff] }
  0x72   :  { %5454 = vmatprep.subr.msk.bf16.mxu0 %vm6180_vm1, %v5452_v60  ;;  %5502 = vmatprep.subr.msk.bf16.mxu1 %vm6180_vm1, %v5500_v61  ;;  %v5575_v60 = vpack.c.bf16 %v194_v53, %v193_v52  ;;  %v5530_v61 = vpack.c.bf16 %v180_v55, %v179_v54  ;;  %v5578_v62 = vpack.c.bf16 %v212_v58, %v211_v57  ;;  %v172_v52 = vld [vmem:[%s8385_s0 + $0x478] sm:$0xff]  ;;  %v203_v53 = vld [vmem:[%s8385_s0 + $0x570] sm:$0xff]  ;;  %v237_v55 = vld [vmem:[%s8385_s0 + $0x680] sm:$0xff] }
  0x73   :  { %v204_v54 = vld [vmem:[%s8385_s0 + $0x578] sm:$0xff]  ;;  %v238_v57 = vld [vmem:[%s8385_s0 + $0x688] sm:$0xff]  ;;  %v269_v58 = vld [vmem:[%s8385_s0 + $0x780] sm:$0xff] }
  0x79   :  { %5457 = vmatpush3.bf16.xpose.msk.msra.mxu0 %vm6180_vm1, %v5455_v8  ;;  %5505 = vmatpush3.bf16.xpose.msk.msra.mxu1 %vm6180_vm1, %v5503_v10  ;;  %v214_v8 = vld [vmem:[%s8385_s0 + $0x5c8] sm:$0xff]  ;;  %v5533_v10 = vpack.c.bf16 %v164_v1, %v163_v63  ;;  %v221_v1 = vld [vmem:[%s8385_s0 + $0x600] sm:$0xff] }
  0x7a   :  { %5460 = vmatprep.subr.msk.bf16.mxu0 %vm6180_vm1, %v5458_v11  ;;  %5508 = vmatprep.subr.msk.bf16.mxu1 %vm6180_vm1, %v5506_v12  ;;  %v5581_v11 = vpack.c.bf16 %v196_v3, %v195_v2  ;;  %v5536_v12 = vpack.c.bf16 %v182_v6, %v181_v4  ;;  %v5584_v13 = vpack.c.bf16 %v214_v8, %v213_v7  ;;  %v222_v2 = vld [vmem:[%s8385_s0 + $0x608] sm:$0xff]  ;;  %v253_v3 = vld [vmem:[%s8385_s0 + $0x700] sm:$0xff]  ;;  %v239_v6 = vld [vmem:[%s8385_s0 + $0x690] sm:$0xff] }
  0x7b   :  { %v254_v4 = vld [vmem:[%s8385_s0 + $0x708] sm:$0xff]  ;;  %v240_v7 = vld [vmem:[%s8385_s0 + $0x698] sm:$0xff]  ;;  %v271_v8 = vld [vmem:[%s8385_s0 + $0x790] sm:$0xff] }
  0x81   :  { %5463 = vmatpush3.bf16.xpose.msk.msra.mxu0 %vm6180_vm1, %v5461_v21  ;;  %5511 = vmatpush3.bf16.xpose.msk.msra.mxu1 %vm6180_vm1, %v5509_v22  ;;  %v216_v21 = vld [vmem:[%s8385_s0 + $0x5d8] sm:$0xff]  ;;  %v5539_v22 = vpack.c.bf16 %v166_v15, %v165_v14  ;;  %v223_v15 = vld [vmem:[%s8385_s0 + $0x610] sm:$0xff] }
  0x82   :  { %5514 = vmatprep.subr.msk.bf16.mxu0 %vm6180_vm1, %v5512_v23  ;;  %5562 = vmatprep.subr.msk.bf16.mxu1 %vm6180_vm1, %v5560_v24  ;;  %v5587_v23 = vpack.c.bf16 %v198_v17, %v197_v16  ;;  %v5542_v24 = vpack.c.bf16 %v184_v19, %v183_v18  ;;  %v5590_v25 = vpack.c.bf16 %v216_v21, %v215_v20  ;;  %v224_v16 = vld [vmem:[%s8385_s0 + $0x618] sm:$0xff]  ;;  %v255_v17 = vld [vmem:[%s8385_s0 + $0x710] sm:$0xff]  ;;  %v241_v19 = vld [vmem:[%s8385_s0 + $0x6a0] sm:$0xff] }
  0x83   :  { %v256_v18 = vld [vmem:[%s8385_s0 + $0x718] sm:$0xff]  ;;  %v242_v20 = vld [vmem:[%s8385_s0 + $0x6a8] sm:$0xff]  ;;  %v273_v21 = vld [vmem:[%s8385_s0 + $0x7a0] sm:$0xff] }
  0x88   :  { %4953 = vmatmul.mubr.msk.f32.vlgmr.msra.gmra.mrb[8].mxu0 %vm441_vm0, %v6292_v46  ;;  %4993 = vmatmul.mubr.msk.f32.vlgmr.msra.gmra.mrb[8].mxu1 %vm441_vm0, %v6292_v46 }
  0x89   :  { %5517 = vmatpush3.bf16.xpose.msk.msra.mxu0 %vm6180_vm1, %v5515_v33  ;;  %5565 = vmatpush3.bf16.xpose.msk.msra.mxu1 %vm6180_vm1, %v5563_v34  ;;  %v218_v33 = vld [vmem:[%s8385_s0 + $0x5e8] sm:$0xff]  ;;  %v5545_v34 = vpack.c.bf16 %v168_v27, %v167_v26  ;;  %v225_v27 = vld [vmem:[%s8385_s0 + $0x620] sm:$0xff] }
  0x8a   :  { %4954 = vmatprep.mubr.msk.f32.mxu0 %vm441_vm0, %v6489_v56  ;;  %4994 = vmatprep.mubr.msk.f32.mxu1 %vm441_vm0, %v6489_v56  ;;  %v5596_v37 = vpack.c.bf16 %v218_v33, %v217_v32  ;;  %v244_v32 = vld [vmem:[%s8385_s0 + $0x6b8] sm:$0xff]  ;;  %v275_v33 = vld [vmem:[%s8385_s0 + $0x7b0] sm:$0xff] }
  0x8b   :  { %5520 = vmatprep.subr.msk.bf16.mxu0 %vm6180_vm1, %v5518_v35  ;;  %5568 = vmatprep.subr.msk.bf16.mxu1 %vm6180_vm1, %v5566_v36  ;;  %v5593_v35 = vpack.c.bf16 %v200_v29, %v199_v28  ;;  %v5548_v36 = vpack.c.bf16 %v186_v31, %v185_v30  ;;  %v226_v28 = vld [vmem:[%s8385_s0 + $0x628] sm:$0xff]  ;;  %v257_v29 = vld [vmem:[%s8385_s0 + $0x720] sm:$0xff]  ;;  %v243_v31 = vld [vmem:[%s8385_s0 + $0x6b0] sm:$0xff] }
  0x8c   :  { %4955 = vmatmul.mubr.msk.f32.gmra.mrb[10].mxu0 %vm441_vm0, %v6489_v56  ;;  %4995 = vmatmul.mubr.msk.f32.gmra.mrb[10].mxu1 %vm441_vm0, %v6489_v56  ;;  %v258_v30 = vld [vmem:[%s8385_s0 + $0x728] sm:$0xff] }
  0x8d   :  { %4956 = vmatprep.mubr.msk.f32.mxu0 %vm441_vm0, %v6521_v0  ;;  %4996 = vmatprep.mubr.msk.f32.mxu1 %vm441_vm0, %v6521_v0 }
  0x90   :  { %4957 = vmatmul.mubr.msk.f32.gmra.mrb[12].mxu0 %vm441_vm0, %v6521_v0  ;;  %4997 = vmatmul.mubr.msk.f32.gmra.mrb[12].mxu1 %vm441_vm0, %v6521_v0 }
  0x91   :  { %5523 = vmatpush3.bf16.xpose.msk.msra.mxu0 %vm6180_vm1, %v5521_v45  ;;  %5571 = vmatpush3.bf16.xpose.msk.msra.mxu1 %vm6180_vm1, %v5569_v47  ;;  %v220_v45 = vld [vmem:[%s8385_s0 + $0x5f8] sm:$0xff]  ;;  %v5551_v47 = vpack.c.bf16 %v170_v39, %v169_v38  ;;  %v227_v39 = vld [vmem:[%s8385_s0 + $0x630] sm:$0xff] }
  0x92   :  { %5526 = vmatprep.subr.msk.bf16.mxu0 %vm6180_vm1, %v5524_v48  ;;  %5574 = vmatprep.subr.msk.bf16.mxu1 %vm6180_vm1, %v5572_v49  ;;  %v5599_v48 = vpack.c.bf16 %v202_v41, %v201_v40  ;;  %v5554_v49 = vpack.c.bf16 %v188_v43, %v187_v42  ;;  %v5602_v50 = vpack.c.bf16 %v220_v45, %v219_v44  ;;  %v228_v40 = vld [vmem:[%s8385_s0 + $0x638] sm:$0xff]  ;;  %v245_v42 = vld [vmem:[%s8385_s0 + $0x6c0] sm:$0xff]  ;;  %v246_v43 = vld [vmem:[%s8385_s0 + $0x6c8] sm:$0xff] }
  0x93   :  { %4958 = vmatprep.mubr.msk.f32.mxu0 %vm441_vm0, %v6551_v9  ;;  %4998 = vmatprep.mubr.msk.f32.mxu1 %vm441_vm0, %v6551_v9  ;;  %v260_v41 = vld [vmem:[%s8385_s0 + $0x738] sm:$0xff]  ;;  %v277_v44 = vld [vmem:[%s8385_s0 + $0x7c0] sm:$0xff]  ;;  %v278_v45 = vld [vmem:[%s8385_s0 + $0x7c8] sm:$0xff] }
  0x94   :  { %4959 = vmatmul.mubr.msk.f32.gmra.mrb[14].mxu0 %vm441_vm0, %v6551_v9  ;;  %4999 = vmatmul.mubr.msk.f32.gmra.mrb[14].mxu1 %vm441_vm0, %v6551_v9 }
  0x95   :  { %5032 = vmatprep.mubr.msk.f32.mxu0 %vm441_vm0, %v6292_v46  ;;  %5072 = vmatprep.mubr.msk.f32.mxu1 %vm441_vm0, %v6292_v46 }
  0x99   :  { %5529 = vmatpush3.bf16.xpose.msk.msra.mxu0 %vm6180_vm1, %v5527_v59  ;;  %5577 = vmatpush3.bf16.xpose.msk.msra.mxu1 %vm6180_vm1, %v5575_v60  ;;  %v270_v59 = vld [vmem:[%s8385_s0 + $0x788] sm:$0xff]  ;;  %v5557_v60 = vpack.c.bf16 %v172_v52, %v171_v51  ;;  %v229_v51 = vld [vmem:[%s8385_s0 + $0x640] sm:$0xff] }
  0x9a   :  { %5532 = vmatprep.subr.msk.bf16.mxu0 %vm6180_vm1, %v5530_v61  ;;  %5580 = vmatprep.subr.msk.bf16.mxu1 %vm6180_vm1, %v5578_v62  ;;  %v5605_v61 = vpack.c.bf16 %v204_v54, %v203_v53  ;;  %v5608_v62 = vpack.c.bf16 %v238_v57, %v237_v55  ;;  %v5656_v63 = vpack.c.bf16 %v270_v59, %v269_v58  ;;  %v230_v52 = vld [vmem:[%s8385_s0 + $0x648] sm:$0xff]  ;;  %v261_v53 = vld [vmem:[%s8385_s0 + $0x740] sm:$0xff]  ;;  %v247_v55 = vld [vmem:[%s8385_s0 + $0x6d0] sm:$0xff] }
  0x9b   :  { %v262_v54 = vld [vmem:[%s8385_s0 + $0x748] sm:$0xff]  ;;  %v248_v57 = vld [vmem:[%s8385_s0 + $0x6d8] sm:$0xff]  ;;  %v279_v58 = vld [vmem:[%s8385_s0 + $0x7d0] sm:$0xff] }
  0x9c   :  { %v280_v59 = vld [vmem:[%s8385_s0 + $0x7d8] sm:$0xff] }
  0xa1   :  { %5535 = vmatpush3.bf16.xpose.msk.msra.mxu0 %vm6180_vm1, %v5533_v10  ;;  %5583 = vmatpush3.bf16.xpose.msk.msra.mxu1 %vm6180_vm1, %v5581_v11  ;;  %v272_v10 = vld [vmem:[%s8385_s0 + $0x798] sm:$0xff]  ;;  %v5611_v11 = vpack.c.bf16 %v222_v2, %v221_v1  ;;  %v231_v1 = vld [vmem:[%s8385_s0 + $0x650] sm:$0xff] }
  0xa2   :  { %5538 = vmatprep.subr.msk.bf16.mxu0 %vm6180_vm1, %v5536_v12  ;;  %5586 = vmatprep.subr.msk.bf16.mxu1 %vm6180_vm1, %v5584_v13  ;;  %v5659_v12 = vpack.c.bf16 %v254_v4, %v253_v3  ;;  %v5614_v13 = vpack.c.bf16 %v240_v7, %v239_v6  ;;  %v5662_v14 = vpack.c.bf16 %v272_v10, %v271_v8  ;;  %v232_v2 = vld [vmem:[%s8385_s0 + $0x658] sm:$0xff]  ;;  %v263_v3 = vld [vmem:[%s8385_s0 + $0x750] sm:$0xff]  ;;  %v249_v6 = vld [vmem:[%s8385_s0 + $0x6e0] sm:$0xff] }
  0xa3   :  { %v264_v4 = vld [vmem:[%s8385_s0 + $0x758] sm:$0xff]  ;;  %v250_v7 = vld [vmem:[%s8385_s0 + $0x6e8] sm:$0xff]  ;;  %v281_v8 = vld [vmem:[%s8385_s0 + $0x7e0] sm:$0xff] }
  0xa4   :  { %v282_v10 = vld [vmem:[%s8385_s0 + $0x7e8] sm:$0xff] }
  0xa9   :  { %5541 = vmatpush3.bf16.xpose.msk.msra.mxu0 %vm6180_vm1, %v5539_v22  ;;  %5589 = vmatpush3.bf16.xpose.msk.msra.mxu1 %vm6180_vm1, %v5587_v23  ;;  %v274_v22 = vld [vmem:[%s8385_s0 + $0x7a8] sm:$0xff]  ;;  %v5617_v23 = vpack.c.bf16 %v224_v16, %v223_v15  ;;  %v233_v15 = vld [vmem:[%s8385_s0 + $0x660] sm:$0xff] }
  0xaa   :  { %5544 = vmatprep.subr.msk.bf16.mxu0 %vm6180_vm1, %v5542_v24  ;;  %5592 = vmatprep.subr.msk.bf16.mxu1 %vm6180_vm1, %v5590_v25  ;;  %v5665_v24 = vpack.c.bf16 %v256_v18, %v255_v17  ;;  %v5620_v25 = vpack.c.bf16 %v242_v20, %v241_v19  ;;  %v5668_v26 = vpack.c.bf16 %v274_v22, %v273_v21  ;;  %v234_v16 = vld [vmem:[%s8385_s0 + $0x668] sm:$0xff]  ;;  %v265_v17 = vld [vmem:[%s8385_s0 + $0x760] sm:$0xff]  ;;  %v251_v19 = vld [vmem:[%s8385_s0 + $0x6f0] sm:$0xff] }
  0xab   :  { %v266_v18 = vld [vmem:[%s8385_s0 + $0x768] sm:$0xff]  ;;  %v252_v20 = vld [vmem:[%s8385_s0 + $0x6f8] sm:$0xff]  ;;  %v283_v21 = vld [vmem:[%s8385_s0 + $0x7f0] sm:$0xff] }
  0xac   :  { %v284_v22 = vld [vmem:[%s8385_s0 + $0x7f8] sm:$0xff] }
  0xb1   :  { %5547 = vmatpush3.bf16.xpose.msk.msra.mxu0 %vm6180_vm1, %v5545_v34  ;;  %5595 = vmatpush3.bf16.xpose.msk.msra.mxu1 %vm6180_vm1, %v5593_v35  ;;  %v276_v34 = vld [vmem:[%s8385_s0 + $0x7b8] sm:$0xff]  ;;  %v5623_v35 = vpack.c.bf16 %v226_v28, %v225_v27  ;;  %v235_v27 = vld [vmem:[%s8385_s0 + $0x670] sm:$0xff] }
  0xb2   :  { %5550 = vmatprep.subr.msk.bf16.mxu0 %vm6180_vm1, %v5548_v36  ;;  %5598 = vmatprep.subr.msk.bf16.mxu1 %vm6180_vm1, %v5596_v37  ;;  %v5671_v36 = vpack.c.bf16 %v258_v30, %v257_v29  ;;  %v5626_v37 = vpack.c.bf16 %v244_v32, %v243_v31  ;;  %v5674_v38 = vpack.c.bf16 %v276_v34, %v275_v33  ;;  %v236_v28 = vld [vmem:[%s8385_s0 + $0x678] sm:$0xff]  ;;  %v267_v29 = vld [vmem:[%s8385_s0 + $0x770] sm:$0xff]  ;;  %v301_v31 = vld [vmem:[%s8385_s0 + $0x880] sm:$0xff] }
  0xb3   :  { %v268_v30 = vld [vmem:[%s8385_s0 + $0x778] sm:$0xff]  ;;  %v302_v32 = vld [vmem:[%s8385_s0 + $0x888] sm:$0xff]  ;;  %v333_v33 = vld [vmem:[%s8385_s0 + $0x980] sm:$0xff] }
  0xb4   :  { %v334_v34 = vld [vmem:[%s8385_s0 + $0x988] sm:$0xff] }
  0xb9   :  { %5553 = vmatpush3.bf16.xpose.msk.msra.mxu0 %vm6180_vm1, %v5551_v47  ;;  %5601 = vmatpush3.bf16.xpose.msk.msra.mxu1 %vm6180_vm1, %v5599_v48  ;;  %v5629_v47 = vpack.c.bf16 %v228_v40, %v227_v39  ;;  %v285_v39 = vld [vmem:[%s8385_s0 + $0x800] sm:$0xff]  ;;  %v286_v40 = vld [vmem:[%s8385_s0 + $0x808] sm:$0xff] }
  0xba   :  { %5556 = vmatprep.subr.msk.bf16.mxu0 %vm6180_vm1, %v5554_v49  ;;  %5604 = vmatprep.subr.msk.bf16.mxu1 %vm6180_vm1, %v5602_v50  ;;  %v5632_v49 = vpack.c.bf16 %v246_v43, %v245_v42  ;;  %v5680_v50 = vpack.c.bf16 %v278_v45, %v277_v44  ;;  %v303_v42 = vld [vmem:[%s8385_s0 + $0x890] sm:$0xff]  ;;  %v304_v43 = vld [vmem:[%s8385_s0 + $0x898] sm:$0xff] }
  0xbb   :  { %v335_v44 = vld [vmem:[%s8385_s0 + $0x990] sm:$0xff]  ;;  %v336_v45 = vld [vmem:[%s8385_s0 + $0x998] sm:$0xff] }
  0xc1   :  { %5559 = vmatpush3.bf16.xpose.msk.msra.mxu0 %vm6180_vm1, %v5557_v60  ;;  %5607 = vmatpush3.bf16.xpose.msk.msra.mxu1 %vm6180_vm1, %v5605_v61  ;;  %v5635_v60 = vpack.c.bf16 %v230_v52, %v229_v51  ;;  %v5683_v61 = vpack.c.bf16 %v262_v54, %v261_v53  ;;  %v7374_v51 = vld [vmem:[%s8386_s1] sm:$0xff]  ;;  %v287_v52 = vld [vmem:[%s8385_s0 + $0x810] sm:$0xff]  ;;  %v288_v53 = vld [vmem:[%s8385_s0 + $0x818] sm:$0xff] }
  0xc2   :  { %5610 = vmatprep.subr.msk.bf16.mxu0 %vm6180_vm1, %v5608_v62  ;;  %5658 = vmatprep.subr.msk.bf16.mxu1 %vm6180_vm1, %v5656_v63  ;;  %v5638_v62 = vpack.c.bf16 %v248_v57, %v247_v55  ;;  %v5686_v63 = vpack.c.bf16 %v280_v59, %v279_v58  ;;  %v319_v54 = vld [vmem:[%s8385_s0 + $0x910] sm:$0xff]  ;;  %v320_v55 = vld [vmem:[%s8385_s0 + $0x918] sm:$0xff]  ;;  %v305_v57 = vld [vmem:[%s8385_s0 + $0x8a0] sm:$0xff] }
  0xc3   :  { %v306_v58 = vld [vmem:[%s8385_s0 + $0x8a8] sm:$0xff]  ;;  %v337_v59 = vld [vmem:[%s8385_s0 + $0x9a0] sm:$0xff] }
  0xc8   :  { %5033 = vmatmul.mubr.msk.f32.vlgmr.msra.gmra.mrb[16].mxu0 %vm441_vm0, %v6292_v46  ;;  %5073 = vmatmul.mubr.msk.f32.vlgmr.msra.gmra.mrb[16].mxu1 %vm441_vm0, %v6292_v46 }
  0xc9   :  { %5613 = vmatpush3.bf16.xpose.msk.msra.mxu0 %vm6180_vm1, %v5611_v11  ;;  %5661 = vmatpush3.bf16.xpose.msk.msra.mxu1 %vm6180_vm1, %v5659_v12  ;;  %v5641_v11 = vpack.c.bf16 %v232_v2, %v231_v1  ;;  %v5689_v12 = vpack.c.bf16 %v264_v4, %v263_v3  ;;  %v289_v1 = vld [vmem:[%s8385_s0 + $0x820] sm:$0xff]  ;;  %v290_v2 = vld [vmem:[%s8385_s0 + $0x828] sm:$0xff]  ;;  %v307_v4 = vld [vmem:[%s8385_s0 + $0x8b0] sm:$0xff] }
  0xca   :  { %5034 = vmatprep.mubr.msk.f32.mxu0 %vm441_vm0, %v6489_v56  ;;  %5074 = vmatprep.mubr.msk.f32.mxu1 %vm441_vm0, %v6489_v56  ;;  %v322_v3 = vld [vmem:[%s8385_s0 + $0x928] sm:$0xff] }
  0xcb   :  { %5616 = vmatprep.subr.msk.bf16.mxu0 %vm6180_vm1, %v5614_v13  ;;  %5664 = vmatprep.subr.msk.bf16.mxu1 %vm6180_vm1, %v5662_v14  ;;  %v5644_v13 = vpack.c.bf16 %v250_v7, %v249_v6  ;;  %v5692_v14 = vpack.c.bf16 %v282_v10, %v281_v8  ;;  %v308_v6 = vld [vmem:[%s8385_s0 + $0x8b8] sm:$0xff]  ;;  %v339_v7 = vld [vmem:[%s8385_s0 + $0x9b0] sm:$0xff]  ;;  %v5719_v10 = vpack.c.bf16 %v290_v2, %v289_v1 }
  0xcc   :  { %5035 = vmatmul.mubr.msk.f32.gmra.mrb[18].mxu0 %vm441_vm0, %v6489_v56  ;;  %5075 = vmatmul.mubr.msk.f32.gmra.mrb[18].mxu1 %vm441_vm0, %v6489_v56  ;;  %v340_v8 = vld [vmem:[%s8385_s0 + $0x9b8] sm:$0xff] }
  0xcd   :  { %5036 = vmatprep.mubr.msk.f32.mxu0 %vm441_vm0, %v6521_v0  ;;  %5076 = vmatprep.mubr.msk.f32.mxu1 %vm441_vm0, %v6521_v0 }
  0xd0   :  { %5037 = vmatmul.mubr.msk.f32.gmra.mrb[20].mxu0 %vm441_vm0, %v6521_v0  ;;  %5077 = vmatmul.mubr.msk.f32.gmra.mrb[20].mxu1 %vm441_vm0, %v6521_v0 }
  0xd1   :  { %5619 = vmatpush3.bf16.xpose.msk.msra.mxu0 %vm6180_vm1, %v5617_v23  ;;  %5667 = vmatpush3.bf16.xpose.msk.msra.mxu1 %vm6180_vm1, %v5665_v24  ;;  %v5647_v23 = vpack.c.bf16 %v234_v16, %v233_v15  ;;  %v5695_v24 = vpack.c.bf16 %v266_v18, %v265_v17  ;;  %v292_v15 = vld [vmem:[%s8385_s0 + $0x838] sm:$0xff]  ;;  %v323_v16 = vld [vmem:[%s8385_s0 + $0x930] sm:$0xff]  ;;  %v309_v18 = vld [vmem:[%s8385_s0 + $0x8c0] sm:$0xff] }
  0xd2   :  { %5038 = vmatprep.mubr.msk.f32.mxu0 %vm441_vm0, %v6551_v9  ;;  %5078 = vmatprep.mubr.msk.f32.mxu1 %vm441_vm0, %v6551_v9  ;;  %v324_v17 = vld [vmem:[%s8385_s0 + $0x938] sm:$0xff] }
  0xd3   :  { %5622 = vmatprep.subr.msk.bf16.mxu0 %vm6180_vm1, %v5620_v25  ;;  %5670 = vmatprep.subr.msk.bf16.mxu1 %vm6180_vm1, %v5668_v26  ;;  %v5650_v25 = vpack.c.bf16 %v252_v20, %v251_v19  ;;  %v5698_v26 = vpack.c.bf16 %v284_v22, %v283_v21  ;;  %v310_v21 = vld [vmem:[%s8385_s0 + $0x8c8] sm:$0xff]  ;;  %v341_v22 = vld [vmem:[%s8385_s0 + $0x9c0] sm:$0xff] }
  0xd4   :  { %5039 = vmatmul.mubr.msk.f32.gmra.mrb[22].mxu0 %vm441_vm0, %v6551_v9  ;;  %5079 = vmatmul.mubr.msk.f32.gmra.mrb[22].mxu1 %vm441_vm0, %v6551_v9 }
  0xd5   :  { %5112 = vmatprep.mubr.msk.f32.mxu0 %vm441_vm0, %v6292_v46  ;;  %5152 = vmatprep.mubr.msk.f32.mxu1 %vm441_vm0, %v6292_v46  ;;  %v259_v46 = vld [vmem:[%s8385_s0 + $0x730] sm:$0xff] }
  0xd6   :  { %v5677_v48 = vpack.c.bf16 %v260_v41, %v259_v46  ;;  %v317_v46 = vld [vmem:[%s8385_s0 + $0x900] sm:$0xff]  ;;  %v318_v41 = vld [vmem:[%s8385_s0 + $0x908] sm:$0xff] }
  0xd9   :  { %5625 = vmatpush3.bf16.xpose.msk.msra.mxu0 %vm6180_vm1, %v5623_v35  ;;  %5673 = vmatpush3.bf16.xpose.msk.msra.mxu1 %vm6180_vm1, %v5671_v36  ;;  %v5653_v35 = vpack.c.bf16 %v236_v28, %v235_v27  ;;  %v5701_v36 = vpack.c.bf16 %v268_v30, %v267_v29  ;;  %v5773_v28 = vpack.c.bf16 %v324_v17, %v323_v16  ;;  %v293_v29 = vld [vmem:[%s8385_s0 + $0x840] sm:$0xff]  ;;  %v294_v30 = vld [vmem:[%s8385_s0 + $0x848] sm:$0xff] }
  0xda   :  { %5628 = vmatprep.subr.msk.bf16.mxu0 %vm6180_vm1, %v5626_v37  ;;  %5676 = vmatprep.subr.msk.bf16.mxu1 %vm6180_vm1, %v5674_v38  ;;  %v5704_v37 = vpack.c.bf16 %v302_v32, %v301_v31  ;;  %v5752_v38 = vpack.c.bf16 %v334_v34, %v333_v33  ;;  %v5728_v33 = vpack.c.bf16 %v310_v21, %v309_v18 }
  0xe1   :  { %5631 = vmatpush3.bf16.xpose.msk.msra.mxu0 %vm6180_vm1, %v5629_v47  ;;  %5679 = vmatpush3.bf16.xpose.msk.msra.mxu1 %vm6180_vm1, %v5677_v48  ;;  %v5707_v47 = vpack.c.bf16 %v286_v40, %v285_v39  ;;  %v5755_v48 = vpack.c.bf16 %v318_v41, %v317_v46 }
  0xe2   :  { %5634 = vmatprep.subr.msk.bf16.mxu0 %vm6180_vm1, %v5632_v49  ;;  %5682 = vmatprep.subr.msk.bf16.mxu1 %vm6180_vm1, %v5680_v50  ;;  %v5710_v49 = vpack.c.bf16 %v304_v43, %v303_v42  ;;  %v5758_v50 = vpack.c.bf16 %v336_v45, %v335_v44  ;;  %v5731_v45 = vpack.c.bf16 %v294_v30, %v293_v29 }
  0xe9   :  { %5637 = vmatpush3.bf16.xpose.msk.msra.mxu0 %vm6180_vm1, %v5635_v60  ;;  %5685 = vmatpush3.bf16.xpose.msk.msra.mxu1 %vm6180_vm1, %v5683_v61  ;;  %v338_v60 = vld [vmem:[%s8385_s0 + $0x9a8] sm:$0xff]  ;;  %v5713_v61 = vpack.c.bf16 %v288_v53, %v287_v52  ;;  %v312_v52 = vld [vmem:[%s8385_s0 + $0x8d8] sm:$0xff] }
  0xea   :  { %5640 = vmatprep.subr.msk.bf16.mxu0 %vm6180_vm1, %v5638_v62  ;;  %5688 = vmatprep.subr.msk.bf16.mxu1 %vm6180_vm1, %v5686_v63  ;;  %v5716_v62 = vpack.c.bf16 %v306_v58, %v305_v57  ;;  %v5764_v63 = vpack.c.bf16 %v338_v60, %v337_v59  ;;  %v343_v58 = vld [vmem:[%s8385_s0 + $0x9d0] sm:$0xff]  ;;  %v344_v59 = vld [vmem:[%s8385_s0 + $0x9d8] sm:$0xff] }
  0xf1   :  { %5643 = vmatpush3.bf16.xpose.msk.msra.mxu0 %vm6180_vm1, %v5641_v11  ;;  %5691 = vmatpush3.bf16.xpose.msk.msra.mxu1 %vm6180_vm1, %v5689_v12  ;;  %v5722_v12 = vpack.c.bf16 %v308_v6, %v307_v4 }
  0xf2   :  { %5646 = vmatprep.subr.msk.bf16.mxu0 %vm6180_vm1, %v5644_v13  ;;  %5694 = vmatprep.subr.msk.bf16.mxu1 %vm6180_vm1, %v5692_v14  ;;  %v5770_v13 = vpack.c.bf16 %v340_v8, %v339_v7  ;;  %v7472_v14 = vpop.permute.xlu0 %423 }
  0xf9   :  { %5649 = vmatpush3.bf16.xpose.msk.msra.mxu0 %vm6180_vm1, %v5647_v23  ;;  %5697 = vmatpush3.bf16.xpose.msk.msra.mxu1 %vm6180_vm1, %v5695_v24  ;;  %v342_v23 = vld [vmem:[%s8385_s0 + $0x9c8] sm:$0xff] }
  0xfa   :  { %5652 = vmatprep.subr.msk.bf16.mxu0 %vm6180_vm1, %v5650_v25  ;;  %5700 = vmatprep.subr.msk.bf16.mxu1 %vm6180_vm1, %v5698_v26  ;;  %v7506_v26 = vpop.permute.xlu0 %428  ;;  %v5776_v34 = vpack.c.bf16 %v342_v23, %v341_v22 }
 0x101   :  { %5655 = vmatpush3.bf16.xpose.msk.msra.mxu0 %vm6180_vm1, %v5653_v35  ;;  %5703 = vmatpush3.bf16.xpose.msk.msra.mxu1 %vm6180_vm1, %v5701_v36  ;;  %v325_v35 = vld [vmem:[%s8385_s0 + $0x940] sm:$0xff]  ;;  %v326_v36 = vld [vmem:[%s8385_s0 + $0x948] sm:$0xff] }
 0x102   :  { %5706 = vmatprep.subr.msk.bf16.mxu0 %vm6180_vm1, %v5704_v37  ;;  %5754 = vmatprep.subr.msk.bf16.mxu1 %vm6180_vm1, %v5752_v38  ;;  %v7522_v37 = vpop.permute.xlu1 %433 }
 0x108   :  { %5113 = vmatmul.mubr.msk.f32.vlgmr.msra.gmra.mrb[24].mxu0 %vm441_vm0, %v7374_v51  ;;  %5153 = vmatmul.mubr.msk.f32.vlgmr.msra.gmra.mrb[24].mxu1 %vm441_vm0, %v7374_v51 }
 0x109   :  { %5709 = vmatpush3.bf16.xpose.msk.msra.mxu0 %vm6180_vm1, %v5707_v47  ;;  %5757 = vmatpush3.bf16.xpose.msk.msra.mxu1 %vm6180_vm1, %v5755_v48 }
 0x10a   :  { %5114 = vmatprep.mubr.msk.f32.mxu0 %vm441_vm0, %v6489_v56  ;;  %5154 = vmatprep.mubr.msk.f32.mxu1 %vm441_vm0, %v6489_v56 }
 0x10b   :  { %5712 = vmatprep.subr.msk.bf16.mxu0 %vm6180_vm1, %v5710_v49  ;;  %5760 = vmatprep.subr.msk.bf16.mxu1 %vm6180_vm1, %v5758_v50  ;;  %v5779_v49 = vpack.c.bf16 %v326_v36, %v325_v35  ;;  %v311_v50 = vld [vmem:[%s8385_s0 + $0x8d0] sm:$0xff]  ;;  %v314_v36 = vld [vmem:[%s8385_s0 + $0x8e8] sm:$0xff] }
 0x10c   :  { %5115 = vmatmul.mubr.msk.f32.gmra.mrb[26].mxu0 %vm441_vm0, %v6489_v56  ;;  %5155 = vmatmul.mubr.msk.f32.gmra.mrb[26].mxu1 %vm441_vm0, %v6489_v56  ;;  %v5761_v56 = vpack.c.bf16 %v320_v55, %v319_v54 }
 0x10d   :  { %5116 = vmatprep.mubr.msk.f32.mxu0 %vm441_vm0, %v6521_v0  ;;  %5156 = vmatprep.mubr.msk.f32.mxu1 %vm441_vm0, %v6521_v0 }
 0x110   :  { %5117 = vmatmul.mubr.msk.f32.gmra.mrb[28].mxu0 %vm441_vm0, %v6521_v0  ;;  %5157 = vmatmul.mubr.msk.f32.gmra.mrb[28].mxu1 %vm441_vm0, %v6521_v0  ;;  %v321_v0 = vld [vmem:[%s8385_s0 + $0x920] sm:$0xff] }
 0x111   :  { %5715 = vmatpush3.bf16.xpose.msk.msra.mxu0 %vm6180_vm1, %v5713_v61  ;;  %5763 = vmatpush3.bf16.xpose.msk.msra.mxu1 %vm6180_vm1, %v5761_v56  ;;  %v5767_v11 = vpack.c.bf16 %v322_v3, %v321_v0 }
 0x112   :  { %5118 = vmatprep.mubr.msk.f32.mxu0 %vm441_vm0, %v6551_v9  ;;  %5158 = vmatprep.mubr.msk.f32.mxu1 %vm441_vm0, %v6551_v9 }
 0x113   :  { %5718 = vmatprep.subr.msk.bf16.mxu0 %vm6180_vm1, %v5716_v62  ;;  %5766 = vmatprep.subr.msk.bf16.mxu1 %vm6180_vm1, %v5764_v63 }
 0x114   :  { %5119 = vmatmul.mubr.msk.f32.gmra.mrb[30].mxu0 %vm441_vm0, %v6551_v9  ;;  %5159 = vmatmul.mubr.msk.f32.gmra.mrb[30].mxu1 %vm441_vm0, %v6551_v9  ;;  %v291_v9 = vld [vmem:[%s8385_s0 + $0x830] sm:$0xff] }
 0x115   :  { %5192 = vmatprep.mubr.msk.f32.mxu0 %vm441_vm0, %v7374_v51  ;;  %5232 = vmatprep.mubr.msk.f32.mxu1 %vm441_vm0, %v7374_v51  ;;  %v5725_v27 = vpack.c.bf16 %v292_v15, %v291_v9  ;;  %v5734_v9 = vpack.c.bf16 %v312_v52, %v311_v50  ;;  %v5782_v15 = vpack.c.bf16 %v344_v59, %v343_v58  ;;  %v3764_v52 = vld [vmem:[%s8390_s5] sm:$0xff]  ;;  %v315_v58 = vld [vmem:[%s8385_s0 + $0x8f0] sm:$0xff]  ;;  %v316_v59 = vld [vmem:[%s8385_s0 + $0x8f8] sm:$0xff] }
 0x119   :  { %5721 = vmatpush3.bf16.xpose.msk.msra.mxu0 %vm6180_vm1, %v5719_v10  ;;  %5769 = vmatpush3.bf16.xpose.msk.msra.mxu1 %vm6180_vm1, %v5767_v11 }
 0x11a   :  { %5724 = vmatprep.subr.msk.bf16.mxu0 %vm6180_vm1, %v5722_v12  ;;  %5772 = vmatprep.subr.msk.bf16.mxu1 %vm6180_vm1, %v5770_v13  ;;  %v1672_v19 = vpop.f32.mrb[0].mxu0  ;;  %v7562_v13 = vpop.permute.xlu1 %438 }
 0x11b   :  { %v1761_v20 = vpop.f32.mrb[0].mxu1  ;;  %v1674_v24 = vpop.f32.mrb[1].mxu0  ;;  %v1673_v31 = vadd.f32 %v1672_v19, %v7472_v14 }
 0x11c   :  { %v1763_v25 = vpop.f32.mrb[1].mxu1  ;;  %v1762_v32 = vadd.f32 %v1761_v20, %v7472_v14  ;;  %v1675_v38 = vadd.f32 %v1674_v24, %v7472_v14  ;;  %v295_v24 = vld [vmem:[%s8385_s0 + $0x850] sm:$0xff] }
 0x11d   :  { %v1764_v39 = vadd.f32 %v1763_v25, %v7472_v14  ;;  %v2674_v53 = vmax.f32 %v1673_v31, 0.0  ;;  %v296_v25 = vld [vmem:[%s8385_s0 + $0x858] sm:$0xff]  ;;  %v327_v31 = vld [vmem:[%s8385_s0 + $0x950] sm:$0xff] }
 0x11e   :  { %v2676_v54 = vmax.f32 %v1762_v32, 0.0  ;;  %v2675_v60 = vmax.f32 %v1675_v38, 0.0  ;;  %v328_v32 = vld [vmem:[%s8385_s0 + $0x958] sm:$0xff]  ;;  %v345_v38 = vld [vmem:[%s8385_s0 + $0x9e0] sm:$0xff] }
 0x11f   :  { %v1678_v40 = vpop.f32.mrb[2].mxu0  ;;  %v1767_v46 = vpop.f32.mrb[2].mxu1  ;;  %v2677_v61 = vmax.f32 %v1764_v39, 0.0  ;;  %v346_v39 = vld [vmem:[%s8385_s0 + $0x9e8] sm:$0xff] }
 0x120   :  { %v1679_v41 = vadd.f32 %v1678_v40, %v7506_v26  ;;  %v1768_v42 = vadd.f32 %v1767_v46, %v7506_v26  ;;  %v1680_v43 = vpop.f32.mrb[3].mxu0  ;;  %v1769_v44 = vpop.f32.mrb[3].mxu1  ;;  %v5788_v50 = vpack.c.bf16 %v346_v39, %v345_v38  ;;  %v7730_v38 = vld [vmem:[%s8386_s1 + $0x8] sm:$0xff]  ;;  %v352_v39 = vld [vmem:[%s8385_s0 + $0xa18] sm:$0xff] }
 0x121   :  { %v1681_v47 = vadd.f32 %v1680_v43, %v7506_v26  ;;  %v1770_v48 = vadd.f32 %v1769_v44, %v7506_v26  ;;  %5727 = vmatpush3.bf16.xpose.msk.msra.mxu0 %vm6180_vm1, %v5725_v27  ;;  %5775 = vmatpush3.bf16.xpose.msk.msra.mxu1 %vm6180_vm1, %v5773_v28  ;;  %v5737_v43 = vpack.c.bf16 %v296_v25, %v295_v24  ;;  %v350_v24 = vld [vmem:[%s8385_s0 + $0xa08] sm:$0xff]  ;;  %v381_v25 = vld [vmem:[%s8385_s0 + $0xb00] sm:$0xff] }
 0x122   :  { %v2698_v55 = vmax.f32 %v1679_v41, 0.0  ;;  %v2700_v57 = vmax.f32 %v1768_v42, 0.0  ;;  %5730 = vmatprep.subr.msk.bf16.mxu0 %vm6180_vm1, %v5728_v33  ;;  %5778 = vmatprep.subr.msk.bf16.mxu1 %vm6180_vm1, %v5776_v34  ;;  %v313_v33 = vld [vmem:[%s8385_s0 + $0x8e0] sm:$0xff]  ;;  %v5785_v44 = vpack.c.bf16 %v328_v32, %v327_v31  ;;  %v400_v31 = vld [vmem:[%s8385_s0 + $0xb98] sm:$0xff] }
 0x123   :  { %v2699_v56 = vmax.f32 %v1681_v47, 0.0  ;;  %v2701_v62 = vmax.f32 %v1770_v48, 0.0  ;;  %v1684_v63 = vpop.f32.mrb[4].mxu0  ;;  %v1773_v1 = vpop.f32.mrb[4].mxu1  ;;  %v2772_v48 = vld [vmem:[%s8389_s4] sm:$0xff] }
 0x124   :  { %v7550_v2 = vpack.c.bf16 %v2698_v55, %v2674_v53  ;;  %v7552_v0 = vpack.c.bf16 %v2700_v57, %v2676_v54  ;;  %v1685_v3 = vadd.f32 %v1684_v63, %v7522_v37  ;;  %v1774_v4 = vadd.f32 %v1773_v1, %v7522_v37  ;;  %v1686_v6 = vpop.f32.mrb[5].mxu0  ;;  %v1775_v7 = vpop.f32.mrb[5].mxu1  ;;  %2776 = vperm.xlu0 %5996, %v2772_v48   ;;  %v297_v53 = vld [vmem:[%s8385_s0 + $0x860] sm:$0xff]  ;;  %v298_v54 = vld [vmem:[%s8385_s0 + $0x868] sm:$0xff] }
 0x125   :  { %v7556_v8 = vpack.c.bf16 %v2699_v56, %v2675_v60  ;;  %v7558_v10 = vpack.c.bf16 %v2701_v62, %v2677_v61  ;;  %v1687_v11 = vadd.f32 %v1686_v6, %v7522_v37  ;;  %v1776_v12 = vadd.f32 %v1775_v7, %v7522_v37  ;;  %v329_v55 = vld [vmem:[%s8385_s0 + $0x960] sm:$0xff]  ;;  %v330_v57 = vld [vmem:[%s8385_s0 + $0x968] sm:$0xff]  ;;  %v347_v60 = vld [vmem:[%s8385_s0 + $0x9f0] sm:$0xff] }
 0x126   :  { %v2722_v18 = vmax.f32 %v1685_v3, 0.0  ;;  %v2724_v19 = vmax.f32 %v1774_v4, 0.0  ;;  %v348_v61 = vld [vmem:[%s8385_s0 + $0x9f8] sm:$0xff]  ;;  %v2773_v56 = vld [vmem:[%s8389_s4 + $0x8] sm:$0xff]  ;;  %v3763_v62 = vld [vmem:[#allocation2] sm:$0x1]  ;;  %v5743_v63 = vpack.c.bf16 %v298_v54, %v297_v53  ;;  %v5791_v1 = vpack.c.bf16 %v330_v57, %v329_v55 }
 0x127   :  { %v1690_v16 = vpop.f32.mrb[6].mxu0  ;;  %v1779_v17 = vpop.f32.mrb[6].mxu1  ;;  %v2723_v27 = vmax.f32 %v1687_v11, 0.0  ;;  %v2725_v28 = vmax.f32 %v1776_v12, 0.0  ;;  %2781 = vperm.xlu1 %5997, %v2773_v56   ;;  %v5746_v3 = vpack.c.bf16 %v316_v59, %v315_v58  ;;  %v5794_v4 = vpack.c.bf16 %v348_v61, %v347_v60  ;;  %v3765_v6 = vld [vmem:[%s8390_s5 + $0x8] sm:$0xff]  ;;  %v299_v7 = vld [vmem:[%s8385_s0 + $0x870] sm:$0xff] }
 0x128   :  { %v1692_v20 = vpop.f32.mrb[7].mxu0  ;;  %v1781_v21 = vpop.f32.mrb[7].mxu1  ;;  %v1691_v22 = vadd.f32 %v1690_v16, %v7562_v13  ;;  %v1780_v23 = vadd.f32 %v1779_v17, %v7562_v13  ;;  %3768 = vperm.xlu0 %5996, %v3764_v52   ;;  %v300_v11 = vld [vmem:[%s8385_s0 + $0x878] sm:$0xff]  ;;  %v331_v12 = vld [vmem:[%s8385_s0 + $0x970] sm:$0xff]  ;;  %v366_v16 = vld [vmem:[%s8385_s0 + $0xa88] sm:$0xff] }
 0x129   :  { %5733 = vmatpush3.bf16.xpose.msk.msra.mxu0 %vm6180_vm1, %v5731_v45  ;;  %5781 = vmatpush3.bf16.xpose.msk.msra.mxu1 %vm6180_vm1, %v5779_v49  ;;  %v1693_v29 = vadd.f32 %v1692_v20, %v7562_v13  ;;  %v1782_v30 = vadd.f32 %v1781_v21, %v7562_v13  ;;  %v5740_v49 = vpack.c.bf16 %v314_v36, %v313_v33  ;;  %v397_v17 = vld [vmem:[%s8385_s0 + $0xb80] sm:$0xff]  ;;  %v351_v36 = vld [vmem:[%s8385_s0 + $0xa10] sm:$0xff]  ;;  %v354_v58 = vld [vmem:[%s8385_s0 + $0xa28] sm:$0xff] }
 0x12a   :  { %5736 = vmatprep.subr.msk.bf16.mxu0 %vm6180_vm1, %v5734_v9  ;;  %5784 = vmatprep.subr.msk.bf16.mxu1 %vm6180_vm1, %v5782_v15  ;;  %v2746_v34 = vmax.f32 %v1691_v22, 0.0  ;;  %v2748_v35 = vmax.f32 %v1780_v23, 0.0  ;;  %v332_v9 = vld [vmem:[%s8385_s0 + $0x978] sm:$0xff]  ;;  %v365_v15 = vld [vmem:[%s8385_s0 + $0xa80] sm:$0xff]  ;;  %v5809_v52 = vpack.c.bf16 %v352_v39, %v351_v36  ;;  %v386_v61 = vld [vmem:[%s8385_s0 + $0xb28] sm:$0xff] }
 0x12b   :  { %v2747_v40 = vmax.f32 %v1693_v29, 0.0  ;;  %v2749_v46 = vmax.f32 %v1782_v30, 0.0  ;;  %3773 = vperm.xlu1 %5997, %v3765_v6   ;;  %v5797_v20 = vpack.c.bf16 %v332_v9, %v331_v12  ;;  %v5800_v21 = vpack.c.bf16 %v366_v16, %v365_v15  ;;  %v349_v23 = vld [vmem:[%s8385_s0 + $0xa00] sm:$0xff]  ;;  %v368_v29 = vld [vmem:[%s8385_s0 + $0xa98] sm:$0xff]  ;;  %v399_v30 = vld [vmem:[%s8385_s0 + $0xb90] sm:$0xff] }
 0x12c   :  { %v7600_v41 = vpack.c.bf16 %v2746_v34, %v2722_v18  ;;  %v7602_v42 = vpack.c.bf16 %v2748_v35, %v2724_v19  ;;  %3994 = vperm.xlu0 %5996, %v3763_v62   ;;  %v398_v18 = vld [vmem:[%s8385_s0 + $0xb88] sm:$0xff]  ;;  %v5749_v19 = vpack.c.bf16 %v300_v11, %v299_v7  ;;  %v5803_v32 = vpack.c.bf16 %v350_v24, %v349_v23  ;;  %v401_v48 = vld [vmem:[%s8385_s0 + $0xba0] sm:$0xff]  ;;  %v7791_v59 = vld [vmem:[%s8386_s1 + $0x18] sm:$0xff] }
 0x12d   :  { %v7604_v45 = vpack.c.bf16 %v2747_v40, %v2723_v27  ;;  %v7606_v47 = vpack.c.bf16 %v2749_v46, %v2725_v28  ;;  %v5848_v22 = vpack.c.bf16 %v398_v18, %v397_v17  ;;  %v382_v27 = vld [vmem:[%s8385_s0 + $0xb08] sm:$0xff]  ;;  %v367_v28 = vld [vmem:[%s8385_s0 + $0xa90] sm:$0xff]  ;;  %v5854_v35 = vpack.c.bf16 %v400_v31, %v399_v30  ;;  %v384_v46 = vld [vmem:[%s8385_s0 + $0xb18] sm:$0xff] }
 0x12e   :  { %v5851_v33 = vpack.c.bf16 %v382_v27, %v381_v25  ;;  %v5806_v34 = vpack.c.bf16 %v368_v29, %v367_v28  ;;  %v383_v40 = vld [vmem:[%s8385_s0 + $0xb10] sm:$0xff]  ;;  %v353_v57 = vld [vmem:[%s8385_s0 + $0xa20] sm:$0xff]  ;;  %v372_v62 = vld [vmem:[%s8385_s0 + $0xab8] sm:$0xff] }
 0x12f   :  { %v5857_v53 = vpack.c.bf16 %v384_v46, %v383_v40  ;;  %v385_v60 = vld [vmem:[%s8385_s0 + $0xb20] sm:$0xff]  ;;  %v371_v56 = vld [vmem:[%s8385_s0 + $0xab0] sm:$0xff]  ;;  %v356_v12 = vld [vmem:[%s8385_s0 + $0xa38] sm:$0xff] }
 0x130   :  { %v5818_v6 = vpack.c.bf16 %v372_v62, %v371_v56  ;;  %v355_v11 = vld [vmem:[%s8385_s0 + $0xa30] sm:$0xff]  ;;  %v388_v15 = vld [vmem:[%s8385_s0 + $0xb38] sm:$0xff]  ;;  %v373_v16 = vld [vmem:[%s8385_s0 + $0xac0] sm:$0xff] }
 0x131   :  { %5739 = vmatpush3.bf16.xpose.msk.msra.mxu0 %vm6180_vm1, %v5737_v43  ;;  %5787 = vmatpush3.bf16.xpose.msk.msra.mxu1 %vm6180_vm1, %v5785_v44  ;;  %v369_v43 = vld [vmem:[%s8385_s0 + $0xaa0] sm:$0xff]  ;;  %v370_v44 = vld [vmem:[%s8385_s0 + $0xaa8] sm:$0xff]  ;;  %v387_v9 = vld [vmem:[%s8385_s0 + $0xb30] sm:$0xff]  ;;  %v5821_v24 = vpack.c.bf16 %v356_v12, %v355_v11 }
 0x132   :  { %5742 = vmatprep.subr.msk.bf16.mxu0 %vm6180_vm1, %v5740_v49  ;;  %5790 = vmatprep.subr.msk.bf16.mxu1 %vm6180_vm1, %v5788_v50  ;;  %v402_v49 = vld [vmem:[%s8385_s0 + $0xba8] sm:$0xff]  ;;  %v7768_v50 = vld [vmem:[%s8386_s1 + $0x10] sm:$0xff]  ;;  %v5812_v54 = vpack.c.bf16 %v370_v44, %v369_v43  ;;  %v5869_v25 = vpack.c.bf16 %v388_v15, %v387_v9  ;;  %v357_v27 = vld [vmem:[%s8385_s0 + $0xa40] sm:$0xff] }
 0x133   :  { %v5860_v55 = vpack.c.bf16 %v402_v49, %v401_v48  ;;  %v358_v28 = vld [vmem:[%s8385_s0 + $0xa48] sm:$0xff]  ;;  %v407_v62 = vld [vmem:[%s8385_s0 + $0xbd0] sm:$0xff] }
 0x134   :  { %v5827_v49 = vpack.c.bf16 %v358_v28, %v357_v27 }
 0x139   :  { %5745 = vmatpush3.bf16.xpose.msk.msra.mxu0 %vm6180_vm1, %v5743_v63  ;;  %5793 = vmatpush3.bf16.xpose.msk.msra.mxu1 %vm6180_vm1, %v5791_v1  ;;  %v403_v63 = vld [vmem:[%s8385_s0 + $0xbb0] sm:$0xff]  ;;  %v404_v1 = vld [vmem:[%s8385_s0 + $0xbb8] sm:$0xff] }
 0x13a   :  { %5748 = vmatprep.subr.msk.bf16.mxu0 %vm6180_vm1, %v5746_v3  ;;  %5796 = vmatprep.subr.msk.bf16.mxu1 %vm6180_vm1, %v5794_v4  ;;  %v5815_v3 = vpack.c.bf16 %v354_v58, %v353_v57  ;;  %v5863_v4 = vpack.c.bf16 %v386_v61, %v385_v60  ;;  %v5866_v7 = vpack.c.bf16 %v404_v1, %v403_v63  ;;  %v376_v57 = vld [vmem:[%s8385_s0 + $0xad8] sm:$0xff] }
 0x13b   :  { %v408_v63 = vld [vmem:[%s8385_s0 + $0xbd8] sm:$0xff] }
 0x141   :  { %5751 = vmatpush3.bf16.xpose.msk.msra.mxu0 %vm6180_vm1, %v5749_v19  ;;  %5799 = vmatpush3.bf16.xpose.msk.msra.mxu1 %vm6180_vm1, %v5797_v20  ;;  %v374_v19 = vld [vmem:[%s8385_s0 + $0xac8] sm:$0xff]  ;;  %v405_v20 = vld [vmem:[%s8385_s0 + $0xbc0] sm:$0xff] }
 0x142   :  { %5802 = vmatprep.subr.msk.bf16.mxu0 %vm6180_vm1, %v5800_v21  ;;  %5850 = vmatprep.subr.msk.bf16.mxu1 %vm6180_vm1, %v5848_v22  ;;  %v406_v21 = vld [vmem:[%s8385_s0 + $0xbc8] sm:$0xff]  ;;  %v5824_v31 = vpack.c.bf16 %v374_v19, %v373_v16 }
 0x148   :  { %5193 = vmatmul.mubr.msk.f32.vlgmr.msra.gmra.mrb[32].mxu0 %vm441_vm0, %v7374_v51  ;;  %5233 = vmatmul.mubr.msk.f32.vlgmr.msra.gmra.mrb[32].mxu1 %vm441_vm0, %v7374_v51 }
 0x149   :  { %5805 = vmatpush3.bf16.xpose.msk.msra.mxu0 %vm6180_vm1, %v5803_v32  ;;  %5853 = vmatpush3.bf16.xpose.msk.msra.mxu1 %vm6180_vm1, %v5851_v33  ;;  %v5872_v32 = vpack.c.bf16 %v406_v21, %v405_v20  ;;  %v389_v33 = vld [vmem:[%s8385_s0 + $0xb40] sm:$0xff] }
 0x14a   :  { %5194 = vmatprep.mubr.msk.f32.mxu0 %vm441_vm0, %v7730_v38  ;;  %5234 = vmatprep.mubr.msk.f32.mxu1 %vm441_vm0, %v7730_v38 }
 0x14b   :  { %5808 = vmatprep.subr.msk.bf16.mxu0 %vm6180_vm1, %v5806_v34  ;;  %5856 = vmatprep.subr.msk.bf16.mxu1 %vm6180_vm1, %v5854_v35  ;;  %v390_v34 = vld [vmem:[%s8385_s0 + $0xb48] sm:$0xff] }
 0x14c   :  { %5195 = vmatmul.mubr.msk.f32.gmra.mrb[34].mxu0 %vm441_vm0, %v7730_v38  ;;  %5235 = vmatmul.mubr.msk.f32.gmra.mrb[34].mxu1 %vm441_vm0, %v7730_v38 }
 0x14d   :  { %5196 = vmatprep.mubr.msk.f32.mxu0 %vm441_vm0, %v7768_v50  ;;  %5236 = vmatprep.mubr.msk.f32.mxu1 %vm441_vm0, %v7768_v50 }
 0x150   :  { %5197 = vmatmul.mubr.msk.f32.gmra.mrb[36].mxu0 %vm441_vm0, %v7768_v50  ;;  %5237 = vmatmul.mubr.msk.f32.gmra.mrb[36].mxu1 %vm441_vm0, %v7768_v50 }
 0x151   :  { %5811 = vmatpush3.bf16.xpose.msk.msra.mxu0 %vm6180_vm1, %v5809_v52  ;;  %5859 = vmatpush3.bf16.xpose.msk.msra.mxu1 %vm6180_vm1, %v5857_v53 }
 0x152   :  { %5198 = vmatprep.mubr.msk.f32.mxu0 %vm441_vm0, %v7791_v59  ;;  %5238 = vmatprep.mubr.msk.f32.mxu1 %vm441_vm0, %v7791_v59 }
 0x153   :  { %5814 = vmatprep.subr.msk.bf16.mxu0 %vm6180_vm1, %v5812_v54  ;;  %5862 = vmatprep.subr.msk.bf16.mxu1 %vm6180_vm1, %v5860_v55  ;;  %v5875_v54 = vpack.c.bf16 %v390_v34, %v389_v33  ;;  %v375_v55 = vld [vmem:[%s8385_s0 + $0xad0] sm:$0xff] }
 0x154   :  { %5199 = vmatmul.mubr.msk.f32.gmra.mrb[38].mxu0 %vm441_vm0, %v7791_v59  ;;  %5239 = vmatmul.mubr.msk.f32.gmra.mrb[38].mxu1 %vm441_vm0, %v7791_v59  ;;  %v359_v34 = vld [vmem:[%s8385_s0 + $0xa50] sm:$0xff] }
 0x155   :  { %5272 = vmatprep.mubr.msk.f32.mxu0 %vm441_vm0, %v7374_v51  ;;  %5312 = vmatprep.mubr.msk.f32.mxu1 %vm441_vm0, %v7374_v51 }
 0x159   :  { %5817 = vmatpush3.bf16.xpose.msk.msra.mxu0 %vm6180_vm1, %v5815_v3  ;;  %5865 = vmatpush3.bf16.xpose.msk.msra.mxu1 %vm6180_vm1, %v5863_v4 }
 0x15a   :  { %5820 = vmatprep.subr.msk.bf16.mxu0 %vm6180_vm1, %v5818_v6  ;;  %5868 = vmatprep.subr.msk.bf16.mxu1 %vm6180_vm1, %v5866_v7 }
 0x15b   :  { %v1850_v17 = vpop.f32.mrb[8].mxu0  ;;  %v1939_v18 = vpop.f32.mrb[8].mxu1 }
 0x15c   :  { %v1852_v22 = vpop.f32.mrb[9].mxu0  ;;  %v1941_v23 = vpop.f32.mrb[9].mxu1  ;;  %v1851_v29 = vadd.f32 %v1850_v17, %v7472_v14  ;;  %v1940_v30 = vadd.f32 %v1939_v18, %v7472_v14 }
 0x15d   :  { %v1853_v35 = vadd.f32 %v1852_v22, %v7472_v14  ;;  %v1942_v36 = vadd.f32 %v1941_v23, %v7472_v14  ;;  %v5830_v23 = vpack.c.bf16 %v376_v57, %v375_v55  ;;  %v410_v55 = vld [vmem:[%s8385_s0 + $0xbe8] sm:$0xff] }
 0x15e   :  { %v2678_v58 = vmax.f32 %v1851_v29, 0.0  ;;  %v2680_v60 = vmax.f32 %v1940_v30, 0.0 }
 0x15f   :  { %v1856_v39 = vpop.f32.mrb[10].mxu0  ;;  %v1945_v40 = vpop.f32.mrb[10].mxu1  ;;  %v2679_v1 = vmax.f32 %v1853_v35, 0.0  ;;  %v2681_v3 = vmax.f32 %v1942_v36, 0.0  ;;  %v360_v35 = vld [vmem:[%s8385_s0 + $0xa58] sm:$0xff] }
 0x160   :  { %v1857_v46 = vadd.f32 %v1856_v39, %v7506_v26  ;;  %v1946_v43 = vadd.f32 %v1945_v40, %v7506_v26  ;;  %v1858_v44 = vpop.f32.mrb[11].mxu0  ;;  %v1947_v48 = vpop.f32.mrb[11].mxu1 }
 0x161   :  { %v1859_v52 = vadd.f32 %v1858_v44, %v7506_v26  ;;  %v1948_v53 = vadd.f32 %v1947_v48, %v7506_v26  ;;  %5823 = vmatpush3.bf16.xpose.msk.msra.mxu0 %vm6180_vm1, %v5821_v24  ;;  %5871 = vmatpush3.bf16.xpose.msk.msra.mxu1 %vm6180_vm1, %v5869_v25  ;;  %v5878_v24 = vpack.c.bf16 %v408_v63, %v407_v62  ;;  %v392_v44 = vld [vmem:[%s8385_s0 + $0xb58] sm:$0xff]  ;;  %v377_v48 = vld [vmem:[%s8385_s0 + $0xae0] sm:$0xff] }
 0x162   :  { %v2702_v61 = vmax.f32 %v1857_v46, 0.0  ;;  %v2704_v56 = vmax.f32 %v1946_v43, 0.0  ;;  %5826 = vmatprep.subr.msk.bf16.mxu0 %vm6180_vm1, %v5824_v31  ;;  %5874 = vmatprep.subr.msk.bf16.mxu1 %vm6180_vm1, %v5872_v32  ;;  %v391_v43 = vld [vmem:[%s8385_s0 + $0xb50] sm:$0xff] }
 0x163   :  { %v2703_v4 = vmax.f32 %v1859_v52, 0.0  ;;  %v2705_v6 = vmax.f32 %v1948_v53, 0.0  ;;  %v1862_v7 = vpop.f32.mrb[12].mxu0  ;;  %v1951_v11 = vpop.f32.mrb[12].mxu1  ;;  %v378_v53 = vld [vmem:[%s8385_s0 + $0xae8] sm:$0xff]  ;;  %v5881_v62 = vpack.c.bf16 %v392_v44, %v391_v43 }
 0x164   :  { %v7899_v12 = vpack.c.bf16 %v2702_v61, %v2678_v58  ;;  %v7901_v9 = vpack.c.bf16 %v2704_v56, %v2680_v60  ;;  %v1863_v15 = vadd.f32 %v1862_v7, %v7522_v37  ;;  %v1952_v16 = vadd.f32 %v1951_v11, %v7522_v37  ;;  %v1864_v17 = vpop.f32.mrb[13].mxu0  ;;  %v1953_v18 = vpop.f32.mrb[13].mxu1  ;;  %v362_v7 = vld [vmem:[%s8385_s0 + $0xa68] sm:$0xff]  ;;  %v393_v11 = vld [vmem:[%s8385_s0 + $0xb60] sm:$0xff] }
 0x165   :  { %v7905_v19 = vpack.c.bf16 %v2703_v4, %v2679_v1  ;;  %v7907_v20 = vpack.c.bf16 %v2705_v6, %v2681_v3  ;;  %v1865_v21 = vadd.f32 %v1864_v17, %v7522_v37  ;;  %v1954_v22 = vadd.f32 %v1953_v18, %v7522_v37  ;;  %v361_v6 = vld [vmem:[%s8385_s0 + $0xa60] sm:$0xff]  ;;  %v380_v17 = vld [vmem:[%s8385_s0 + $0xaf8] sm:$0xff]  ;;  %v411_v18 = vld [vmem:[%s8385_s0 + $0xbf0] sm:$0xff] }
 0x166   :  { %v2726_v28 = vmax.f32 %v1863_v15, 0.0  ;;  %v2728_v29 = vmax.f32 %v1952_v16, 0.0  ;;  %v5833_v56 = vpack.c.bf16 %v360_v35, %v359_v34  ;;  %v5836_v3 = vpack.c.bf16 %v378_v53, %v377_v48  ;;  %v394_v15 = vld [vmem:[%s8385_s0 + $0xb68] sm:$0xff]  ;;  %v379_v16 = vld [vmem:[%s8385_s0 + $0xaf0] sm:$0xff] }
 0x167   :  { %v1868_v25 = vpop.f32.mrb[14].mxu0  ;;  %v1957_v27 = vpop.f32.mrb[14].mxu1  ;;  %v2727_v36 = vmax.f32 %v1865_v21, 0.0  ;;  %v2729_v39 = vmax.f32 %v1954_v22, 0.0  ;;  %v412_v21 = vld [vmem:[%s8385_s0 + $0xbf8] sm:$0xff]  ;;  %v5839_v22 = vpack.c.bf16 %v362_v7, %v361_v6 }
 0x168   :  { %v1869_v30 = vadd.f32 %v1868_v25, %v7562_v13  ;;  %v1958_v31 = vadd.f32 %v1957_v27, %v7562_v13  ;;  %v1870_v32 = vpop.f32.mrb[15].mxu0  ;;  %v1959_v33 = vpop.f32.mrb[15].mxu1  ;;  %v5890_v25 = vpack.c.bf16 %v412_v21, %v411_v18  ;;  %v363_v27 = vld [vmem:[%s8385_s0 + $0xa70] sm:$0xff] }
 0x169   :  { %5829 = vmatpush3.bf16.xpose.msk.msra.mxu0 %vm6180_vm1, %v5827_v49  ;;  %5877 = vmatpush3.bf16.xpose.msk.msra.mxu1 %vm6180_vm1, %v5875_v54  ;;  %v1871_v40 = vadd.f32 %v1870_v32, %v7562_v13  ;;  %v1960_v46 = vadd.f32 %v1959_v33, %v7562_v13  ;;  %v409_v54 = vld [vmem:[%s8385_s0 + $0xbe0] sm:$0xff] }
 0x16a   :  { %5832 = vmatprep.subr.msk.bf16.mxu0 %vm6180_vm1, %v5830_v23  ;;  %5880 = vmatprep.subr.msk.bf16.mxu1 %vm6180_vm1, %v5878_v24  ;;  %v2750_v49 = vmax.f32 %v1869_v30, 0.0  ;;  %v2752_v52 = vmax.f32 %v1958_v31, 0.0  ;;  %v5884_v4 = vpack.c.bf16 %v410_v55, %v409_v54  ;;  %v5887_v23 = vpack.c.bf16 %v394_v15, %v393_v11  ;;  %v396_v30 = vld [vmem:[%s8385_s0 + $0xb78] sm:$0xff] }
 0x16b   :  { %v2751_v57 = vmax.f32 %v1871_v40, 0.0  ;;  %v2753_v58 = vmax.f32 %v1960_v46, 0.0  ;;  %v5842_v24 = vpack.c.bf16 %v380_v17, %v379_v16 }
 0x16c   :  { %v7947_v60 = vpack.c.bf16 %v2750_v49, %v2726_v28  ;;  %v7949_v61 = vpack.c.bf16 %v2752_v52, %v2728_v29  ;;  %v364_v28 = vld [vmem:[%s8385_s0 + $0xa78] sm:$0xff]  ;;  %v395_v29 = vld [vmem:[%s8385_s0 + $0xb70] sm:$0xff] }
 0x16d   :  { %v7951_v63 = vpack.c.bf16 %v2751_v57, %v2727_v36  ;;  %v7953_v1 = vpack.c.bf16 %v2753_v58, %v2729_v39  ;;  %v5845_v31 = vpack.c.bf16 %v364_v28, %v363_v27  ;;  %v5893_v32 = vpack.c.bf16 %v396_v30, %v395_v29 }
 0x171   :  { %5835 = vmatpush3.bf16.xpose.msk.msra.mxu0 %vm6180_vm1, %v5833_v56  ;;  %5883 = vmatpush3.bf16.xpose.msk.msra.mxu1 %vm6180_vm1, %v5881_v62 }
 0x172   :  { %5838 = vmatprep.subr.msk.bf16.mxu0 %vm6180_vm1, %v5836_v3  ;;  %5886 = vmatprep.subr.msk.bf16.mxu1 %vm6180_vm1, %v5884_v4 }
 0x179   :  { %5841 = vmatpush3.bf16.xpose.msk.msra.mxu0 %vm6180_vm1, %v5839_v22  ;;  %5889 = vmatpush3.bf16.xpose.msk.msra.mxu1 %vm6180_vm1, %v5887_v23 }
 0x17a   :  { %5844 = vmatprep.subr.msk.bf16.mxu0 %vm6180_vm1, %v5842_v24  ;;  %5892 = vmatprep.subr.msk.bf16.mxu1 %vm6180_vm1, %v5890_v25 }
 0x181   :  { %5847 = vmatpush3.bf16.xpose.msk.msra.mxu0 %vm6180_vm1, %v5845_v31  ;;  %5895 = vmatpush3.bf16.xpose.msk.msra.mxu1 %vm6180_vm1, %v5893_v32 }
 0x182   :  { %5897 = vmatprep.subr.bf16.mxu0 %v7556_v8  ;;  %5905 = vmatprep.subr.bf16.mxu1 %v7558_v10 }
 0x188   :  { %5273 = vmatmul.mubr.msk.f32.vlgmr.msra.gmra.mrb[40].mxu0 %vm441_vm0, %v7374_v51  ;;  %5313 = vmatmul.mubr.msk.f32.vlgmr.msra.gmra.mrb[40].mxu1 %vm441_vm0, %v7374_v51  ;;  %v8054_v51 = vld [vmem:[%s8388_s3] sm:$0xff] }
 0x189   :  { %5899 = vmatpush1.bf16.msra.mxu0 %v7550_v2  ;;  %5907 = vmatpush1.bf16.msra.mxu1 %v7552_v0  ;;  %v8065_v2 = vld [vmem:[%s8388_s3 + $0x8] sm:$0xff]  ;;  %s6125_s3 = smov [#allocation3]  }
 0x18a   :  { %5901 = vmatprep.subr.bf16.mxu0 %v7604_v45  ;;  %5909 = vmatprep.subr.bf16.mxu1 %v7606_v47  ;;  %s4352_s22 = sshll.u32 %s6125_s3, 4  ;;  %s4353_s22 = int_to_ptr.vmem [resolvable:$true] %s4352_s22 }
 0x18b   :  { %5274 = vmatprep.mubr.msk.f32.mxu0 %vm441_vm0, %v7730_v38  ;;  %5314 = vmatprep.mubr.msk.f32.mxu1 %vm441_vm0, %v7730_v38  ;;  %s6098_s23 = scalar_lea.vmem %s4353_s22, 384  ;;  %p6103_p1 = scmp.lt.s32.totalorder %s4353_s22, %s4353_s22 }
 0x18c   :  { %5275 = vmatmul.mubr.msk.f32.gmra.mrb[42].mxu0 %vm441_vm0, %v7730_v38  ;;  %5315 = vmatmul.mubr.msk.f32.gmra.mrb[42].mxu1 %vm441_vm0, %v7730_v38  ;;  %p6099_p0 = scmp.ne.s32.totalorder %s4353_s22, %s6098_s23  ;;  %p6104_p2 = scmp.lt.s32.totalorder %s6098_s23, %s6098_s23 }
 0x18d   :  { %5903 = vmatpush1.bf16.msra.mxu0 %v7600_v41  ;;  %5911 = vmatpush1.bf16.msra.mxu1 %v7602_v42 }
 0x18e   :  { %5913 = vmatprep.subr.bf16.mxu0 %v7905_v19  ;;  %5921 = vmatprep.subr.bf16.mxu1 %v7907_v20  ;;  %p6105_p3 = por %p6104_p2, %p6103_p1 }
 0x18f   :  { %5276 = vmatprep.mubr.msk.f32.mxu0 %vm441_vm0, %v7768_v50  ;;  %5316 = vmatprep.mubr.msk.f32.mxu1 %vm441_vm0, %v7768_v50 }
 0x190   :  { %5277 = vmatmul.mubr.msk.f32.gmra.mrb[44].mxu0 %vm441_vm0, %v7768_v50  ;;  %5317 = vmatmul.mubr.msk.f32.gmra.mrb[44].mxu1 %vm441_vm0, %v7768_v50  ;;  %p6106_p4 = pnand %p6105_p3, %p6099_p0 }
 0x191   :  { %5278 = vmatprep.mubr.msk.f32.mxu0 %vm441_vm0, %v7791_v59  ;;  %5318 = vmatprep.mubr.msk.f32.mxu1 %vm441_vm0, %v7791_v59 }
 0x194   :  { %5279 = vmatmul.mubr.msk.f32.gmra.mrb[46].mxu0 %vm441_vm0, %v7791_v59  ;;  %5319 = vmatmul.mubr.msk.f32.gmra.mrb[46].mxu1 %vm441_vm0, %v7791_v59 }
 0x195   :  { %2855 = vmatprep.mubr.f32.mxu0 %v6123_v5  ;;  %2932 = vmatprep.mubr.f32.mxu1 %v6123_v5 }
 0x198   :  { %4792 = vmatmul.mubr.msk.f32.vlgmr.msra.gmra.mrb[48].mxu0 %vm2784_vm2, %v8054_v51  ;;  %4794 = vmatmul.mubr.msk.f32.vlgmr.msra.gmra.mrb[48].mxu1 %vm2784_vm2, %v8054_v51 }
 0x199   :  { %5915 = vmatpush1.bf16.msra.mxu0 %v7899_v12  ;;  %5923 = vmatpush1.bf16.msra.mxu1 %v7901_v9 }
 0x19a   :  { %2861 = vmatprep.mubr.f32.mxu0 %v6123_v5  ;;  %2938 = vmatprep.mubr.f32.mxu1 %v6123_v5 }
 0x19b   :  { %v2028_v0 = vpop.f32.mrb[16].mxu0  ;;  %v2117_v8 = vpop.f32.mrb[16].mxu1  ;;  %5917 = vmatprep.subr.bf16.mxu0 %v7951_v63  ;;  %5925 = vmatprep.subr.bf16.mxu1 %v7953_v1 }
 0x19c   :  { %v2030_v10 = vpop.f32.mrb[17].mxu0  ;;  %v2119_v41 = vpop.f32.mrb[17].mxu1  ;;  %4793 = vmatmul.mubr.msk.f32.gmra.mrb[50].mxu0 %vm2784_vm2, %v8065_v2  ;;  %4795 = vmatmul.mubr.msk.f32.gmra.mrb[50].mxu1 %vm2784_vm2, %v8065_v2  ;;  %v2029_v42 = vadd.f32 %v2028_v0, %v7472_v14  ;;  %v2118_v45 = vadd.f32 %v2117_v8, %v7472_v14 }
 0x19d   :  { %5919 = vmatpush1.bf16.msra.mxu0 %v7947_v60  ;;  %5927 = vmatpush1.bf16.msra.mxu1 %v7949_v61  ;;  %v2031_v47 = vadd.f32 %v2030_v10, %v7472_v14  ;;  %v2120_v38 = vadd.f32 %v2119_v41, %v7472_v14 }
 0x19e   :  { %3009 = vmatprep.mubr.f32.mxu0 %v6123_v5  ;;  %3086 = vmatprep.mubr.f32.mxu1 %v6123_v5  ;;  %v2682_v35 = vmax.f32 %v2029_v42, 0.0  ;;  %v2684_v36 = vmax.f32 %v2118_v45, 0.0 }
 0x19f   :  { %v2034_v50 = vpop.f32.mrb[18].mxu0  ;;  %v2123_v59 = vpop.f32.mrb[18].mxu1  ;;  %v2683_v46 = vmax.f32 %v2031_v47, 0.0  ;;  %v2685_v43 = vmax.f32 %v2120_v38, 0.0 }
 0x1a0   :  { %v2035_v12 = vadd.f32 %v2034_v50, %v7506_v26  ;;  %v2124_v9 = vadd.f32 %v2123_v59, %v7506_v26  ;;  %v2036_v19 = vpop.f32.mrb[19].mxu0  ;;  %v2125_v20 = vpop.f32.mrb[19].mxu1  ;;  %4796 = vmatmul.mubr.msk.f32.vlgmr.msra.gmra.mrb[52].mxu0 %vm2784_vm2, %v8054_v51  ;;  %4798 = vmatmul.mubr.msk.f32.vlgmr.msra.gmra.mrb[52].mxu1 %vm2784_vm2, %v8054_v51 }
 0x1a1   :  { %v2037_v33 = vadd.f32 %v2036_v19, %v7506_v26  ;;  %v2126_v34 = vadd.f32 %v2125_v20, %v7506_v26  ;;  %3015 = vmatprep.mubr.f32.mxu0 %v6123_v5  ;;  %3092 = vmatprep.mubr.f32.mxu1 %v6123_v5 }
 0x1a2   :  { %v2706_v39 = vmax.f32 %v2035_v12, 0.0  ;;  %v2708_v40 = vmax.f32 %v2124_v9, 0.0 }
 0x1a3   :  { %v2707_v44 = vmax.f32 %v2037_v33, 0.0  ;;  %v2709_v48 = vmax.f32 %v2126_v34, 0.0  ;;  %v2040_v49 = vpop.f32.mrb[20].mxu0  ;;  %v2129_v52 = vpop.f32.mrb[20].mxu1 }
 0x1a4   :  { %v5930_v53 = vpack.c.bf16 %v2706_v39, %v2682_v35  ;;  %v5938_v54 = vpack.c.bf16 %v2708_v40, %v2684_v36  ;;  %4797 = vmatmul.mubr.msk.f32.gmra.mrb[54].mxu0 %vm2784_vm2, %v8065_v2  ;;  %4799 = vmatmul.mubr.msk.f32.gmra.mrb[54].mxu1 %vm2784_vm2, %v8065_v2  ;;  %v2041_v55 = vadd.f32 %v2040_v49, %v7522_v37  ;;  %v2042_v57 = vpop.f32.mrb[21].mxu0  ;;  %v2131_v58 = vpop.f32.mrb[21].mxu1 }
 0x1a5   :  { %v5928_v60 = vpack.c.bf16 %v2707_v44, %v2683_v46  ;;  %v5936_v61 = vpack.c.bf16 %v2709_v48, %v2685_v43  ;;  %v2130_v56 = vadd.f32 %v2129_v52, %v7522_v37  ;;  %v2043_v62 = vadd.f32 %v2042_v57, %v7522_v37  ;;  %3163 = vmatprep.mubr.f32.mxu0 %v6123_v5 }
 0x1a6   :  { %v2132_v63 = vadd.f32 %v2131_v58, %v7522_v37  ;;  %3240 = vmatprep.mubr.f32.mxu1 %v6123_v5  ;;  %v2730_v4 = vmax.f32 %v2041_v55, 0.0 }
 0x1a7   :  { %v2046_v1 = vpop.f32.mrb[22].mxu0  ;;  %v2135_v3 = vpop.f32.mrb[22].mxu1  ;;  %5929 = vmatprep.subr.bf16.mxu0 %v5928_v60  ;;  %5937 = vmatprep.subr.bf16.mxu1 %v5936_v61  ;;  %v2732_v6 = vmax.f32 %v2130_v56, 0.0  ;;  %v2731_v17 = vmax.f32 %v2043_v62, 0.0 }
 0x1a8   :  { %v2047_v7 = vadd.f32 %v2046_v1, %v7562_v13  ;;  %v2136_v11 = vadd.f32 %v2135_v3, %v7562_v13  ;;  %v2048_v15 = vpop.f32.mrb[23].mxu0  ;;  %v2137_v16 = vpop.f32.mrb[23].mxu1  ;;  %5931 = vmatpush1.bf16.msra.mxu0 %v5930_v53  ;;  %5939 = vmatpush1.bf16.msra.mxu1 %v5938_v54  ;;  %v2733_v18 = vmax.f32 %v2132_v63, 0.0 }
 0x1a9   :  { %v2049_v21 = vadd.f32 %v2048_v15, %v7562_v13  ;;  %v2138_v22 = vadd.f32 %v2137_v16, %v7562_v13 }
 0x1aa   :  { %v2754_v23 = vmax.f32 %v2047_v7, 0.0  ;;  %v2756_v24 = vmax.f32 %v2136_v11, 0.0 }
 0x1ab   :  { %v2755_v25 = vmax.f32 %v2049_v21, 0.0  ;;  %v2757_v27 = vmax.f32 %v2138_v22, 0.0 }
 0x1ac   :  { %v5934_v28 = vpack.c.bf16 %v2754_v23, %v2730_v4  ;;  %v5942_v29 = vpack.c.bf16 %v2756_v24, %v2732_v6 }
 0x1ad   :  { %v5932_v30 = vpack.c.bf16 %v2755_v25, %v2731_v17  ;;  %v5940_v31 = vpack.c.bf16 %v2757_v27, %v2733_v18 }
 0x1af   :  { %5933 = vmatprep.subr.bf16.mxu0 %v5932_v30  ;;  %5941 = vmatprep.subr.bf16.mxu1 %v5940_v31 }
 0x1b0   :  { %5935 = vmatpush1.bf16.msra.mxu0 %v5934_v28  ;;  %5943 = vmatpush1.bf16.msra.mxu1 %v5942_v29 }
 0x1b3   :  { %4800 = vmatmul.mubr.msk.f32.vlgmr.msra.gmra.mrb[56].mxu0 %vm2784_vm2, %v8054_v51  ;;  %4802 = vmatmul.mubr.msk.f32.vlgmr.msra.gmra.mrb[56].mxu1 %vm2784_vm2, %v8054_v51 }
 0x1b4   :  { %3169 = vmatprep.mubr.f32.mxu0 %v6123_v5  ;;  %3246 = vmatprep.mubr.f32.mxu1 %v6123_v5 }
 0x1b7   :  { %4801 = vmatmul.mubr.msk.f32.gmra.mrb[58].mxu0 %vm2784_vm2, %v8065_v2  ;;  %4803 = vmatmul.mubr.msk.f32.gmra.mrb[58].mxu1 %vm2784_vm2, %v8065_v2 }
 0x1b8   :  { %3317 = vmatprep.mubr.f32.mxu0 %v6123_v5  ;;  %3394 = vmatprep.mubr.f32.mxu1 %v6123_v5 }
 0x1db   :  { %v2206_v32 = vpop.f32.mrb[24].mxu0  ;;  %v2295_v0 = vpop.f32.mrb[24].mxu1 }
 0x1dc   :  { %v2208_v8 = vpop.f32.mrb[25].mxu0  ;;  %v2297_v10 = vpop.f32.mrb[25].mxu1  ;;  %v2207_v41 = vadd.f32 %v2206_v32, %v7472_v14  ;;  %v2296_v42 = vadd.f32 %v2295_v0, %v7472_v14 }
 0x1dd   :  { %v2209_v45 = vadd.f32 %v2208_v8, %v7472_v14  ;;  %v2298_v47 = vadd.f32 %v2297_v10, %v7472_v14 }
 0x1de   :  { %v2686_v34 = vmax.f32 %v2207_v41, 0.0  ;;  %v2688_v35 = vmax.f32 %v2296_v42, 0.0 }
 0x1df   :  { %v2212_v38 = vpop.f32.mrb[26].mxu0  ;;  %v2301_v50 = vpop.f32.mrb[26].mxu1  ;;  %v2687_v40 = vmax.f32 %v2209_v45, 0.0  ;;  %v2689_v46 = vmax.f32 %v2298_v47, 0.0 }
 0x1e0   :  { %v2213_v59 = vadd.f32 %v2212_v38, %v7506_v26  ;;  %v2302_v12 = vadd.f32 %v2301_v50, %v7506_v26  ;;  %v2214_v9 = vpop.f32.mrb[27].mxu0  ;;  %v2303_v19 = vpop.f32.mrb[27].mxu1 }
 0x1e1   :  { %v2215_v20 = vadd.f32 %v2214_v9, %v7506_v26  ;;  %v2304_v33 = vadd.f32 %v2303_v19, %v7506_v26 }
 0x1e2   :  { %v2710_v36 = vmax.f32 %v2213_v59, 0.0  ;;  %v2712_v39 = vmax.f32 %v2302_v12, 0.0 }
 0x1e3   :  { %v2711_v43 = vmax.f32 %v2215_v20, 0.0  ;;  %v2713_v44 = vmax.f32 %v2304_v33, 0.0  ;;  %v2218_v48 = vpop.f32.mrb[28].mxu0  ;;  %v2307_v49 = vpop.f32.mrb[28].mxu1 }
 0x1e4   :  { %v5946_v52 = vpack.c.bf16 %v2710_v36, %v2686_v34  ;;  %v5954_v53 = vpack.c.bf16 %v2712_v39, %v2688_v35  ;;  %v2219_v54 = vadd.f32 %v2218_v48, %v7522_v37  ;;  %v2308_v55 = vadd.f32 %v2307_v49, %v7522_v37  ;;  %v2220_v57 = vpop.f32.mrb[29].mxu0  ;;  %v2309_v58 = vpop.f32.mrb[29].mxu1 }
 0x1e5   :  { %v5944_v60 = vpack.c.bf16 %v2711_v43, %v2687_v40  ;;  %v5952_v61 = vpack.c.bf16 %v2713_v44, %v2689_v46  ;;  %v2221_v56 = vadd.f32 %v2220_v57, %v7522_v37  ;;  %v2310_v62 = vadd.f32 %v2309_v58, %v7522_v37 }
 0x1e6   :  { %v2734_v3 = vmax.f32 %v2219_v54, 0.0  ;;  %v2736_v4 = vmax.f32 %v2308_v55, 0.0 }
 0x1e7   :  { %v2224_v63 = vpop.f32.mrb[30].mxu0  ;;  %v2313_v1 = vpop.f32.mrb[30].mxu1  ;;  %5945 = vmatprep.subr.bf16.mxu0 %v5944_v60  ;;  %5953 = vmatprep.subr.bf16.mxu1 %v5952_v61  ;;  %v2735_v16 = vmax.f32 %v2221_v56, 0.0  ;;  %v2737_v17 = vmax.f32 %v2310_v62, 0.0 }
 0x1e8   :  { %v2225_v6 = vadd.f32 %v2224_v63, %v7562_v13  ;;  %v2314_v7 = vadd.f32 %v2313_v1, %v7562_v13  ;;  %v2226_v11 = vpop.f32.mrb[31].mxu0  ;;  %v2315_v15 = vpop.f32.mrb[31].mxu1  ;;  %5947 = vmatpush1.bf16.msra.mxu0 %v5946_v52  ;;  %5955 = vmatpush1.bf16.msra.mxu1 %v5954_v53 }
 0x1e9   :  { %v2227_v18 = vadd.f32 %v2226_v11, %v7562_v13  ;;  %v2316_v21 = vadd.f32 %v2315_v15, %v7562_v13 }
 0x1ea   :  { %v2758_v22 = vmax.f32 %v2225_v6, 0.0  ;;  %v2760_v23 = vmax.f32 %v2314_v7, 0.0 }
 0x1eb   :  { %v2759_v24 = vmax.f32 %v2227_v18, 0.0  ;;  %v2761_v25 = vmax.f32 %v2316_v21, 0.0 }
 0x1ec   :  { %v5950_v27 = vpack.c.bf16 %v2758_v22, %v2734_v3  ;;  %v5958_v28 = vpack.c.bf16 %v2760_v23, %v2736_v4 }
 0x1ed   :  { %v5948_v29 = vpack.c.bf16 %v2759_v24, %v2735_v16  ;;  %v5956_v30 = vpack.c.bf16 %v2761_v25, %v2737_v17 }
 0x1ef   :  { %5949 = vmatprep.subr.bf16.mxu0 %v5948_v29  ;;  %5957 = vmatprep.subr.bf16.mxu1 %v5956_v30 }
 0x1f0   :  { %5951 = vmatpush1.bf16.msra.mxu0 %v5950_v27  ;;  %5959 = vmatpush1.bf16.msra.mxu1 %v5958_v28 }
 0x1f3   :  { %4804 = vmatmul.mubr.msk.f32.vlgmr.msra.gmra.mrb[60].mxu0 %vm2784_vm2, %v8054_v51  ;;  %4806 = vmatmul.mubr.msk.f32.vlgmr.msra.gmra.mrb[60].mxu1 %vm2784_vm2, %v8054_v51 }
 0x1f4   :  { %3323 = vmatprep.mubr.f32.mxu0 %v6123_v5  ;;  %3400 = vmatprep.mubr.f32.mxu1 %v6123_v5 }
 0x1f7   :  { %4805 = vmatmul.mubr.msk.f32.gmra.mrb[62].mxu0 %vm2784_vm2, %v8065_v2  ;;  %4807 = vmatmul.mubr.msk.f32.gmra.mrb[62].mxu1 %vm2784_vm2, %v8065_v2 }
 0x1f8   :  { %3471 = vmatprep.mubr.f32.mxu0 %v6123_v5  ;;  %3548 = vmatprep.mubr.f32.mxu1 %v6123_v5 }
 0x21b   :  { %v2384_v31 = vpop.f32.mrb[32].mxu0  ;;  %v2473_v32 = vpop.f32.mrb[32].mxu1 }
 0x21c   :  { %v2386_v0 = vpop.f32.mrb[33].mxu0  ;;  %v2475_v8 = vpop.f32.mrb[33].mxu1  ;;  %v2385_v10 = vadd.f32 %v2384_v31, %v7472_v14  ;;  %v2474_v41 = vadd.f32 %v2473_v32, %v7472_v14 }
 0x21d   :  { %v2387_v42 = vadd.f32 %v2386_v0, %v7472_v14  ;;  %v2476_v45 = vadd.f32 %v2475_v8, %v7472_v14  ;;  %v8175_v8 = vpop.permute.xlu0 %2776 }
 0x21e   :  { %v2690_v33 = vmax.f32 %v2385_v10, 0.0  ;;  %v2692_v34 = vmax.f32 %v2474_v41, 0.0 }
 0x21f   :  { %v2390_v47 = vpop.f32.mrb[34].mxu0  ;;  %v2479_v38 = vpop.f32.mrb[34].mxu1  ;;  %v2691_v39 = vmax.f32 %v2387_v42, 0.0  ;;  %v2693_v40 = vmax.f32 %v2476_v45, 0.0 }
 0x220   :  { %v2391_v50 = vadd.f32 %v2390_v47, %v7506_v26  ;;  %v2480_v59 = vadd.f32 %v2479_v38, %v7506_v26  ;;  %v2392_v12 = vpop.f32.mrb[35].mxu0  ;;  %v2481_v9 = vpop.f32.mrb[35].mxu1 }
 0x221   :  { %v2393_v19 = vadd.f32 %v2392_v12, %v7506_v26  ;;  %v2482_v20 = vadd.f32 %v2481_v9, %v7506_v26 }
 0x222   :  { %v2714_v35 = vmax.f32 %v2391_v50, 0.0  ;;  %v2716_v36 = vmax.f32 %v2480_v59, 0.0 }
 0x223   :  { %v2715_v46 = vmax.f32 %v2393_v19, 0.0  ;;  %v2717_v43 = vmax.f32 %v2482_v20, 0.0  ;;  %v2396_v44 = vpop.f32.mrb[36].mxu0  ;;  %v2485_v48 = vpop.f32.mrb[36].mxu1  ;;  %v3997_v19 = vlaneseq }
 0x224   :  { %v5962_v49 = vpack.c.bf16 %v2714_v35, %v2690_v33  ;;  %v5970_v52 = vpack.c.bf16 %v2716_v36, %v2692_v34  ;;  %v2397_v53 = vadd.f32 %v2396_v44, %v7522_v37  ;;  %v2486_v54 = vadd.f32 %v2485_v48, %v7522_v37  ;;  %v2398_v55 = vpop.f32.mrb[37].mxu0  ;;  %v2487_v57 = vpop.f32.mrb[37].mxu1 }
 0x225   :  { %v5960_v58 = vpack.c.bf16 %v2715_v46, %v2691_v39  ;;  %v5968_v60 = vpack.c.bf16 %v2717_v43, %v2693_v40  ;;  %v2399_v61 = vadd.f32 %v2398_v55, %v7522_v37  ;;  %v2488_v56 = vadd.f32 %v2487_v57, %v7522_v37 }
 0x226   :  { %v2738_v1 = vmax.f32 %v2397_v53, 0.0  ;;  %v2740_v3 = vmax.f32 %v2486_v54, 0.0  ;;  %v8185_v55 = vshrl.u32 %v3997_v19, 7 }
 0x227   :  { %v2402_v62 = vpop.f32.mrb[38].mxu0  ;;  %v2491_v63 = vpop.f32.mrb[38].mxu1  ;;  %5961 = vmatprep.subr.bf16.mxu0 %v5960_v58  ;;  %5969 = vmatprep.subr.bf16.mxu1 %v5968_v60  ;;  %v2739_v15 = vmax.f32 %v2399_v61, 0.0  ;;  %v2741_v16 = vmax.f32 %v2488_v56, 0.0 }
 0x228   :  { %v2403_v4 = vadd.f32 %v2402_v62, %v7562_v13  ;;  %v2492_v6 = vadd.f32 %v2491_v63, %v7562_v13  ;;  %v2404_v7 = vpop.f32.mrb[39].mxu0  ;;  %v2493_v11 = vpop.f32.mrb[39].mxu1  ;;  %5963 = vmatpush1.bf16.msra.mxu0 %v5962_v49  ;;  %5971 = vmatpush1.bf16.msra.mxu1 %v5970_v52 }
 0x229   :  { %v2405_v17 = vadd.f32 %v2404_v7, %v7562_v13  ;;  %v2494_v18 = vadd.f32 %v2493_v11, %v7562_v13  ;;  %v8187_v60 = vpop.permute.xlu0 %3768  ;;  %v3999_v11 = vsub.s32 0, %v8185_v55 }
 0x22a   :  { %v2762_v21 = vmax.f32 %v2403_v4, 0.0  ;;  %v2764_v22 = vmax.f32 %v2492_v6, 0.0 }
 0x22b   :  { %v2763_v23 = vmax.f32 %v2405_v17, 0.0  ;;  %v2765_v24 = vmax.f32 %v2494_v18, 0.0  ;;  %v8198_v17 = vpop.permute.xlu1 %2781 }
 0x22c   :  { %v5966_v25 = vpack.c.bf16 %v2762_v21, %v2738_v1  ;;  %v5974_v27 = vpack.c.bf16 %v2764_v22, %v2740_v3 }
 0x22d   :  { %v5964_v28 = vpack.c.bf16 %v2763_v23, %v2739_v15  ;;  %v5972_v29 = vpack.c.bf16 %v2765_v24, %v2741_v16 }
 0x22f   :  { %5965 = vmatprep.subr.bf16.mxu0 %v5964_v28  ;;  %5973 = vmatprep.subr.bf16.mxu1 %v5972_v29 }
 0x230   :  { %5967 = vmatpush1.bf16.msra.mxu0 %v5966_v25  ;;  %5975 = vmatpush1.bf16.msra.mxu1 %v5974_v27 }
 0x233   :  { %4808 = vmatmul.mubr.msk.f32.vlgmr.msra.gmra.mrb[64].mxu0 %vm2784_vm2, %v8054_v51  ;;  %4810 = vmatmul.mubr.msk.f32.vlgmr.msra.gmra.mrb[64].mxu1 %vm2784_vm2, %v8054_v51 }
 0x234   :  { %3477 = vmatprep.mubr.f32.mxu0 %v6123_v5  ;;  %3554 = vmatprep.mubr.f32.mxu1 %v6123_v5 }
 0x237   :  { %4809 = vmatmul.mubr.msk.f32.gmra.mrb[66].mxu0 %vm2784_vm2, %v8065_v2  ;;  %4811 = vmatmul.mubr.msk.f32.gmra.mrb[66].mxu1 %vm2784_vm2, %v8065_v2 }
 0x238   :  { %3625 = vmatprep.mubr.f32.mxu0 %v6123_v5  ;;  %3702 = vmatprep.mubr.f32.mxu1 %v6123_v5 }
 0x25b   :  { %v2562_v30 = vpop.f32.mrb[40].mxu0  ;;  %v2651_v31 = vpop.f32.mrb[40].mxu1 }
 0x25c   :  { %v2564_v32 = vpop.f32.mrb[41].mxu0  ;;  %v2653_v0 = vpop.f32.mrb[41].mxu1  ;;  %v2563_v10 = vadd.f32 %v2562_v30, %v7472_v14  ;;  %v2652_v41 = vadd.f32 %v2651_v31, %v7472_v14 }
 0x25d   :  { %v2565_v42 = vadd.f32 %v2564_v32, %v7472_v14  ;;  %v2654_v45 = vadd.f32 %v2653_v0, %v7472_v14 }
 0x25e   :  { %v2694_v34 = vmax.f32 %v2563_v10, 0.0  ;;  %v2696_v35 = vmax.f32 %v2652_v41, 0.0 }
 0x25f   :  { %v2568_v47 = vpop.f32.mrb[42].mxu0  ;;  %v2657_v38 = vpop.f32.mrb[42].mxu1  ;;  %v2695_v40 = vmax.f32 %v2565_v42, 0.0  ;;  %v2697_v46 = vmax.f32 %v2654_v45, 0.0 }
 0x260   :  { %v2569_v50 = vadd.f32 %v2568_v47, %v7506_v26  ;;  %v2658_v59 = vadd.f32 %v2657_v38, %v7506_v26  ;;  %v2570_v12 = vpop.f32.mrb[43].mxu0  ;;  %v2659_v9 = vpop.f32.mrb[43].mxu1 }
 0x261   :  { %v2571_v20 = vadd.f32 %v2570_v12, %v7506_v26  ;;  %v2660_v33 = vadd.f32 %v2659_v9, %v7506_v26  ;;  %v3995_v38 = vpop.permute.xlu0 %3994 }
 0x262   :  { %v2718_v36 = vmax.f32 %v2569_v50, 0.0  ;;  %v2720_v39 = vmax.f32 %v2658_v59, 0.0 }
 0x263   :  { %v2719_v14 = vmax.f32 %v2571_v20, 0.0  ;;  %v2721_v43 = vmax.f32 %v2660_v33, 0.0  ;;  %v2574_v44 = vpop.f32.mrb[44].mxu0  ;;  %v2663_v48 = vpop.f32.mrb[44].mxu1 }
 0x264   :  { %v5978_v49 = vpack.c.bf16 %v2718_v36, %v2694_v34  ;;  %v5986_v52 = vpack.c.bf16 %v2720_v39, %v2696_v35  ;;  %v2576_v53 = vpop.f32.mrb[45].mxu0  ;;  %v2665_v54 = vpop.f32.mrb[45].mxu1  ;;  %v2575_v26 = vadd.f32 %v2574_v44, %v7522_v37  ;;  %v2664_v61 = vadd.f32 %v2663_v48, %v7522_v37 }
 0x265   :  { %v5976_v57 = vpack.c.bf16 %v2719_v14, %v2695_v40  ;;  %v5984_v58 = vpack.c.bf16 %v2721_v43, %v2697_v46  ;;  %v2577_v56 = vadd.f32 %v2576_v53, %v7522_v37  ;;  %v2666_v62 = vadd.f32 %v2665_v54, %v7522_v37  ;;  %v8210_v14 = vpop.permute.xlu1 %3773 }
 0x266   :  { %v2742_v37 = vmax.f32 %v2575_v26, 0.0  ;;  %v2744_v18 = vmax.f32 %v2664_v61, 0.0  ;;  %v8206_v39 = vrot.slane %v3995_v38, %v3999_v11 }
 0x267   :  { %v2580_v63 = vpop.f32.mrb[46].mxu0  ;;  %v2669_v1 = vpop.f32.mrb[46].mxu1  ;;  %5977 = vmatprep.subr.bf16.mxu0 %v5976_v57  ;;  %5985 = vmatprep.subr.bf16.mxu1 %v5984_v58  ;;  %v2743_v23 = vmax.f32 %v2577_v56, 0.0  ;;  %v2745_v24 = vmax.f32 %v2666_v62, 0.0 }
 0x268   :  { %v2581_v3 = vadd.f32 %v2580_v63, %v7562_v13  ;;  %v2670_v4 = vadd.f32 %v2669_v1, %v7562_v13  ;;  %v2582_v6 = vpop.f32.mrb[47].mxu0  ;;  %v2671_v7 = vpop.f32.mrb[47].mxu1  ;;  %5979 = vmatpush1.bf16.msra.mxu0 %v5978_v49  ;;  %5987 = vmatpush1.bf16.msra.mxu1 %v5986_v52 }
 0x269   :  { %v2583_v15 = vadd.f32 %v2582_v6, %v7562_v13  ;;  %v2672_v16 = vadd.f32 %v2671_v7, %v7562_v13 }
 0x26a   :  { %v2766_v21 = vmax.f32 %v2581_v3, 0.0  ;;  %v2768_v22 = vmax.f32 %v2670_v4, 0.0 }
 0x26b   :  { %v2767_v25 = vmax.f32 %v2583_v15, 0.0  ;;  %v2769_v27 = vmax.f32 %v2672_v16, 0.0  ;;  %v2857_v28 = vpop.f32.mrb[48].mxu0  ;;  %v2934_v29 = vpop.f32.mrb[48].mxu1 }
 0x26c   :  { %v5982_v30 = vpack.c.bf16 %v2766_v21, %v2742_v37  ;;  %v5990_v31 = vpack.c.bf16 %v2768_v22, %v2744_v18  ;;  %v2858_v32 = vadd.f32 %v2857_v28, %v8175_v8  ;;  %v2935_v0 = vadd.f32 %v2934_v29, %v8175_v8  ;;  %v2859_v10 = vpop.f32.mrb[49].mxu0  ;;  %v2936_v13 = vpop.f32.mrb[49].mxu1 }
 0x26d   :  { %v5980_v41 = vpack.c.bf16 %v2767_v25, %v2743_v23  ;;  %v5988_v42 = vpack.c.bf16 %v2769_v27, %v2745_v24  ;;  %v2860_v45 = vadd.f32 %v2859_v10, %v8175_v8  ;;  %v2937_v47 = vadd.f32 %v2936_v13, %v8175_v8 }
 0x26e   :  { %v3715_v50 = vmax.f32 %v2858_v32, 0.0  ;;  %v3717_v59 = vmax.f32 %v2935_v0, 0.0 }
 0x26f   :  { %v3716_v12 = vmax.f32 %v2860_v45, 0.0  ;;  %v3718_v9 = vmax.f32 %v2937_v47, 0.0  ;;  %v2863_v19 = vpop.f32.mrb[50].mxu0  ;;  %v2940_v20 = vpop.f32.mrb[50].mxu1  ;;  %5981 = vmatprep.subr.bf16.mxu0 %v5980_v41  ;;  %5989 = vmatprep.subr.bf16.mxu1 %v5988_v42 }
 0x270   :  { %v2864_v33 = vadd.f32 %v2863_v19, %v8198_v17  ;;  %v2941_v34 = vadd.f32 %v2940_v20, %v8198_v17  ;;  %v2865_v35 = vpop.f32.mrb[51].mxu0  ;;  %v2942_v36 = vpop.f32.mrb[51].mxu1  ;;  %5983 = vmatpush1.bf16.msra.mxu0 %v5982_v30  ;;  %5991 = vmatpush1.bf16.msra.mxu1 %v5990_v31  ;;  %v3776_v43 = vmul.f32 %v8187_v60, %v3715_v50 }
 0x271   :  { %v2866_v40 = vadd.f32 %v2865_v35, %v8198_v17  ;;  %v2943_v46 = vadd.f32 %v2942_v36, %v8198_v17  ;;  %v3778_v44 = vmul.f32 %v8187_v60, %v3717_v59  ;;  %v3777_v52 = vmul.f32 %v8187_v60, %v3716_v12 }
 0x272   :  { %v3739_v48 = vmax.f32 %v2864_v33, 0.0  ;;  %v3741_v49 = vmax.f32 %v2941_v34, 0.0  ;;  %v3779_v53 = vmul.f32 %v8187_v60, %v3718_v9 }
 0x273   :  { %v3740_v54 = vmax.f32 %v2866_v40, 0.0  ;;  %v3742_v57 = vmax.f32 %v2943_v46, 0.0  ;;  %v3011_v58 = vpop.f32.mrb[52].mxu0  ;;  %v3088_v26 = vpop.f32.mrb[52].mxu1  ;;  %4812 = vmatmul.mubr.msk.f32.vlgmr.msra.gmra.mrb[68].mxu0 %vm2784_vm2, %v8054_v51  ;;  %4814 = vmatmul.mubr.msk.f32.vlgmr.msra.gmra.mrb[68].mxu1 %vm2784_vm2, %v8054_v51 }
 0x274   :  { %v3800_v61 = vmul.f32 %v8210_v14, %v3739_v48  ;;  %v3802_v56 = vmul.f32 %v8210_v14, %v3741_v49  ;;  %v3012_v62 = vadd.f32 %v3011_v58, %v8175_v8  ;;  %v3089_v63 = vadd.f32 %v3088_v26, %v8175_v8  ;;  %v3013_v1 = vpop.f32.mrb[53].mxu0  ;;  %v3090_v3 = vpop.f32.mrb[53].mxu1  ;;  %3631 = vmatprep.mubr.f32.mxu0 %v6123_v5 }
 0x275   :  { %v3801_v4 = vmul.f32 %v8210_v14, %v3740_v54  ;;  %v3803_v6 = vmul.f32 %v8210_v14, %v3742_v57  ;;  %v3014_v7 = vadd.f32 %v3013_v1, %v8175_v8  ;;  %v3091_v11 = vadd.f32 %v3090_v3, %v8175_v8  ;;  %3708 = vmatprep.mubr.f32.mxu1 %v6123_v5 }
 0x276   :  { %v3824_v15 = vadd.f32 %v3800_v61, %v3776_v43  ;;  %v3838_v16 = vadd.f32 %v3802_v56, %v3778_v44  ;;  %v3719_v37 = vmax.f32 %v3012_v62, 0.0  ;;  %v3721_v18 = vmax.f32 %v3089_v63, 0.0 }
 0x277   :  { %v3831_v21 = vadd.f32 %v3801_v4, %v3777_v52  ;;  %v3845_v51 = vadd.f32 %v3803_v6, %v3779_v53  ;;  %v3720_v22 = vmax.f32 %v3014_v7, 0.0  ;;  %v3722_v23 = vmax.f32 %v3091_v11, 0.0  ;;  %v3017_v24 = vpop.f32.mrb[54].mxu0  ;;  %v3094_v25 = vpop.f32.mrb[54].mxu1  ;;  %4813 = vmatmul.mubr.msk.f32.gmra.mrb[70].mxu0 %vm2784_vm2, %v8065_v2  ;;  %4815 = vmatmul.mubr.msk.f32.gmra.mrb[70].mxu1 %vm2784_vm2, %v8065_v2 }
 0x278   :  { %v3825_v27 = vrot.slane %v3824_v15, 4  ;;  %v3839_v28 = vrot.slane %v3838_v16, 4  ;;  %v3780_v29 = vmul.f32 %v8187_v60, %v3719_v37  ;;  %v3782_v30 = vmul.f32 %v8187_v60, %v3721_v18  ;;  %v3019_v31 = vpop.f32.mrb[55].mxu0  ;;  %v3096_v5 = vpop.f32.mrb[55].mxu1 }
 0x279   :  { %v3832_v32 = vrot.slane %v3831_v21, 4  ;;  %v3846_v0 = vrot.slane %v3845_v51, 4  ;;  %v3781_v10 = vmul.f32 %v8187_v60, %v3720_v22  ;;  %v3783_v13 = vmul.f32 %v8187_v60, %v3722_v23 }
 0x27a   :  { %v3826_v41 = vadd.f32 %v3825_v27, %v3824_v15  ;;  %v3840_v42 = vadd.f32 %v3839_v28, %v3838_v16  ;;  %v3018_v45 = vadd.f32 %v3017_v24, %v8198_v17  ;;  %v3095_v47 = vadd.f32 %v3094_v25, %v8198_v17 }
 0x27b   :  { %v3833_v38 = vadd.f32 %v3832_v32, %v3831_v21  ;;  %v3847_v50 = vadd.f32 %v3846_v0, %v3845_v51  ;;  %v3020_v59 = vadd.f32 %v3019_v31, %v8198_v17  ;;  %v3097_v2 = vadd.f32 %v3096_v5, %v8198_v17 }
 0x27c   :  { %v3827_v12 = vrot.slane %v3826_v41, 2  ;;  %v3841_v9 = vrot.slane %v3840_v42, 2  ;;  %v3743_v19 = vmax.f32 %v3018_v45, 0.0  ;;  %v3745_v20 = vmax.f32 %v3095_v47, 0.0 }
 0x27d   :  { %v3834_v33 = vrot.slane %v3833_v38, 2  ;;  %v3848_v34 = vrot.slane %v3847_v50, 2  ;;  %v3744_v35 = vmax.f32 %v3020_v59, 0.0  ;;  %v3746_v36 = vmax.f32 %v3097_v2, 0.0 }
 0x27e   :  { %v3828_v40 = vadd.f32 %v3827_v12, %v3826_v41  ;;  %v3842_v46 = vadd.f32 %v3841_v9, %v3840_v42  ;;  %v3804_v43 = vmul.f32 %v8210_v14, %v3743_v19  ;;  %v3806_v44 = vmul.f32 %v8210_v14, %v3745_v20 }
 0x27f   :  { %v3835_v48 = vadd.f32 %v3834_v33, %v3833_v38  ;;  %v3849_v49 = vadd.f32 %v3848_v34, %v3847_v50  ;;  %v3805_v52 = vmul.f32 %v8210_v14, %v3744_v35  ;;  %v3807_v53 = vmul.f32 %v8210_v14, %v3746_v36 }
 0x280   :  { %v3829_v54 = vrot.slane %v3828_v40, 1  ;;  %v3843_v57 = vrot.slane %v3842_v46, 1  ;;  %v3852_v58 = vadd.f32 %v3804_v43, %v3780_v29  ;;  %v3866_v26 = vadd.f32 %v3806_v44, %v3782_v30 }
 0x281   :  { %v3836_v61 = vrot.slane %v3835_v48, 1  ;;  %v3850_v56 = vrot.slane %v3849_v49, 1  ;;  %v3859_v62 = vadd.f32 %v3805_v52, %v3781_v10  ;;  %v3873_v63 = vadd.f32 %v3807_v53, %v3783_v13 }
 0x282   :  { %v3830_v1 = vadd.f32 %v3829_v54, %v3828_v40  ;;  %v3844_v3 = vadd.f32 %v3843_v57, %v3842_v46  ;;  %v3853_v4 = vrot.slane %v3852_v58, 4  ;;  %v3867_v6 = vrot.slane %v3866_v26, 4 }
 0x283   :  { %v3837_v7 = vadd.f32 %v3836_v61, %v3835_v48  ;;  %v3851_v11 = vadd.f32 %v3850_v56, %v3849_v49  ;;  %v3860_v15 = vrot.slane %v3859_v62, 4  ;;  %v3874_v16 = vrot.slane %v3873_v63, 4 }
 0x284   :  { %v4001_v37 = vadd.f32 %v8206_v39, %v3830_v1  ;;  %v4003_v18 = vadd.f32 %v8206_v39, %v3844_v3  ;;  %v3854_v21 = vadd.f32 %v3853_v4, %v3852_v58  ;;  %v3868_v51 = vadd.f32 %v3867_v6, %v3866_v26 }
 0x285   :  { %v4002_v22 = vadd.f32 %v8206_v39, %v3837_v7  ;;  %v4004_v23 = vadd.f32 %v8206_v39, %v3851_v11  ;;  %v3861_v24 = vadd.f32 %v3860_v15, %v3859_v62  ;;  %v3875_v25 = vadd.f32 %v3874_v16, %v3873_v63 }
 0x286   :  { %v4816_v27 = vmul.f32 -1.442695, %v4001_v37  ;;  %v4818_v28 = vmul.f32 -1.442695, %v4003_v18  ;;  %v3855_v29 = vrot.slane %v3854_v21, 2  ;;  %v3869_v30 = vrot.slane %v3868_v51, 2 }
 0x287   :  { %v4817_v31 = vmul.f32 -1.442695, %v4002_v22  ;;  %v4819_v5 = vmul.f32 -1.442695, %v4004_v23  ;;  %v3862_v32 = vrot.slane %v3861_v24, 2  ;;  %v3876_v0 = vrot.slane %v3875_v25, 2 }
 0x288   :  { %5998 = vpow2.f32 %v4816_v27  ;;  %v3856_v10 = vadd.f32 %v3855_v29, %v3854_v21  ;;  %v3870_v13 = vadd.f32 %v3869_v30, %v3868_v51  ;;  %v3165_v41 = vpop.f32.mrb[56].mxu0  ;;  %v3242_v42 = vpop.f32.mrb[56].mxu1 }
 0x289   :  { %6000 = vpow2.f32 %v4818_v28  ;;  %v3863_v45 = vadd.f32 %v3862_v32, %v3861_v24  ;;  %v3877_v47 = vadd.f32 %v3876_v0, %v3875_v25  ;;  %v3166_v38 = vadd.f32 %v3165_v41, %v8175_v8  ;;  %v3167_v50 = vpop.f32.mrb[57].mxu0  ;;  %v3244_v59 = vpop.f32.mrb[57].mxu1 }
 0x28a   :  { %6002 = vpow2.f32 %v4817_v31  ;;  %v3857_v2 = vrot.slane %v3856_v10, 1  ;;  %v3871_v12 = vrot.slane %v3870_v13, 1  ;;  %v3243_v9 = vadd.f32 %v3242_v42, %v8175_v8  ;;  %v3171_v19 = vpop.f32.mrb[58].mxu0  ;;  %v3248_v20 = vpop.f32.mrb[58].mxu1 }
 0x28b   :  { %6004 = vpow2.f32 %v4819_v5  ;;  %v3864_v33 = vrot.slane %v3863_v45, 1  ;;  %v3878_v34 = vrot.slane %v3877_v47, 1  ;;  %v3723_v35 = vmax.f32 %v3166_v38, 0.0  ;;  %v3173_v36 = vpop.f32.mrb[59].mxu0  ;;  %v3250_v40 = vpop.f32.mrb[59].mxu1 }
 0x28c   :  { %v3858_v46 = vadd.f32 %v3857_v2, %v3856_v10  ;;  %v3872_v43 = vadd.f32 %v3871_v12, %v3870_v13  ;;  %v3725_v44 = vmax.f32 %v3243_v9, 0.0  ;;  %v3168_v48 = vadd.f32 %v3167_v50, %v8175_v8 }
 0x28d   :  { %v3865_v49 = vadd.f32 %v3864_v33, %v3863_v45  ;;  %v3879_v52 = vadd.f32 %v3878_v34, %v3877_v47  ;;  %v3245_v53 = vadd.f32 %v3244_v59, %v8175_v8  ;;  %v3784_v56 = vmul.f32 %v8187_v60, %v3723_v35 }
 0x28e   :  { %v4005_v54 = vadd.f32 %v8206_v39, %v3858_v46  ;;  %v4007_v57 = vadd.f32 %v8206_v39, %v3872_v43  ;;  %v3724_v58 = vmax.f32 %v3168_v48, 0.0  ;;  %v3172_v62 = vadd.f32 %v3171_v19, %v8198_v17 }
 0x28f   :  { %v4006_v26 = vadd.f32 %v8206_v39, %v3865_v49  ;;  %v4008_v61 = vadd.f32 %v8206_v39, %v3879_v52  ;;  %v3786_v3 = vmul.f32 %v8187_v60, %v3725_v44  ;;  %v3249_v4 = vadd.f32 %v3248_v20, %v8198_v17 }
 0x290   :  { %v4820_v63 = vmul.f32 -1.442695, %v4005_v54  ;;  %v4822_v1 = vmul.f32 -1.442695, %v4007_v57  ;;  %v3785_v7 = vmul.f32 %v8187_v60, %v3724_v58  ;;  %v3726_v11 = vmax.f32 %v3245_v53, 0.0 }
 0x291   :  { %v4821_v6 = vmul.f32 -1.442695, %v4006_v26  ;;  %v3747_v15 = vmax.f32 %v3172_v62, 0.0  ;;  %v3749_v37 = vmax.f32 %v3249_v4, 0.0  ;;  %v3174_v18 = vadd.f32 %v3173_v36, %v8198_v17 }
 0x292   :  { %v5999_v16 = vpop.eup %5998  ;;  %6006 = vpow2.f32 %v4820_v63  ;;  %v3251_v21 = vadd.f32 %v3250_v40, %v8198_v17  ;;  %v4823_v23 = vmul.f32 -1.442695, %v4008_v61  ;;  %v3787_v41 = vmul.f32 %v8187_v60, %v3726_v11 }
 0x293   :  { %v6001_v51 = vpop.eup %6000  ;;  %v4097_v22 = vadd.f32 1.0, %v5999_v16  ;;  %6008 = vpow2.f32 %v4822_v1  ;;  %v3808_v24 = vmul.f32 %v8210_v14, %v3747_v15  ;;  %v3810_v28 = vmul.f32 %v8210_v14, %v3749_v37 }
 0x294   :  { %v6003_v25 = vpop.eup %6002  ;;  %v4099_v27 = vadd.f32 1.0, %v6001_v51  ;;  %6010 = vpow2.f32 %v4821_v6  ;;  %v3748_v29 = vmax.f32 %v3174_v18, 0.0  ;;  %v3750_v32 = vmax.f32 %v3251_v21, 0.0 }
 0x295   :  { %v6005_v30 = vpop.eup %6004  ;;  %6012 = vrcp.f32 %v4097_v22  ;;  %v4098_v31 = vadd.f32 1.0, %v6003_v25  ;;  %v3880_v5 = vadd.f32 %v3808_v24, %v3784_v56  ;;  %v3894_v10 = vadd.f32 %v3810_v28, %v3786_v3 }
 0x296   :  { %6014 = vrcp.f32 %v4099_v27  ;;  %v4100_v0 = vadd.f32 1.0, %v6005_v30  ;;  %v3809_v13 = vmul.f32 %v8210_v14, %v3748_v29  ;;  %v3811_v45 = vmul.f32 %v8210_v14, %v3750_v32 }
 0x297   :  { %6016 = vrcp.f32 %v4098_v31  ;;  %v3881_v42 = vrot.slane %v3880_v5, 4  ;;  %v6124_v47 = vmov 1966171168   ;;  %v3895_v50 = vrot.slane %v3894_v10, 4 }
 0x298   :  { %v4198_v38 = vunpack.c.l.s4 %v6124_v47  ;;  %6018 = vrcp.f32 %v4100_v0  ;;  %v3887_v59 = vadd.f32 %v3809_v13, %v3785_v7  ;;  %v3901_v12 = vadd.f32 %v3811_v45, %v3787_v41 }
 0x299   :  { %6020 = vpow2.f32 %v4823_v23  ;;  %v3882_v2 = vadd.f32 %v3881_v42, %v3880_v5  ;;  %v3896_v9 = vadd.f32 %v3895_v50, %v3894_v10 }
 0x29a   :  { %v3888_v19 = vrot.slane %v3887_v59, 4  ;;  %v3902_v33 = vrot.slane %v3901_v12, 4  ;;  %v4199_v35 = vunpack.c.0.s8 %v4198_v38 }
 0x29b   :  { %v3883_v20 = vrot.slane %v3882_v2, 2  ;;  %v3897_v36 = vrot.slane %v3896_v9, 2 }
 0x29c   :  { %v6007_v34 = vpop.eup %6006  ;;  %v3889_v40 = vadd.f32 %v3888_v19, %v3887_v59  ;;  %v3903_v48 = vadd.f32 %v3902_v33, %v3901_v12  ;;  %v8271_v62 = vsub.s32 %v4199_v35, %v8185_v55 }
 0x29d   :  { %v6009_v46 = vpop.eup %6008  ;;  %v4101_v43 = vadd.f32 1.0, %v6007_v34  ;;  %v3884_v44 = vadd.f32 %v3883_v20, %v3882_v2  ;;  %v3898_v53 = vadd.f32 %v3897_v36, %v3896_v9 }
 0x29e   :  { %v6011_v49 = vpop.eup %6010  ;;  %v4103_v52 = vadd.f32 1.0, %v6009_v46  ;;  %v3890_v54 = vrot.slane %v3889_v40, 2  ;;  %v3904_v61 = vrot.slane %v3903_v48, 2 }
 0x29f   :  { %v6013_v57 = vpop.eup %6012  ;;  %6022 = vrcp.f32 %v4101_v43  ;;  %v4102_v58 = vadd.f32 1.0, %v6011_v49  ;;  %v3885_v26 = vrot.slane %v3884_v44, 1  ;;  %v3899_v63 = vrot.slane %v3898_v53, 1 }
 0x2a0   :  { %v6015_v56 = vpop.eup %6014  ;;  %v3891_v1 = vadd.f32 %v3890_v54, %v3889_v40  ;;  %v3905_v6 = vadd.f32 %v3904_v61, %v3903_v48 }
 0x2a1   :  { %v6017_v3 = vpop.eup %6016  ;;  %6024 = vrcp.f32 %v4102_v58  ;;  %v3886_v4 = vadd.f32 %v3885_v26, %v3884_v44  ;;  %v3900_v11 = vadd.f32 %v3899_v63, %v3898_v53 }
 0x2a2   :  { %v6019_v7 = vpop.eup %6018  ;;  %v3892_v15 = vrot.slane %v3891_v1, 1  ;;  %v4193_v16 = vcombine.low %v6013_v57, %v6017_v3  ;;  %6026 = vrcp.f32 %v4103_v52  ;;  %v3906_v21 = vrot.slane %v3905_v6, 1 }
 0x2a3   :  { %v6021_v37 = vpop.eup %6020  ;;  %v4009_v18 = vadd.f32 %v8206_v39, %v3886_v4  ;;  %v4194_v51 = vcombine.low %v6015_v56, %v6019_v7  ;;  %v4011_v55 = vadd.f32 %v8206_v39, %v3900_v11 }
 0x2a4   :  { %v4104_v22 = vadd.f32 1.0, %v6021_v37  ;;  %v3893_v23 = vadd.f32 %v3892_v15, %v3891_v1  ;;  %v4203_v24 = vrot.slane %v4193_v16, %v8271_v62  ;;  %v3907_v27 = vadd.f32 %v3906_v21, %v3905_v6 }
 0x2a5   :  { %v4824_v25 = vmul.f32 -1.442695, %v4009_v18  ;;  %v4210_v28 = vrot.slane %v4194_v51, %v8271_v62  ;;  %v4826_v29 = vmul.f32 -1.442695, %v4011_v55 }
 0x2a6   :  { %6028 = vrcp.f32 %v4104_v22  ;;  %v4010_v30 = vadd.f32 %v8206_v39, %v3893_v23  ;;  %v4012_v31 = vadd.f32 %v8206_v39, %v3907_v27 }
 0x2a7   :  { %6030 = vpow2.f32 %v4824_v25  ;;  %v4225_v5 = vcombine.low %v4203_v24, %v4210_v28 }
 0x2a8   :  { %6032 = vpow2.f32 %v4826_v29  ;;  %v4825_v32 = vmul.f32 -1.442695, %v4010_v30  ;;  %v4827_v10 = vmul.f32 -1.442695, %v4012_v31 }
 0x2a9   :  { %v6023_v0 = vpop.eup %6022  ;;  %v4233_v36 = vrot.slane %v4225_v5, %v8271_v62 }
 0x2aa   :  { %6034 = vpow2.f32 %v4825_v32 }
 0x2ab   :  { %v6025_v13 = vpop.eup %6024  ;;  %6036 = vpow2.f32 %v4827_v10 }
 0x2ac   :  { %v4195_v41 = vcombine.low %v6023_v0, %v6025_v13  ;;  %v6027_v42 = vpop.eup %6026 }
 0x2ae   :  { %v4217_v50 = vrot.slane %v4195_v41, %v8271_v62 }
 0x2b0   :  { %v6029_v45 = vpop.eup %6028 }
 0x2b1   :  { %v6031_v47 = vpop.eup %6030  ;;  %v4196_v38 = vcombine.low %v6027_v42, %v6029_v45 }
 0x2b2   :  { %v6033_v59 = vpop.eup %6032  ;;  %v4105_v2 = vadd.f32 1.0, %v6031_v47 }
 0x2b3   :  { %v4107_v12 = vadd.f32 1.0, %v6033_v59  ;;  %v4224_v9 = vrot.slane %v4196_v38, %v8271_v62 }
 0x2b4   :  { %v6035_v19 = vpop.eup %6034  ;;  %6038 = vrcp.f32 %v4105_v2 }
 0x2b5   :  { %v6037_v20 = vpop.eup %6036  ;;  %v4106_v33 = vadd.f32 1.0, %v6035_v19  ;;  %v4226_v34 = vcombine.low %v4217_v50, %v4224_v9  ;;  %6040 = vrcp.f32 %v4107_v12 }
 0x2b6   :  { %v4108_v35 = vadd.f32 1.0, %v6037_v20 }
 0x2b7   :  { %6042 = vrcp.f32 %v4106_v33  ;;  %v4240_v40 = vrot.slane %v4226_v34, %v8271_v62 }
 0x2b8   :  { %6044 = vrcp.f32 %v4108_v35 }
 0x2b9   :  { %v4241_v46 = vcombine.low %v4233_v36, %v4240_v40 }
 0x2bb   :  { %4343 = vst [vmem:[#allocation3] sm:$0xff] %v4241_v46 }
 0x2be   :  { %v6039_v43 = vpop.eup %6038 }
 0x2bf   :  { %v6041_v44 = vpop.eup %6040 }
 0x2c1   :  { %v6043_v48 = vpop.eup %6042 }
 0x2c2   :  { %v6045_v49 = vpop.eup %6044  ;;  %v4242_v52 = vcombine.low %v6039_v43, %v6043_v48 }
 0x2c3   :  { %v4243_v53 = vcombine.low %v6041_v44, %v6045_v49 }
 0x2c4   :  { %v8284_v54 = vrot.slane %v4242_v52, %v8271_v62 }
 0x2c5   :  { %v8287_v57 = vrot.slane %v4243_v53, %v8271_v62 }
 0x2c6   :  { %v3319_v58 = vpop.f32.mrb[60].mxu0  ;;  %v3396_v26 = vpop.f32.mrb[60].mxu1 }
 0x2c7   :  { %v3320_v61 = vadd.f32 %v3319_v58, %v8175_v8  ;;  %v3397_v56 = vadd.f32 %v3396_v26, %v8175_v8  ;;  %v3321_v63 = vpop.f32.mrb[61].mxu0  ;;  %v3398_v1 = vpop.f32.mrb[61].mxu1  ;;  %v4274_v3 = vcombine.low %v8284_v54, %v8287_v57 }
 0x2c8   :  { %v3322_v4 = vadd.f32 %v3321_v63, %v8175_v8  ;;  %v3399_v6 = vadd.f32 %v3398_v1, %v8175_v8 }
 0x2c9   :  { %v3727_v15 = vmax.f32 %v3320_v61, 0.0  ;;  %v3729_v16 = vmax.f32 %v3397_v56, 0.0 }
 0x2ca   :  { %v3325_v7 = vpop.f32.mrb[62].mxu0  ;;  %v3402_v11 = vpop.f32.mrb[62].mxu1  ;;  %v3728_v22 = vmax.f32 %v3322_v4, 0.0  ;;  %v3730_v55 = vmax.f32 %v3399_v6, 0.0 }
 0x2cb   :  { %v3326_v37 = vadd.f32 %v3325_v7, %v8198_v17  ;;  %v3403_v18 = vadd.f32 %v3402_v11, %v8198_v17  ;;  %v3327_v21 = vpop.f32.mrb[63].mxu0  ;;  %v3404_v51 = vpop.f32.mrb[63].mxu1  ;;  %v3788_v30 = vmul.f32 %v8187_v60, %v3727_v15  ;;  %v3790_v31 = vmul.f32 %v8187_v60, %v3729_v16 }
 0x2cc   :  { %v3328_v23 = vadd.f32 %v3327_v21, %v8198_v17  ;;  %v3405_v24 = vadd.f32 %v3404_v51, %v8198_v17  ;;  %v3789_v0 = vmul.f32 %v8187_v60, %v3728_v22  ;;  %v3791_v10 = vmul.f32 %v8187_v60, %v3730_v55 }
 0x2cd   :  { %v3751_v25 = vmax.f32 %v3326_v37, 0.0  ;;  %v3753_v27 = vmax.f32 %v3403_v18, 0.0 }
 0x2ce   :  { %v3752_v28 = vmax.f32 %v3328_v23, 0.0  ;;  %v3754_v29 = vmax.f32 %v3405_v24, 0.0 }
 0x2cf   :  { %v3812_v5 = vmul.f32 %v8210_v14, %v3751_v25  ;;  %v3814_v32 = vmul.f32 %v8210_v14, %v3753_v27 }
 0x2d0   :  { %v3813_v13 = vmul.f32 %v8210_v14, %v3752_v28  ;;  %v3815_v41 = vmul.f32 %v8210_v14, %v3754_v29 }
 0x2d1   :  { %v3908_v42 = vadd.f32 %v3812_v5, %v3788_v30  ;;  %v3922_v45 = vadd.f32 %v3814_v32, %v3790_v31 }
 0x2d2   :  { %v3915_v47 = vadd.f32 %v3813_v13, %v3789_v0  ;;  %v3929_v38 = vadd.f32 %v3815_v41, %v3791_v10  ;;  %v4282_v13 = vrot.slane %v4274_v3, %v8271_v62 }
 0x2d3   :  { %v3909_v50 = vrot.slane %v3908_v42, 4  ;;  %v3923_v59 = vrot.slane %v3922_v45, 4 }
 0x2d4   :  { %v3916_v2 = vrot.slane %v3915_v47, 4  ;;  %v3930_v12 = vrot.slane %v3929_v38, 4 }
 0x2d5   :  { %v3910_v9 = vadd.f32 %v3909_v50, %v3908_v42  ;;  %v3924_v19 = vadd.f32 %v3923_v59, %v3922_v45 }
 0x2d6   :  { %v3917_v20 = vadd.f32 %v3916_v2, %v3915_v47  ;;  %v3931_v33 = vadd.f32 %v3930_v12, %v3929_v38 }
 0x2d7   :  { %v3911_v34 = vrot.slane %v3910_v9, 2  ;;  %v3925_v35 = vrot.slane %v3924_v19, 2 }
 0x2d8   :  { %v3918_v36 = vrot.slane %v3917_v20, 2  ;;  %v3932_v40 = vrot.slane %v3931_v33, 2 }
 0x2d9   :  { %v3912_v46 = vadd.f32 %v3911_v34, %v3910_v9  ;;  %v3926_v43 = vadd.f32 %v3925_v35, %v3924_v19 }
 0x2da   :  { %v3919_v44 = vadd.f32 %v3918_v36, %v3917_v20  ;;  %v3933_v48 = vadd.f32 %v3932_v40, %v3931_v33 }
 0x2db   :  { %v3913_v49 = vrot.slane %v3912_v46, 1  ;;  %v3927_v52 = vrot.slane %v3926_v43, 1 }
 0x2dc   :  { %v3920_v53 = vrot.slane %v3919_v44, 1  ;;  %v3934_v58 = vrot.slane %v3933_v48, 1 }
 0x2dd   :  { %v3914_v26 = vadd.f32 %v3913_v49, %v3912_v46  ;;  %v3928_v61 = vadd.f32 %v3927_v52, %v3926_v43 }
 0x2de   :  { %v3921_v56 = vadd.f32 %v3920_v53, %v3919_v44  ;;  %v3935_v63 = vadd.f32 %v3934_v58, %v3933_v48 }
 0x2df   :  { %v4013_v1 = vadd.f32 %v8206_v39, %v3914_v26  ;;  %v4015_v4 = vadd.f32 %v8206_v39, %v3928_v61 }
 0x2e0   :  { %v4014_v6 = vadd.f32 %v8206_v39, %v3921_v56  ;;  %v4016_v7 = vadd.f32 %v8206_v39, %v3935_v63 }
 0x2e1   :  { %v4828_v11 = vmul.f32 -1.442695, %v4013_v1  ;;  %v4830_v15 = vmul.f32 -1.442695, %v4015_v4 }
 0x2e2   :  { %v4829_v16 = vmul.f32 -1.442695, %v4014_v6  ;;  %v4831_v37 = vmul.f32 -1.442695, %v4016_v7 }
 0x2e3   :  { %6046 = vpow2.f32 %v4828_v11 }
 0x2e4   :  { %6048 = vpow2.f32 %v4830_v15 }
 0x2e5   :  { %6050 = vpow2.f32 %v4829_v16 }
 0x2e6   :  { %6052 = vpow2.f32 %v4831_v37 }
 0x2ed   :  { %v6047_v18 = vpop.eup %6046 }
 0x2ee   :  { %v6049_v21 = vpop.eup %6048  ;;  %v4109_v51 = vadd.f32 1.0, %v6047_v18 }
 0x2ef   :  { %v6051_v22 = vpop.eup %6050  ;;  %v4111_v55 = vadd.f32 1.0, %v6049_v21 }
 0x2f0   :  { %v6053_v23 = vpop.eup %6052  ;;  %6054 = vrcp.f32 %v4109_v51  ;;  %v4110_v24 = vadd.f32 1.0, %v6051_v22 }
 0x2f1   :  { %6056 = vrcp.f32 %v4111_v55  ;;  %v4112_v25 = vadd.f32 1.0, %v6053_v23 }
 0x2f2   :  { %6058 = vrcp.f32 %v4110_v24 }
 0x2f3   :  { %6060 = vrcp.f32 %v4112_v25 }
 0x2fa   :  { %v6055_v27 = vpop.eup %6054 }
 0x2fb   :  { %v6057_v28 = vpop.eup %6056 }
 0x2fc   :  { %v6059_v29 = vpop.eup %6058 }
 0x2fd   :  { %v6061_v30 = vpop.eup %6060  ;;  %v4244_v31 = vcombine.low %v6055_v27, %v6059_v29 }
 0x2fe   :  { %v4245_v5 = vcombine.low %v6057_v28, %v6061_v30 }
 0x2ff   :  { %v4266_v32 = vrot.slane %v4244_v31, %v8271_v62 }
 0x300   :  { %v4273_v0 = vrot.slane %v4245_v5, %v8271_v62 }
 0x302   :  { %v4275_v10 = vcombine.low %v4266_v32, %v4273_v0 }
 0x304   :  { %v4289_v41 = vrot.slane %v4275_v10, %v8271_v62 }
 0x306   :  { %v3473_v42 = vpop.f32.mrb[64].mxu0  ;;  %v3550_v45 = vpop.f32.mrb[64].mxu1  ;;  %v4290_v47 = vcombine.low %v4282_v13, %v4289_v41 }
 0x307   :  { %v3474_v38 = vadd.f32 %v3473_v42, %v8175_v8  ;;  %v3551_v50 = vadd.f32 %v3550_v45, %v8175_v8  ;;  %v3475_v59 = vpop.f32.mrb[65].mxu0  ;;  %v3552_v2 = vpop.f32.mrb[65].mxu1 }
 0x308   :  { %v3476_v12 = vadd.f32 %v3475_v59, %v8175_v8  ;;  %v3553_v9 = vadd.f32 %v3552_v2, %v8175_v8  ;;  %4344 = vst [vmem:[#allocation3 + $0x8] sm:$0xff] %v4290_v47 }
 0x309   :  { %v3731_v54 = vmax.f32 %v3474_v38, 0.0  ;;  %v3733_v57 = vmax.f32 %v3551_v50, 0.0 }
 0x30a   :  { %v3479_v19 = vpop.f32.mrb[66].mxu0  ;;  %v3556_v20 = vpop.f32.mrb[66].mxu1  ;;  %v3732_v36 = vmax.f32 %v3476_v12, 0.0  ;;  %v3734_v40 = vmax.f32 %v3553_v9, 0.0 }
 0x30b   :  { %v3480_v3 = vadd.f32 %v3479_v19, %v8198_v17  ;;  %v3557_v33 = vadd.f32 %v3556_v20, %v8198_v17  ;;  %v3481_v34 = vpop.f32.mrb[67].mxu0  ;;  %v3558_v35 = vpop.f32.mrb[67].mxu1  ;;  %v3792_v53 = vmul.f32 %v8187_v60, %v3731_v54  ;;  %v3794_v58 = vmul.f32 %v8187_v60, %v3733_v57 }
 0x30c   :  { %v3482_v46 = vadd.f32 %v3481_v34, %v8198_v17  ;;  %v3559_v43 = vadd.f32 %v3558_v35, %v8198_v17  ;;  %v3793_v56 = vmul.f32 %v8187_v60, %v3732_v36  ;;  %v3795_v63 = vmul.f32 %v8187_v60, %v3734_v40 }
 0x30d   :  { %v3755_v44 = vmax.f32 %v3480_v3, 0.0  ;;  %v3757_v48 = vmax.f32 %v3557_v33, 0.0 }
 0x30e   :  { %v3756_v49 = vmax.f32 %v3482_v46, 0.0  ;;  %v3758_v52 = vmax.f32 %v3559_v43, 0.0 }
 0x30f   :  { %v3816_v26 = vmul.f32 %v8210_v14, %v3755_v44  ;;  %v3818_v61 = vmul.f32 %v8210_v14, %v3757_v48 }
 0x310   :  { %v3817_v1 = vmul.f32 %v8210_v14, %v3756_v49  ;;  %v3819_v4 = vmul.f32 %v8210_v14, %v3758_v52 }
 0x311   :  { %v3936_v6 = vadd.f32 %v3816_v26, %v3792_v53  ;;  %v3950_v7 = vadd.f32 %v3818_v61, %v3794_v58 }
 0x312   :  { %v3943_v11 = vadd.f32 %v3817_v1, %v3793_v56  ;;  %v3957_v15 = vadd.f32 %v3819_v4, %v3795_v63 }
 0x313   :  { %v3937_v16 = vrot.slane %v3936_v6, 4  ;;  %v3951_v37 = vrot.slane %v3950_v7, 4 }
 0x314   :  { %v3944_v18 = vrot.slane %v3943_v11, 4  ;;  %v3958_v21 = vrot.slane %v3957_v15, 4 }
 0x315   :  { %v3938_v51 = vadd.f32 %v3937_v16, %v3936_v6  ;;  %v3952_v22 = vadd.f32 %v3951_v37, %v3950_v7 }
 0x316   :  { %v3945_v55 = vadd.f32 %v3944_v18, %v3943_v11  ;;  %v3959_v23 = vadd.f32 %v3958_v21, %v3957_v15 }
 0x317   :  { %v3939_v24 = vrot.slane %v3938_v51, 2  ;;  %v3953_v25 = vrot.slane %v3952_v22, 2 }
 0x318   :  { %v3946_v27 = vrot.slane %v3945_v55, 2  ;;  %v3960_v28 = vrot.slane %v3959_v23, 2 }
 0x319   :  { %v3940_v29 = vadd.f32 %v3939_v24, %v3938_v51  ;;  %v3954_v30 = vadd.f32 %v3953_v25, %v3952_v22 }
 0x31a   :  { %v3947_v31 = vadd.f32 %v3946_v27, %v3945_v55  ;;  %v3961_v5 = vadd.f32 %v3960_v28, %v3959_v23 }
 0x31b   :  { %v3941_v32 = vrot.slane %v3940_v29, 1  ;;  %v3955_v0 = vrot.slane %v3954_v30, 1 }
 0x31c   :  { %v3948_v10 = vrot.slane %v3947_v31, 1  ;;  %v3962_v13 = vrot.slane %v3961_v5, 1 }
 0x31d   :  { %v3942_v41 = vadd.f32 %v3941_v32, %v3940_v29  ;;  %v3956_v42 = vadd.f32 %v3955_v0, %v3954_v30 }
 0x31e   :  { %v3949_v45 = vadd.f32 %v3948_v10, %v3947_v31  ;;  %v3963_v47 = vadd.f32 %v3962_v13, %v3961_v5 }
 0x31f   :  { %v4017_v38 = vadd.f32 %v8206_v39, %v3942_v41  ;;  %v4019_v50 = vadd.f32 %v8206_v39, %v3956_v42 }
 0x320   :  { %v4018_v59 = vadd.f32 %v8206_v39, %v3949_v45  ;;  %v4020_v2 = vadd.f32 %v8206_v39, %v3963_v47 }
 0x321   :  { %v4832_v12 = vmul.f32 -1.442695, %v4017_v38  ;;  %v4834_v9 = vmul.f32 -1.442695, %v4019_v50 }
 0x322   :  { %v4833_v19 = vmul.f32 -1.442695, %v4018_v59  ;;  %v4835_v20 = vmul.f32 -1.442695, %v4020_v2 }
 0x323   :  { %6062 = vpow2.f32 %v4832_v12 }
 0x324   :  { %6064 = vpow2.f32 %v4834_v9 }
 0x325   :  { %6066 = vpow2.f32 %v4833_v19 }
 0x326   :  { %6068 = vpow2.f32 %v4835_v20 }
 0x32d   :  { %v6063_v54 = vpop.eup %6062 }
 0x32e   :  { %v6065_v57 = vpop.eup %6064  ;;  %v4113_v3 = vadd.f32 1.0, %v6063_v54 }
 0x32f   :  { %v6067_v33 = vpop.eup %6066  ;;  %v4115_v34 = vadd.f32 1.0, %v6065_v57 }
 0x330   :  { %v6069_v35 = vpop.eup %6068  ;;  %6070 = vrcp.f32 %v4113_v3  ;;  %v4114_v36 = vadd.f32 1.0, %v6067_v33 }
 0x331   :  { %6072 = vrcp.f32 %v4115_v34  ;;  %v4116_v40 = vadd.f32 1.0, %v6069_v35 }
 0x332   :  { %6074 = vrcp.f32 %v4114_v36 }
 0x333   :  { %6076 = vrcp.f32 %v4116_v40 }
 0x33a   :  { %v6071_v46 = vpop.eup %6070 }
 0x33b   :  { %v6073_v43 = vpop.eup %6072 }
 0x33c   :  { %v6075_v44 = vpop.eup %6074 }
 0x33d   :  { %v6077_v48 = vpop.eup %6076  ;;  %v4291_v49 = vcombine.low %v6071_v46, %v6075_v44 }
 0x33e   :  { %v4292_v52 = vcombine.low %v6073_v43, %v6077_v48 }
 0x33f   :  { %v8339_v53 = vrot.slane %v4291_v49, %v8271_v62 }
 0x340   :  { %v8342_v58 = vrot.slane %v4292_v52, %v8271_v62 }
 0x342   :  { %v4323_v26 = vcombine.low %v8339_v53, %v8342_v58 }
 0x346   :  { %v3627_v61 = vpop.f32.mrb[68].mxu0  ;;  %v3704_v63 = vpop.f32.mrb[68].mxu1 }
 0x347   :  { %v3628_v56 = vadd.f32 %v3627_v61, %v8175_v8  ;;  %v3629_v1 = vpop.f32.mrb[69].mxu0  ;;  %v3705_v4 = vadd.f32 %v3704_v63, %v8175_v8  ;;  %v3706_v7 = vpop.f32.mrb[69].mxu1 }
 0x348   :  { %v3630_v6 = vadd.f32 %v3629_v1, %v8175_v8  ;;  %v3707_v11 = vadd.f32 %v3706_v7, %v8175_v8 }
 0x349   :  { %v3735_v16 = vmax.f32 %v3628_v56, 0.0  ;;  %v3737_v51 = vmax.f32 %v3705_v4, 0.0 }
 0x34a   :  { %v3633_v15 = vpop.f32.mrb[70].mxu0  ;;  %v3710_v18 = vpop.f32.mrb[70].mxu1  ;;  %v3736_v22 = vmax.f32 %v3630_v6, 0.0  ;;  %v3738_v25 = vmax.f32 %v3707_v11, 0.0 }
 0x34b   :  { %v3634_v37 = vadd.f32 %v3633_v15, %v8198_v17  ;;  %v3635_v21 = vpop.f32.mrb[71].mxu0  ;;  %v3711_v55 = vadd.f32 %v3710_v18, %v8198_v17  ;;  %v3712_v24 = vpop.f32.mrb[71].mxu1  ;;  %v3796_v8 = vmul.f32 %v8187_v60, %v3735_v16  ;;  %v3798_v32 = vmul.f32 %v8187_v60, %v3737_v51 }
 0x34c   :  { %v3636_v23 = vadd.f32 %v3635_v21, %v8198_v17  ;;  %v3713_v28 = vadd.f32 %v3712_v24, %v8198_v17  ;;  %v3797_v0 = vmul.f32 %v8187_v60, %v3736_v22  ;;  %v3799_v41 = vmul.f32 %v8187_v60, %v3738_v25 }
 0x34d   :  { %v3759_v27 = vmax.f32 %v3634_v37, 0.0  ;;  %v3761_v29 = vmax.f32 %v3711_v55, 0.0 }
 0x34e   :  { %v3760_v30 = vmax.f32 %v3636_v23, 0.0  ;;  %v3762_v5 = vmax.f32 %v3713_v28, 0.0 }
 0x34f   :  { %v3820_v31 = vmul.f32 %v8210_v14, %v3759_v27  ;;  %v3822_v10 = vmul.f32 %v8210_v14, %v3761_v29 }
 0x350   :  { %v3821_v13 = vmul.f32 %v8210_v14, %v3760_v30  ;;  %v3823_v17 = vmul.f32 %v8210_v14, %v3762_v5  ;;  %v4331_v5 = vrot.slane %v4323_v26, %v8271_v62 }
 0x351   :  { %v3964_v42 = vadd.f32 %v3820_v31, %v3796_v8  ;;  %v3978_v45 = vadd.f32 %v3822_v10, %v3798_v32 }
 0x352   :  { %v3971_v47 = vadd.f32 %v3821_v13, %v3797_v0  ;;  %v3985_v50 = vadd.f32 %v3823_v17, %v3799_v41 }
 0x353   :  { %v3965_v38 = vrot.slane %v3964_v42, 4  ;;  %v3979_v59 = vrot.slane %v3978_v45, 4 }
 0x354   :  { %v3972_v2 = vrot.slane %v3971_v47, 4  ;;  %v3986_v9 = vrot.slane %v3985_v50, 4 }
 0x355   :  { %v3966_v12 = vadd.f32 %v3965_v38, %v3964_v42  ;;  %v3980_v19 = vadd.f32 %v3979_v59, %v3978_v45 }
 0x356   :  { %v3973_v20 = vadd.f32 %v3972_v2, %v3971_v47  ;;  %v3987_v57 = vadd.f32 %v3986_v9, %v3985_v50 }
 0x357   :  { %v3967_v54 = vrot.slane %v3966_v12, 2  ;;  %v3981_v3 = vrot.slane %v3980_v19, 2 }
 0x358   :  { %v3974_v33 = vrot.slane %v3973_v20, 2  ;;  %v3988_v35 = vrot.slane %v3987_v57, 2 }
 0x359   :  { %v3968_v34 = vadd.f32 %v3967_v54, %v3966_v12  ;;  %v3982_v60 = vadd.f32 %v3981_v3, %v3980_v19 }
 0x35a   :  { %v3975_v36 = vadd.f32 %v3974_v33, %v3973_v20  ;;  %v3989_v14 = vadd.f32 %v3988_v35, %v3987_v57 }
 0x35b   :  { %v3969_v40 = vrot.slane %v3968_v34, 1  ;;  %v3983_v46 = vrot.slane %v3982_v60, 1 }
 0x35c   :  { %v3976_v43 = vrot.slane %v3975_v36, 1  ;;  %v3990_v48 = vrot.slane %v3989_v14, 1 }
 0x35d   :  { %v3970_v44 = vadd.f32 %v3969_v40, %v3968_v34  ;;  %v3984_v49 = vadd.f32 %v3983_v46, %v3982_v60 }
 0x35e   :  { %v3977_v52 = vadd.f32 %v3976_v43, %v3975_v36  ;;  %v3991_v56 = vadd.f32 %v3990_v48, %v3989_v14 }
 0x35f   :  { %v4021_v61 = vadd.f32 %v8206_v39, %v3970_v44  ;;  %v4023_v63 = vadd.f32 %v8206_v39, %v3984_v49 }
 0x360   :  { %v4022_v1 = vadd.f32 %v8206_v39, %v3977_v52  ;;  %v4024_v6 = vadd.f32 %v8206_v39, %v3991_v56 }
 0x361   :  { %v4836_v4 = vmul.f32 -1.442695, %v4021_v61  ;;  %v4838_v7 = vmul.f32 -1.442695, %v4023_v63 }
 0x362   :  { %v4837_v11 = vmul.f32 -1.442695, %v4022_v1  ;;  %v4839_v15 = vmul.f32 -1.442695, %v4024_v6 }
 0x363   :  { %6078 = vpow2.f32 %v4836_v4 }
 0x364   :  { %6080 = vpow2.f32 %v4838_v7 }
 0x365   :  { %6082 = vpow2.f32 %v4837_v11 }
 0x366   :  { %6084 = vpow2.f32 %v4839_v15 }
 0x36d   :  { %v6079_v16 = vpop.eup %6078 }
 0x36e   :  { %v6081_v37 = vpop.eup %6080  ;;  %v4117_v18 = vadd.f32 1.0, %v6079_v16 }
 0x36f   :  { %v6083_v21 = vpop.eup %6082  ;;  %v4119_v51 = vadd.f32 1.0, %v6081_v37 }
 0x370   :  { %v6085_v22 = vpop.eup %6084  ;;  %6086 = vrcp.f32 %v4117_v18  ;;  %v4118_v55 = vadd.f32 1.0, %v6083_v21 }
 0x371   :  { %6088 = vrcp.f32 %v4119_v51  ;;  %v4120_v23 = vadd.f32 1.0, %v6085_v22 }
 0x372   :  { %6090 = vrcp.f32 %v4118_v55 }
 0x373   :  { %6092 = vrcp.f32 %v4120_v23 }
 0x37a   :  { %v6087_v39 = vpop.eup %6086 }
 0x37b   :  { %v6089_v24 = vpop.eup %6088 }
 0x37c   :  { %v6091_v25 = vpop.eup %6090 }
 0x37d   :  { %v6093_v27 = vpop.eup %6092  ;;  %v4293_v28 = vcombine.low %v6087_v39, %v6091_v25 }
 0x37e   :  { %v4294_v29 = vcombine.low %v6089_v24, %v6093_v27 }
 0x37f   :  { %v4315_v30 = vrot.slane %v4293_v28, %v8271_v62 }
 0x380   :  { %v4322_v8 = vrot.slane %v4294_v29, %v8271_v62 }
 0x382   :  { %v4324_v31 = vcombine.low %v4315_v30, %v4322_v8 }
 0x384   :  { %v4338_v32 = vrot.slane %v4324_v31, %v8271_v62 }
 0x386   :  { %v4339_v0 = vcombine.low %v4331_v5, %v4338_v32 }
 0x388   :  { %4345 = vst [vmem:[#allocation3 + $0x10] sm:$0xff] %v4339_v0 }
 0x389   :  { %6109 = shalt.err (!%p6106_p4)
}
 0x38a   :  { %s6110_s25 = scalar_lea.hbm %s8392_s7, 384 }
 0x38b   :  { %p6111_p5 = scmp.ne.s32.totalorder %s8392_s7, %s6110_s25  ;;  %p6114_p6 = scmp.lt.u32.totalorder %s6110_s25, %s8392_s7 }
 0x38d   :  { %p6116_p7 = pnand %p6114_p6, %p6111_p5 }
 0x38f   :  { %6119 = shalt.err (!%p6116_p7)
}
 0x390   :  { %4355 = dma.vmem_to_hbm [thread:$0]  %s4353_s22, 384, %s8392_s7, [#allocation4]  }
 0x391   :  { %6120 = dma.done.wait [#allocation4], 384  }
 0x392   :  { %6121 = vsyncadd [#allocation4], 4294966912 }
 0x393   :  { %4359 = vsyncpa [#allocation4], 1 }

</bundles_post_ra>
